<compile_context>
chip_gen: v7x
topology: tpu7x:2x2x1
jax: 0.10.0
libtpu: 0.0.40
codegen_flags: <defaults>
</compile_context>

<pallas_src>
import jax
import jax.numpy as jnp
from jax import lax
from jax.experimental import pallas as pl
from jax.experimental.pallas import tpu as pltpu

# ---------------- configuration (small synthetic sizes) ----------------
B = 2          # batch
S = 8          # text sequence length
V = 64         # vocab size
H = 32         # text_config.hidden_size
NH = 2         # attention heads
DH = H // NH   # head dim
FFN = 64       # transformer feed-forward dim
IMG_C = 4      # image channels
IMG_HW = 16    # image spatial size
IMG_FEAT = 768 # LeNet output feature size (matches "+ 768" in the module)
ATT_HID = 512  # AttentionMechanism hidden size
D_CAT = H + IMG_FEAT  # 800
LN_EPS = 1e-5


# ---------------------------- Pallas kernels ----------------------------
def _layernorm(x, g, b, eps=LN_EPS):
    mu = jnp.mean(x, axis=-1, keepdims=True)
    var = jnp.mean((x - mu) ** 2, axis=-1, keepdims=True)
    return (x - mu) * lax.rsqrt(var + eps) * g + b


def _encoder_kernel(x_ref, wqkv_ref, bqkv_ref, wo_ref, bo_ref,
                    ln1g_ref, ln1b_ref, w1_ref, b1_ref, w2_ref, b2_ref,
                    ln2g_ref, ln2b_ref, cls_ref):
    """One full post-LN transformer encoder layer, all intermediates in VMEM."""
    x = x_ref[...]                                                  # [B*S, H]

    # fused QKV projection (one GEMM instead of three)
    qkv = jnp.dot(x, wqkv_ref[...], preferred_element_type=jnp.float32) + bqkv_ref[...]
    q, k, v = qkv[:, :H], qkv[:, H:2 * H], qkv[:, 2 * H:]
    scale = 1.0 / (DH ** 0.5)

    # per-(batch, head) scaled dot-product attention; static slices only,
    # no wrapper-level reshapes/transposes.
    batch_rows = []
    for b in range(B):
        r = b * S
        heads = []
        for h in range(NH):
            c = h * DH
            qh = q[r:r + S, c:c + DH]                               # [S, DH]
            kh = k[r:r + S, c:c + DH]
            vh = v[r:r + S, c:c + DH]
            s = jnp.dot(qh, kh.T, preferred_element_type=jnp.float32) * scale
            m = jnp.max(s, axis=-1, keepdims=True)
            e = jnp.exp(s - m)
            p = e * pl.reciprocal(jnp.sum(e, axis=-1, keepdims=True), approx=True)
            heads.append(jnp.dot(p, vh, preferred_element_type=jnp.float32))
        batch_rows.append(jnp.concatenate(heads, axis=-1))          # [S, H]
    attn = jnp.concatenate(batch_rows, axis=0)                      # [B*S, H]

    attn = jnp.dot(attn, wo_ref[...], preferred_element_type=jnp.float32) + bo_ref[...]
    h1 = _layernorm(x + attn, ln1g_ref[...], ln1b_ref[...])

    f = jnp.maximum(
        jnp.dot(h1, w1_ref[...], preferred_element_type=jnp.float32) + b1_ref[...], 0.0)
    f = jnp.dot(f, w2_ref[...], preferred_element_type=jnp.float32) + b2_ref[...]
    h2 = _layernorm(h1 + f, ln2g_ref[...], ln2b_ref[...])

    # Only the CLS token (position 0 of every sequence) is consumed downstream.
    cls_ref[...] = jnp.concatenate([h2[b * S:b * S + 1, :] for b in range(B)], axis=0)


def _conv1_pool_kernel(p_ref, w_ref, b_ref, o_ref):
    """conv1 as GEMM + bias + ReLU + 2x2 maxpool.

    Input rows are pre-ordered (di, dj, b, ph, pw) so the four pool members
    live in four contiguous, tile-aligned chunks of o_ref.shape[0] rows.
    """
    y = jnp.dot(p_ref[...], w_ref[...], preferred_element_type=jnp.float32) + b_ref[...]
    y = jnp.maximum(y, 0.0)                                         # [4*B*36, 6]
    n = o_ref.shape[0]                                              # B*36
    o_ref[...] = jnp.maximum(jnp.maximum(y[0:n], y[n:2 * n]),
                             jnp.maximum(y[2 * n:3 * n], y[3 * n:4 * n]))


def _conv2_fc_kernel(p_ref, cw_ref, cb_ref, w1_ref, b1_ref, w2_ref, b2_ref,
                     w3_ref, b3_ref, o_ref):
    """conv2 GEMM + ReLU + 2x2 maxpool + fc1/fc2/fc3 fused; only the lane-dense
    [B, 768] feature slab is written back to HBM."""
    y = jnp.dot(p_ref[...], cw_ref[...], preferred_element_type=jnp.float32) + cb_ref[...]
    y = jnp.maximum(y, 0.0)                                         # [4*B, 16], rows = (spatial, b)
    bn = o_ref.shape[0]
    pooled = jnp.maximum(jnp.maximum(y[0:bn], y[bn:2 * bn]),
                         jnp.maximum(y[2 * bn:3 * bn], y[3 * bn:4 * bn]))   # [B, 16]
    h = jnp.maximum(
        jnp.dot(pooled, w1_ref[...], preferred_element_type=jnp.float32) + b1_ref[...], 0.0)
    h = jnp.maximum(
        jnp.dot(h, w2_ref[...], preferred_element_type=jnp.float32) + b2_ref[...], 0.0)
    o_ref[...] = jnp.dot(h, w3_ref[...], preferred_element_type=jnp.float32) + b3_ref[...]


def _head_kernel(cls_ref, img_ref, aw_ref, ab_ref, av_ref, cw_ref, cb_ref, o_ref):
    """concat(CLS, img) + AttentionMechanism + classifier, fused."""
    concat = jnp.concatenate([cls_ref[...], img_ref[...]], axis=-1)     # [B, 800]
    # tanh scorer; att_w is bf16 on the MXU with f32 accumulation.
    u = jnp.tanh(jnp.dot(concat.astype(jnp.bfloat16), aw_ref[...],
                         preferred_element_type=jnp.float32) + ab_ref[...])
    scores = jnp.sum(u * av_ref[...], axis=-1, keepdims=True)           # [B, 1]  (T = 1)
    # softmax over the singleton time axis -> exactly 1.0 (exact divide kept on
    # purpose so the result stays bit-exactly ctx == concat).
    e = jnp.exp(scores - scores)
    w_att = e / jnp.sum(e, axis=-1, keepdims=True)
    ctx = w_att * concat                                                # [B, 800]
    # TODO(synk): nn.Dropout(p=0.1) is identity at inference time; training-mode
    # stochastic dropout not implemented.
    o_ref[...] = jnp.dot(ctx, cw_ref[...], preferred_element_type=jnp.float32) + cb_ref[...]


# ---------------------------- model pieces ------------------------------
def transformer_encoder_cls(p, input_ids):
    """Single post-LN transformer encoder layer; returns CLS hidden state [B, H]."""
    Bn, Sn = input_ids.shape
    x = jnp.take(p["tok_emb"], input_ids, axis=0) + p["pos_emb"][None, :Sn, :]
    x2 = x.reshape(Bn * Sn, H).astype(jnp.float32)

    wqkv = jnp.concatenate([p["wq"], p["wk"], p["wv"]], axis=1)          # [H, 3H]
    bqkv = jnp.concatenate([p["bq"], p["bk"], p["bv"]], axis=0).reshape(1, 3 * H)

    flops = (2 * Bn * Sn * H * (3 * H + H + 2 * FFN)
             + 4 * Bn * NH * Sn * Sn * DH)
    cost = pl.CostEstimate(
        flops=flops,
        transcendentals=Bn * NH * Sn * Sn,
        bytes_accessed=4 * (2 * Bn * Sn * H + 4 * H * H + 2 * H * FFN + 8 * H))

    return pl.pallas_call(
        _encoder_kernel,
        out_shape=jax.ShapeDtypeStruct((Bn, H), jnp.float32),
        cost_estimate=cost,
    )(x2, wqkv, bqkv,
      p["wo"], p["bo"].reshape(1, H),
      p["ln1_g"].reshape(1, H), p["ln1_b"].reshape(1, H),
      p["w1"], p["b1"].reshape(1, FFN),
      p["w2"], p["b2"].reshape(1, H),
      p["ln2_g"].reshape(1, H), p["ln2_b"].reshape(1, H))


def _patches_nchw(x, k):
    # [B, C, H, W] -> [B, C*k*k, OH, OW]; feature order (c, kh, kw) matches
    # PyTorch conv weight.reshape(OC, C*KH*KW).
    return lax.conv_general_dilated_patches(
        x, filter_shape=(k, k), window_strides=(1, 1), padding="VALID",
        dimension_numbers=("NCHW", "OIHW", "NCHW"))


def lenet(p, images):
    """LeNet-style CNN mapping [B, IMG_C, 16, 16] -> [B, 768] with 2 fused kernels."""
    Bn = images.shape[0]
    oh1 = IMG_HW - 4            # 12
    ph1 = oh1 // 2              # 6
    k1 = IMG_C * 25             # 100

    # ---- conv1 + ReLU + 2x2 maxpool (fused) ----
    pt = _patches_nchw(images, 5)                                   # [B, 100, 12, 12]
    pt = pt.transpose(0, 2, 3, 1)                                   # [B, 12, 12, 100]
    # reorder rows to (di, dj, b, ph, pw) so pool members are contiguous,
    # tile-aligned 72-row chunks inside the kernel.
    pt = pt.reshape(Bn, ph1, 2, ph1, 2, k1).transpose(2, 4, 0, 1, 3, 5)
    pt = pt.reshape(4 * Bn * ph1 * ph1, k1)                         # [288, 100]
    c1w = p["c1_w"].reshape(6, -1).T                                # [100, 6]
    pooled1 = pl.pallas_call(
        _conv1_pool_kernel,
        out_shape=jax.ShapeDtypeStruct((Bn * ph1 * ph1, 6), jnp.float32),
    )(pt, c1w, p["c1_b"].reshape(1, 6))                             # rows = (b, ph, pw)

    # ---- conv2 + ReLU + 2x2 maxpool + fc1/fc2/fc3 (fused) ----
    img1 = pooled1.reshape(Bn, ph1, ph1, 6).transpose(0, 3, 1, 2)   # NCHW [B, 6, 6, 6]
    pt2 = _patches_nchw(img1, 5)                                    # [B, 150, 2, 2]
    pt2 = pt2.transpose(2, 3, 0, 1).reshape(4 * Bn, 150)            # rows = (spatial, b)
    c2w = p["c2_w"].reshape(16, -1).T                               # [150, 16]
    return pl.pallas_call(
        _conv2_fc_kernel,
        out_shape=jax.ShapeDtypeStruct((Bn, IMG_FEAT), jnp.float32),
    )(pt2, c2w, p["c2_b"].reshape(1, 16),
      p["fc1_w"], p["fc1_b"].reshape(1, 120),
      p["fc2_w"], p["fc2_b"].reshape(1, 84),
      p["fc3_w"], p["fc3_b"].reshape(1, IMG_FEAT))


def head(p, cls_tok, img_feat):
    Bn = cls_tok.shape[0]
    cost = pl.CostEstimate(
        flops=2 * Bn * D_CAT * (ATT_HID + 2),
        transcendentals=Bn * ATT_HID,
        bytes_accessed=2 * D_CAT * ATT_HID + 4 * (Bn * D_CAT + 2 * D_CAT + Bn * 2))
    return pl.pallas_call(
        _head_kernel,
        out_shape=jax.ShapeDtypeStruct((Bn, 2), jnp.float32),
        cost_estimate=cost,
        compiler_params=pltpu.CompilerParams(vmem_limit_bytes=32 * 1024 * 1024),
    )(cls_tok, img_feat,
      p["att_w"].astype(jnp.bfloat16), p["att_b"].reshape(1, ATT_HID),
      p["att_v"].reshape(1, ATT_HID),
      p["cls_w"], p["cls_b"].reshape(1, 2))


def bd_transformer_lenet(params, input_ids, attention_mask, images):
    # NOTE: attention_mask is accepted but unused, matching the PyTorch forward
    # (it never passes the mask to self.text_model).
    del attention_mask
    cls_tok = transformer_encoder_cls(params, input_ids)    # [B, H]
    img_feat = lenet(params, images)                        # [B, 768]
    return head(params, cls_tok, img_feat)                  # [B, 2]


# ---------------------------- parameters --------------------------------
def init_params(key):
    keys = iter(jax.random.split(key, 40))

    def nrm(shape, scale=0.02):
        return (scale * jax.random.normal(next(keys), shape)).astype(jnp.float32)

    def zeros(shape):
        return jnp.zeros(shape, jnp.float32)

    def ones(shape):
        return jnp.ones(shape, jnp.float32)

    return dict(
        # transformer encoder
        tok_emb=nrm((V, H)), pos_emb=nrm((S, H)),
        wq=nrm((H, H)), bq=zeros((H,)),
        wk=nrm((H, H)), bk=zeros((H,)),
        wv=nrm((H, H)), bv=zeros((H,)),
        wo=nrm((H, H)), bo=zeros((H,)),
        ln1_g=ones((H,)), ln1_b=zeros((H,)),
        w1=nrm((H, FFN)), b1=zeros((FFN,)),
        w2=nrm((FFN, H)), b2=zeros((H,)),
        ln2_g=ones((H,)), ln2_b=zeros((H,)),
        # LeNet (PyTorch conv weight layout [OC, C, KH, KW])
        c1_w=nrm((6, IMG_C, 5, 5), 0.1), c1_b=zeros((6,)),
        c2_w=nrm((16, 6, 5, 5), 0.1), c2_b=zeros((16,)),
        fc1_w=nrm((16, 120), 0.1), fc1_b=zeros((120,)),
        fc2_w=nrm((120, 84), 0.1), fc2_b=zeros((84,)),
        fc3_w=nrm((84, IMG_FEAT), 0.1), fc3_b=zeros((IMG_FEAT,)),
        # AttentionMechanism(hidden_size + 768, 512)
        att_w=nrm((D_CAT, ATT_HID)), att_b=zeros((ATT_HID,)),
        att_v=nrm((ATT_HID,)),
        # classifier
        cls_w=nrm((D_CAT, 2)), cls_b=zeros((2,)),
    )


# ------------------------------- main ------------------------------------
if __name__ == "__main__":
    key = jax.random.PRNGKey(0)
    pkey, ikey, mkey = jax.random.split(key, 3)

    params = init_params(pkey)
    input_ids = jax.random.randint(ikey, (B, S), 0, V, dtype=jnp.int32)
    attention_mask = jnp.ones((B, S), jnp.int32)
    images = jax.random.normal(mkey, (B, IMG_C, IMG_HW, IMG_HW), jnp.float32)

    logits = jax.jit(bd_transformer_lenet)(params, input_ids, attention_mask, images)
    jax.block_until_ready(logits)
    assert logits.shape == (B, 2) and logits.dtype == jnp.float32
    print("KERNEL_OK")
</pallas_src>

<mosaic_0001>
module attributes {stable_mosaic.version = 11 : i64} {
  func.func @_encoder_kernel(%arg0: memref<16x32xf32, #tpu.memory_space<vmem>>, %arg1: memref<32x96xf32, #tpu.memory_space<vmem>>, %arg2: memref<1x96xf32, #tpu.memory_space<vmem>>, %arg3: memref<32x32xf32, #tpu.memory_space<vmem>>, %arg4: memref<1x32xf32, #tpu.memory_space<vmem>>, %arg5: memref<1x32xf32, #tpu.memory_space<vmem>>, %arg6: memref<1x32xf32, #tpu.memory_space<vmem>>, %arg7: memref<32x64xf32, #tpu.memory_space<vmem>>, %arg8: memref<1x64xf32, #tpu.memory_space<vmem>>, %arg9: memref<64x32xf32, #tpu.memory_space<vmem>>, %arg10: memref<1x32xf32, #tpu.memory_space<vmem>>, %arg11: memref<1x32xf32, #tpu.memory_space<vmem>>, %arg12: memref<1x32xf32, #tpu.memory_space<vmem>>, %arg13: memref<2x32xf32, #tpu.memory_space<vmem>>) attributes {dimension_semantics = [], scalar_prefetch = 0 : i64, scratch_operands = 0 : i64, tpu.core_type = #tpu.core_type<tc>} {
    %c0 = arith.constant 0 : index
    %c0_0 = arith.constant 0 : index
    %0 = vector.load %arg0[%c0, %c0_0] : memref<16x32xf32, #tpu.memory_space<vmem>>, vector<16x32xf32>
    %c0_1 = arith.constant 0 : index
    %c0_2 = arith.constant 0 : index
    %1 = vector.load %arg1[%c0_1, %c0_2] : memref<32x96xf32, #tpu.memory_space<vmem>>, vector<32x96xf32>
    %cst = arith.constant dense<0.000000e+00> : vector<16x96xf32>
    %2 = tpu.matmul %0, %1, %cst {dimension_numbers = #tpu.dot_dimension_numbers<[1], [0], [0], [1], [0, 0, 1, 1], [], []>} : vector<16x32xf32>, vector<32x96xf32>, vector<16x96xf32> -> vector<16x96xf32>
    %c0_3 = arith.constant 0 : index
    %c0_4 = arith.constant 0 : index
    %3 = vector.load %arg2[%c0_3, %c0_4] : memref<1x96xf32, #tpu.memory_space<vmem>>, vector<1x96xf32>
    %4 = vector.broadcast %3 : vector<1x96xf32> to vector<16x96xf32>
    %5 = arith.addf %2, %4 : vector<16x96xf32>
    %6 = vector.extract_strided_slice %5 {offsets = [0, 0], sizes = [16, 32], strides = [1, 1]} : vector<16x96xf32> to vector<16x32xf32>
    %7 = vector.extract_strided_slice %5 {offsets = [0, 32], sizes = [16, 32], strides = [1, 1]} : vector<16x96xf32> to vector<16x32xf32>
    %8 = vector.extract_strided_slice %5 {offsets = [0, 64], sizes = [16, 32], strides = [1, 1]} : vector<16x96xf32> to vector<16x32xf32>
    %9 = vector.extract_strided_slice %6 {offsets = [0, 0], sizes = [8, 16], strides = [1, 1]} : vector<16x32xf32> to vector<8x16xf32>
    %10 = vector.extract_strided_slice %7 {offsets = [0, 0], sizes = [8, 16], strides = [1, 1]} : vector<16x32xf32> to vector<8x16xf32>
    %11 = vector.extract_strided_slice %8 {offsets = [0, 0], sizes = [8, 16], strides = [1, 1]} : vector<16x32xf32> to vector<8x16xf32>
    %12 = tpu.transpose %10, [1, 0] : vector<8x16xf32> -> vector<16x8xf32>
    %cst_5 = arith.constant dense<0.000000e+00> : vector<8x8xf32>
    %13 = tpu.matmul %9, %12, %cst_5 {dimension_numbers = #tpu.dot_dimension_numbers<[1], [0], [0], [1], [0, 0, 1, 1], [], []>} : vector<8x16xf32>, vector<16x8xf32>, vector<8x8xf32> -> vector<8x8xf32>
    %cst_6 = arith.constant 2.500000e-01 : f32
    %14 = vector.broadcast %cst_6 : f32 to vector<8x8xf32>
    %15 = arith.mulf %13, %14 : vector<8x8xf32>
    %cst_7 = arith.constant dense<0xFF800000> : vector<8xf32>
    %16 = vector.multi_reduction <maximumf>, %15, %cst_7 [1] : vector<8x8xf32> to vector<8xf32>
    %17 = vector.shape_cast %16 : vector<8xf32> to vector<8x1xf32>
    %18 = vector.broadcast %17 : vector<8x1xf32> to vector<8x8xf32>
    %19 = arith.subf %15, %18 : vector<8x8xf32>
    %20 = math.exp %19 : vector<8x8xf32>
    %cst_8 = arith.constant dense<0.000000e+00> : vector<8xf32>
    %21 = vector.multi_reduction <add>, %20, %cst_8 [1] : vector<8x8xf32> to vector<8xf32>
    %22 = vector.shape_cast %21 : vector<8xf32> to vector<8x1xf32>
    %23 = tpu.reciprocal %22 {approx = true} : vector<8x1xf32> -> vector<8x1xf32>
    %24 = vector.broadcast %23 : vector<8x1xf32> to vector<8x8xf32>
    %25 = arith.mulf %20, %24 : vector<8x8xf32>
    %cst_9 = arith.constant dense<0.000000e+00> : vector<8x16xf32>
    %26 = tpu.matmul %25, %11, %cst_9 {dimension_numbers = #tpu.dot_dimension_numbers<[1], [0], [0], [1], [0, 0, 1, 1], [], []>} : vector<8x8xf32>, vector<8x16xf32>, vector<8x16xf32> -> vector<8x16xf32>
    %27 = vector.extract_strided_slice %6 {offsets = [0, 16], sizes = [8, 16], strides = [1, 1]} : vector<16x32xf32> to vector<8x16xf32>
    %28 = vector.extract_strided_slice %7 {offsets = [0, 16], sizes = [8, 16], strides = [1, 1]} : vector<16x32xf32> to vector<8x16xf32>
    %29 = vector.extract_strided_slice %8 {offsets = [0, 16], sizes = [8, 16], strides = [1, 1]} : vector<16x32xf32> to vector<8x16xf32>
    %30 = tpu.transpose %28, [1, 0] : vector<8x16xf32> -> vector<16x8xf32>
    %cst_10 = arith.constant dense<0.000000e+00> : vector<8x8xf32>
    %31 = tpu.matmul %27, %30, %cst_10 {dimension_numbers = #tpu.dot_dimension_numbers<[1], [0], [0], [1], [0, 0, 1, 1], [], []>} : vector<8x16xf32>, vector<16x8xf32>, vector<8x8xf32> -> vector<8x8xf32>
    %cst_11 = arith.constant 2.500000e-01 : f32
    %32 = vector.broadcast %cst_11 : f32 to vector<8x8xf32>
    %33 = arith.mulf %31, %32 : vector<8x8xf32>
    %cst_12 = arith.constant dense<0xFF800000> : vector<8xf32>
    %34 = vector.multi_reduction <maximumf>, %33, %cst_12 [1] : vector<8x8xf32> to vector<8xf32>
    %35 = vector.shape_cast %34 : vector<8xf32> to vector<8x1xf32>
    %36 = vector.broadcast %35 : vector<8x1xf32> to vector<8x8xf32>
    %37 = arith.subf %33, %36 : vector<8x8xf32>
    %38 = math.exp %37 : vector<8x8xf32>
    %cst_13 = arith.constant dense<0.000000e+00> : vector<8xf32>
    %39 = vector.multi_reduction <add>, %38, %cst_13 [1] : vector<8x8xf32> to vector<8xf32>
    %40 = vector.shape_cast %39 : vector<8xf32> to vector<8x1xf32>
    %41 = tpu.reciprocal %40 {approx = true} : vector<8x1xf32> -> vector<8x1xf32>
    %42 = vector.broadcast %41 : vector<8x1xf32> to vector<8x8xf32>
    %43 = arith.mulf %38, %42 : vector<8x8xf32>
    %cst_14 = arith.constant dense<0.000000e+00> : vector<8x16xf32>
    %44 = tpu.matmul %43, %29, %cst_14 {dimension_numbers = #tpu.dot_dimension_numbers<[1], [0], [0], [1], [0, 0, 1, 1], [], []>} : vector<8x8xf32>, vector<8x16xf32>, vector<8x16xf32> -> vector<8x16xf32>
    %45 = tpu.concatenate %26, %44 in 1 : vector<8x16xf32>, vector<8x16xf32> -> vector<8x32xf32>
    %46 = vector.extract_strided_slice %6 {offsets = [8, 0], sizes = [8, 16], strides = [1, 1]} : vector<16x32xf32> to vector<8x16xf32>
    %47 = vector.extract_strided_slice %7 {offsets = [8, 0], sizes = [8, 16], strides = [1, 1]} : vector<16x32xf32> to vector<8x16xf32>
    %48 = vector.extract_strided_slice %8 {offsets = [8, 0], sizes = [8, 16], strides = [1, 1]} : vector<16x32xf32> to vector<8x16xf32>
    %49 = tpu.transpose %47, [1, 0] : vector<8x16xf32> -> vector<16x8xf32>
    %cst_15 = arith.constant dense<0.000000e+00> : vector<8x8xf32>
    %50 = tpu.matmul %46, %49, %cst_15 {dimension_numbers = #tpu.dot_dimension_numbers<[1], [0], [0], [1], [0, 0, 1, 1], [], []>} : vector<8x16xf32>, vector<16x8xf32>, vector<8x8xf32> -> vector<8x8xf32>
    %cst_16 = arith.constant 2.500000e-01 : f32
    %51 = vector.broadcast %cst_16 : f32 to vector<8x8xf32>
    %52 = arith.mulf %50, %51 : vector<8x8xf32>
    %cst_17 = arith.constant dense<0xFF800000> : vector<8xf32>
    %53 = vector.multi_reduction <maximumf>, %52, %cst_17 [1] : vector<8x8xf32> to vector<8xf32>
    %54 = vector.shape_cast %53 : vector<8xf32> to vector<8x1xf32>
    %55 = vector.broadcast %54 : vector<8x1xf32> to vector<8x8xf32>
    %56 = arith.subf %52, %55 : vector<8x8xf32>
    %57 = math.exp %56 : vector<8x8xf32>
    %cst_18 = arith.constant dense<0.000000e+00> : vector<8xf32>
    %58 = vector.multi_reduction <add>, %57, %cst_18 [1] : vector<8x8xf32> to vector<8xf32>
    %59 = vector.shape_cast %58 : vector<8xf32> to vector<8x1xf32>
    %60 = tpu.reciprocal %59 {approx = true} : vector<8x1xf32> -> vector<8x1xf32>
    %61 = vector.broadcast %60 : vector<8x1xf32> to vector<8x8xf32>
    %62 = arith.mulf %57, %61 : vector<8x8xf32>
    %cst_19 = arith.constant dense<0.000000e+00> : vector<8x16xf32>
    %63 = tpu.matmul %62, %48, %cst_19 {dimension_numbers = #tpu.dot_dimension_numbers<[1], [0], [0], [1], [0, 0, 1, 1], [], []>} : vector<8x8xf32>, vector<8x16xf32>, vector<8x16xf32> -> vector<8x16xf32>
    %64 = vector.extract_strided_slice %6 {offsets = [8, 16], sizes = [8, 16], strides = [1, 1]} : vector<16x32xf32> to vector<8x16xf32>
    %65 = vector.extract_strided_slice %7 {offsets = [8, 16], sizes = [8, 16], strides = [1, 1]} : vector<16x32xf32> to vector<8x16xf32>
    %66 = vector.extract_strided_slice %8 {offsets = [8, 16], sizes = [8, 16], strides = [1, 1]} : vector<16x32xf32> to vector<8x16xf32>
    %67 = tpu.transpose %65, [1, 0] : vector<8x16xf32> -> vector<16x8xf32>
    %cst_20 = arith.constant dense<0.000000e+00> : vector<8x8xf32>
    %68 = tpu.matmul %64, %67, %cst_20 {dimension_numbers = #tpu.dot_dimension_numbers<[1], [0], [0], [1], [0, 0, 1, 1], [], []>} : vector<8x16xf32>, vector<16x8xf32>, vector<8x8xf32> -> vector<8x8xf32>
    %cst_21 = arith.constant 2.500000e-01 : f32
    %69 = vector.broadcast %cst_21 : f32 to vector<8x8xf32>
    %70 = arith.mulf %68, %69 : vector<8x8xf32>
    %cst_22 = arith.constant dense<0xFF800000> : vector<8xf32>
    %71 = vector.multi_reduction <maximumf>, %70, %cst_22 [1] : vector<8x8xf32> to vector<8xf32>
    %72 = vector.shape_cast %71 : vector<8xf32> to vector<8x1xf32>
    %73 = vector.broadcast %72 : vector<8x1xf32> to vector<8x8xf32>
    %74 = arith.subf %70, %73 : vector<8x8xf32>
    %75 = math.exp %74 : vector<8x8xf32>
    %cst_23 = arith.constant dense<0.000000e+00> : vector<8xf32>
    %76 = vector.multi_reduction <add>, %75, %cst_23 [1] : vector<8x8xf32> to vector<8xf32>
    %77 = vector.shape_cast %76 : vector<8xf32> to vector<8x1xf32>
    %78 = tpu.reciprocal %77 {approx = true} : vector<8x1xf32> -> vector<8x1xf32>
    %79 = vector.broadcast %78 : vector<8x1xf32> to vector<8x8xf32>
    %80 = arith.mulf %75, %79 : vector<8x8xf32>
    %cst_24 = arith.constant dense<0.000000e+00> : vector<8x16xf32>
    %81 = tpu.matmul %80, %66, %cst_24 {dimension_numbers = #tpu.dot_dimension_numbers<[1], [0], [0], [1], [0, 0, 1, 1], [], []>} : vector<8x8xf32>, vector<8x16xf32>, vector<8x16xf32> -> vector<8x16xf32>
    %82 = tpu.concatenate %63, %81 in 1 : vector<8x16xf32>, vector<8x16xf32> -> vector<8x32xf32>
    %83 = tpu.concatenate %45, %82 in 0 : vector<8x32xf32>, vector<8x32xf32> -> vector<16x32xf32>
    %c0_25 = arith.constant 0 : index
    %c0_26 = arith.constant 0 : index
    %84 = vector.load %arg3[%c0_25, %c0_26] : memref<32x32xf32, #tpu.memory_space<vmem>>, vector<32x32xf32>
    %cst_27 = arith.constant dense<0.000000e+00> : vector<16x32xf32>
    %85 = tpu.matmul %83, %84, %cst_27 {dimension_numbers = #tpu.dot_dimension_numbers<[1], [0], [0], [1], [0, 0, 1, 1], [], []>} : vector<16x32xf32>, vector<32x32xf32>, vector<16x32xf32> -> vector<16x32xf32>
    %c0_28 = arith.constant 0 : index
    %c0_29 = arith.constant 0 : index
    %86 = vector.load %arg4[%c0_28, %c0_29] : memref<1x32xf32, #tpu.memory_space<vmem>>, vector<1x32xf32>
    %87 = vector.broadcast %86 : vector<1x32xf32> to vector<16x32xf32>
    %88 = arith.addf %85, %87 : vector<16x32xf32>
    %89 = arith.addf %0, %88 : vector<16x32xf32>
    %c0_30 = arith.constant 0 : index
    %c0_31 = arith.constant 0 : index
    %90 = vector.load %arg5[%c0_30, %c0_31] : memref<1x32xf32, #tpu.memory_space<vmem>>, vector<1x32xf32>
    %c0_32 = arith.constant 0 : index
    %c0_33 = arith.constant 0 : index
    %91 = vector.load %arg6[%c0_32, %c0_33] : memref<1x32xf32, #tpu.memory_space<vmem>>, vector<1x32xf32>
    %cst_34 = arith.constant dense<0.000000e+00> : vector<16xf32>
    %92 = vector.multi_reduction <add>, %89, %cst_34 [1] : vector<16x32xf32> to vector<16xf32>
    %93 = vector.shape_cast %92 : vector<16xf32> to vector<16x1xf32>
    %cst_35 = arith.constant 3.200000e+01 : f32
    %94 = vector.broadcast %cst_35 : f32 to vector<16x1xf32>
    %95 = arith.divf %93, %94 : vector<16x1xf32>
    %96 = vector.broadcast %95 : vector<16x1xf32> to vector<16x32xf32>
    %97 = arith.subf %89, %96 : vector<16x32xf32>
    %98 = arith.mulf %97, %97 : vector<16x32xf32>
    %cst_36 = arith.constant dense<0.000000e+00> : vector<16xf32>
    %99 = vector.multi_reduction <add>, %98, %cst_36 [1] : vector<16x32xf32> to vector<16xf32>
    %100 = vector.shape_cast %99 : vector<16xf32> to vector<16x1xf32>
    %cst_37 = arith.constant 3.200000e+01 : f32
    %101 = vector.broadcast %cst_37 : f32 to vector<16x1xf32>
    %102 = arith.divf %100, %101 : vector<16x1xf32>
    %103 = vector.broadcast %95 : vector<16x1xf32> to vector<16x32xf32>
    %104 = arith.subf %89, %103 : vector<16x32xf32>
    %cst_38 = arith.constant 9.99999974E-6 : f32
    %105 = vector.broadcast %cst_38 : f32 to vector<16x1xf32>
    %106 = arith.addf %102, %105 : vector<16x1xf32>
    %107 = math.rsqrt %106 : vector<16x1xf32>
    %108 = vector.broadcast %107 : vector<16x1xf32> to vector<16x32xf32>
    %109 = arith.mulf %104, %108 : vector<16x32xf32>
    %110 = vector.broadcast %90 : vector<1x32xf32> to vector<16x32xf32>
    %111 = arith.mulf %109, %110 : vector<16x32xf32>
    %112 = vector.broadcast %91 : vector<1x32xf32> to vector<16x32xf32>
    %113 = arith.addf %111, %112 : vector<16x32xf32>
    %c0_39 = arith.constant 0 : index
    %c0_40 = arith.constant 0 : index
    %114 = vector.load %arg7[%c0_39, %c0_40] : memref<32x64xf32, #tpu.memory_space<vmem>>, vector<32x64xf32>
    %cst_41 = arith.constant dense<0.000000e+00> : vector<16x64xf32>
    %115 = tpu.matmul %113, %114, %cst_41 {dimension_numbers = #tpu.dot_dimension_numbers<[1], [0], [0], [1], [0, 0, 1, 1], [], []>} : vector<16x32xf32>, vector<32x64xf32>, vector<16x64xf32> -> vector<16x64xf32>
    %c0_42 = arith.constant 0 : index
    %c0_43 = arith.constant 0 : index
    %116 = vector.load %arg8[%c0_42, %c0_43] : memref<1x64xf32, #tpu.memory_space<vmem>>, vector<1x64xf32>
    %117 = vector.broadcast %116 : vector<1x64xf32> to vector<16x64xf32>
    %118 = arith.addf %115, %117 : vector<16x64xf32>
    %cst_44 = arith.constant 0.000000e+00 : f32
    %119 = vector.broadcast %cst_44 : f32 to vector<16x64xf32>
    %120 = arith.maximumf %118, %119 : vector<16x64xf32>
    %c0_45 = arith.constant 0 : index
    %c0_46 = arith.constant 0 : index
    %121 = vector.load %arg9[%c0_45, %c0_46] : memref<64x32xf32, #tpu.memory_space<vmem>>, vector<64x32xf32>
    %cst_47 = arith.constant dense<0.000000e+00> : vector<16x32xf32>
    %122 = tpu.matmul %120, %121, %cst_47 {dimension_numbers = #tpu.dot_dimension_numbers<[1], [0], [0], [1], [0, 0, 1, 1], [], []>} : vector<16x64xf32>, vector<64x32xf32>, vector<16x32xf32> -> vector<16x32xf32>
    %c0_48 = arith.constant 0 : index
    %c0_49 = arith.constant 0 : index
    %123 = vector.load %arg10[%c0_48, %c0_49] : memref<1x32xf32, #tpu.memory_space<vmem>>, vector<1x32xf32>
    %124 = vector.broadcast %123 : vector<1x32xf32> to vector<16x32xf32>
    %125 = arith.addf %122, %124 : vector<16x32xf32>
    %126 = arith.addf %113, %125 : vector<16x32xf32>
    %c0_50 = arith.constant 0 : index
    %c0_51 = arith.constant 0 : index
    %127 = vector.load %arg11[%c0_50, %c0_51] : memref<1x32xf32, #tpu.memory_space<vmem>>, vector<1x32xf32>
    %c0_52 = arith.constant 0 : index
    %c0_53 = arith.constant 0 : index
    %128 = vector.load %arg12[%c0_52, %c0_53] : memref<1x32xf32, #tpu.memory_space<vmem>>, vector<1x32xf32>
    %cst_54 = arith.constant dense<0.000000e+00> : vector<16xf32>
    %129 = vector.multi_reduction <add>, %126, %cst_54 [1] : vector<16x32xf32> to vector<16xf32>
    %130 = vector.shape_cast %129 : vector<16xf32> to vector<16x1xf32>
    %cst_55 = arith.constant 3.200000e+01 : f32
    %131 = vector.broadcast %cst_55 : f32 to vector<16x1xf32>
    %132 = arith.divf %130, %131 : vector<16x1xf32>
    %133 = vector.broadcast %132 : vector<16x1xf32> to vector<16x32xf32>
    %134 = arith.subf %126, %133 : vector<16x32xf32>
    %135 = arith.mulf %134, %134 : vector<16x32xf32>
    %cst_56 = arith.constant dense<0.000000e+00> : vector<16xf32>
    %136 = vector.multi_reduction <add>, %135, %cst_56 [1] : vector<16x32xf32> to vector<16xf32>
    %137 = vector.shape_cast %136 : vector<16xf32> to vector<16x1xf32>
    %cst_57 = arith.constant 3.200000e+01 : f32
    %138 = vector.broadcast %cst_57 : f32 to vector<16x1xf32>
    %139 = arith.divf %137, %138 : vector<16x1xf32>
    %140 = vector.broadcast %132 : vector<16x1xf32> to vector<16x32xf32>
    %141 = arith.subf %126, %140 : vector<16x32xf32>
    %cst_58 = arith.constant 9.99999974E-6 : f32
    %142 = vector.broadcast %cst_58 : f32 to vector<16x1xf32>
    %143 = arith.addf %139, %142 : vector<16x1xf32>
    %144 = math.rsqrt %143 : vector<16x1xf32>
    %145 = vector.broadcast %144 : vector<16x1xf32> to vector<16x32xf32>
    %146 = arith.mulf %141, %145 : vector<16x32xf32>
    %147 = vector.broadcast %127 : vector<1x32xf32> to vector<16x32xf32>
    %148 = arith.mulf %146, %147 : vector<16x32xf32>
    %149 = vector.broadcast %128 : vector<1x32xf32> to vector<16x32xf32>
    %150 = arith.addf %148, %149 : vector<16x32xf32>
    %151 = vector.extract_strided_slice %150 {offsets = [0, 0], sizes = [1, 32], strides = [1, 1]} : vector<16x32xf32> to vector<1x32xf32>
    %152 = vector.extract_strided_slice %150 {offsets = [8, 0], sizes = [1, 32], strides = [1, 1]} : vector<16x32xf32> to vector<1x32xf32>
    %153 = tpu.concatenate %151, %152 in 0 : vector<1x32xf32>, vector<1x32xf32> -> vector<2x32xf32>
    %c0_59 = arith.constant 0 : index
    %c0_60 = arith.constant 0 : index
    %154 = vector.load %arg13[%c0_59, %c0_60] : memref<2x32xf32, #tpu.memory_space<vmem>>, vector<2x32xf32>
    tpu.vector_store %arg13[%c0_59, %c0_60], %153 {strides = array<i32>} : memref<2x32xf32, #tpu.memory_space<vmem>>, vector<2x32xf32>,
    return
  }
}

module attributes {stable_mosaic.version = 11 : i64} {
  func.func @_conv1_pool_kernel(%arg0: memref<288x100xf32, #tpu.memory_space<vmem>>, %arg1: memref<100x6xf32, #tpu.memory_space<vmem>>, %arg2: memref<1x6xf32, #tpu.memory_space<vmem>>, %arg3: memref<72x6xf32, #tpu.memory_space<vmem>>) attributes {dimension_semantics = [], scalar_prefetch = 0 : i64, scratch_operands = 0 : i64, tpu.core_type = #tpu.core_type<tc>} {
    %c0 = arith.constant 0 : index
    %c0_0 = arith.constant 0 : index
    %0 = vector.load %arg0[%c0, %c0_0] : memref<288x100xf32, #tpu.memory_space<vmem>>, vector<288x100xf32>
    %c0_1 = arith.constant 0 : index
    %c0_2 = arith.constant 0 : index
    %1 = vector.load %arg1[%c0_1, %c0_2] : memref<100x6xf32, #tpu.memory_space<vmem>>, vector<100x6xf32>
    %cst = arith.constant dense<0.000000e+00> : vector<288x6xf32>
    %2 = tpu.matmul %0, %1, %cst {dimension_numbers = #tpu.dot_dimension_numbers<[1], [0], [0], [1], [0, 0, 1, 1], [], []>} : vector<288x100xf32>, vector<100x6xf32>, vector<288x6xf32> -> vector<288x6xf32>
    %c0_3 = arith.constant 0 : index
    %c0_4 = arith.constant 0 : index
    %3 = vector.load %arg2[%c0_3, %c0_4] : memref<1x6xf32, #tpu.memory_space<vmem>>, vector<1x6xf32>
    %4 = vector.broadcast %3 : vector<1x6xf32> to vector<288x6xf32>
    %5 = arith.addf %2, %4 : vector<288x6xf32>
    %cst_5 = arith.constant 0.000000e+00 : f32
    %6 = vector.broadcast %cst_5 : f32 to vector<288x6xf32>
    %7 = arith.maximumf %5, %6 : vector<288x6xf32>
    %8 = vector.extract_strided_slice %7 {offsets = [0, 0], sizes = [72, 6], strides = [1, 1]} : vector<288x6xf32> to vector<72x6xf32>
    %9 = vector.extract_strided_slice %7 {offsets = [72, 0], sizes = [72, 6], strides = [1, 1]} : vector<288x6xf32> to vector<72x6xf32>
    %10 = arith.maximumf %8, %9 : vector<72x6xf32>
    %11 = vector.extract_strided_slice %7 {offsets = [144, 0], sizes = [72, 6], strides = [1, 1]} : vector<288x6xf32> to vector<72x6xf32>
    %12 = vector.extract_strided_slice %7 {offsets = [216, 0], sizes = [72, 6], strides = [1, 1]} : vector<288x6xf32> to vector<72x6xf32>
    %13 = arith.maximumf %11, %12 : vector<72x6xf32>
    %14 = arith.maximumf %10, %13 : vector<72x6xf32>
    %c0_6 = arith.constant 0 : index
    %c0_7 = arith.constant 0 : index
    %15 = vector.load %arg3[%c0_6, %c0_7] : memref<72x6xf32, #tpu.memory_space<vmem>>, vector<72x6xf32>
    tpu.vector_store %arg3[%c0_6, %c0_7], %14 {strides = array<i32>} : memref<72x6xf32, #tpu.memory_space<vmem>>, vector<72x6xf32>,
    return
  }
}

module attributes {stable_mosaic.version = 11 : i64} {
  func.func @_conv2_fc_kernel(%arg0: memref<8x150xf32, #tpu.memory_space<vmem>>, %arg1: memref<150x16xf32, #tpu.memory_space<vmem>>, %arg2: memref<1x16xf32, #tpu.memory_space<vmem>>, %arg3: memref<16x120xf32, #tpu.memory_space<vmem>>, %arg4: memref<1x120xf32, #tpu.memory_space<vmem>>, %arg5: memref<120x84xf32, #tpu.memory_space<vmem>>, %arg6: memref<1x84xf32, #tpu.memory_space<vmem>>, %arg7: memref<84x768xf32, #tpu.memory_space<vmem>>, %arg8: memref<1x768xf32, #tpu.memory_space<vmem>>, %arg9: memref<2x768xf32, #tpu.memory_space<vmem>>) attributes {dimension_semantics = [], scalar_prefetch = 0 : i64, scratch_operands = 0 : i64, tpu.core_type = #tpu.core_type<tc>} {
    %c0 = arith.constant 0 : index
    %c0_0 = arith.constant 0 : index
    %0 = vector.load %arg0[%c0, %c0_0] : memref<8x150xf32, #tpu.memory_space<vmem>>, vector<8x150xf32>
    %c0_1 = arith.constant 0 : index
    %c0_2 = arith.constant 0 : index
    %1 = vector.load %arg1[%c0_1, %c0_2] : memref<150x16xf32, #tpu.memory_space<vmem>>, vector<150x16xf32>
    %cst = arith.constant dense<0.000000e+00> : vector<8x16xf32>
    %2 = tpu.matmul %0, %1, %cst {dimension_numbers = #tpu.dot_dimension_numbers<[1], [0], [0], [1], [0, 0, 1, 1], [], []>} : vector<8x150xf32>, vector<150x16xf32>, vector<8x16xf32> -> vector<8x16xf32>
    %c0_3 = arith.constant 0 : index
    %c0_4 = arith.constant 0 : index
    %3 = vector.load %arg2[%c0_3, %c0_4] : memref<1x16xf32, #tpu.memory_space<vmem>>, vector<1x16xf32>
    %4 = vector.broadcast %3 : vector<1x16xf32> to vector<8x16xf32>
    %5 = arith.addf %2, %4 : vector<8x16xf32>
    %cst_5 = arith.constant 0.000000e+00 : f32
    %6 = vector.broadcast %cst_5 : f32 to vector<8x16xf32>
    %7 = arith.maximumf %5, %6 : vector<8x16xf32>
    %8 = vector.extract_strided_slice %7 {offsets = [0, 0], sizes = [2, 16], strides = [1, 1]} : vector<8x16xf32> to vector<2x16xf32>
    %9 = vector.extract_strided_slice %7 {offsets = [2, 0], sizes = [2, 16], strides = [1, 1]} : vector<8x16xf32> to vector<2x16xf32>
    %10 = arith.maximumf %8, %9 : vector<2x16xf32>
    %11 = vector.extract_strided_slice %7 {offsets = [4, 0], sizes = [2, 16], strides = [1, 1]} : vector<8x16xf32> to vector<2x16xf32>
    %12 = vector.extract_strided_slice %7 {offsets = [6, 0], sizes = [2, 16], strides = [1, 1]} : vector<8x16xf32> to vector<2x16xf32>
    %13 = arith.maximumf %11, %12 : vector<2x16xf32>
    %14 = arith.maximumf %10, %13 : vector<2x16xf32>
    %c0_6 = arith.constant 0 : index
    %c0_7 = arith.constant 0 : index
    %15 = vector.load %arg3[%c0_6, %c0_7] : memref<16x120xf32, #tpu.memory_space<vmem>>, vector<16x120xf32>
    %cst_8 = arith.constant dense<0.000000e+00> : vector<2x120xf32>
    %16 = tpu.matmul %14, %15, %cst_8 {dimension_numbers = #tpu.dot_dimension_numbers<[1], [0], [0], [1], [0, 0, 1, 1], [], []>} : vector<2x16xf32>, vector<16x120xf32>, vector<2x120xf32> -> vector<2x120xf32>
    %c0_9 = arith.constant 0 : index
    %c0_10 = arith.constant 0 : index
    %17 = vector.load %arg4[%c0_9, %c0_10] : memref<1x120xf32, #tpu.memory_space<vmem>>, vector<1x120xf32>
    %18 = vector.broadcast %17 : vector<1x120xf32> to vector<2x120xf32>
    %19 = arith.addf %16, %18 : vector<2x120xf32>
    %cst_11 = arith.constant 0.000000e+00 : f32
    %20 = vector.broadcast %cst_11 : f32 to vector<2x120xf32>
    %21 = arith.maximumf %19, %20 : vector<2x120xf32>
    %c0_12 = arith.constant 0 : index
    %c0_13 = arith.constant 0 : index
    %22 = vector.load %arg5[%c0_12, %c0_13] : memref<120x84xf32, #tpu.memory_space<vmem>>, vector<120x84xf32>
    %cst_14 = arith.constant dense<0.000000e+00> : vector<2x84xf32>
    %23 = tpu.matmul %21, %22, %cst_14 {dimension_numbers = #tpu.dot_dimension_numbers<[1], [0], [0], [1], [0, 0, 1, 1], [], []>} : vector<2x120xf32>, vector<120x84xf32>, vector<2x84xf32> -> vector<2x84xf32>
    %c0_15 = arith.constant 0 : index
    %c0_16 = arith.constant 0 : index
    %24 = vector.load %arg6[%c0_15, %c0_16] : memref<1x84xf32, #tpu.memory_space<vmem>>, vector<1x84xf32>
    %25 = vector.broadcast %24 : vector<1x84xf32> to vector<2x84xf32>
    %26 = arith.addf %23, %25 : vector<2x84xf32>
    %cst_17 = arith.constant 0.000000e+00 : f32
    %27 = vector.broadcast %cst_17 : f32 to vector<2x84xf32>
    %28 = arith.maximumf %26, %27 : vector<2x84xf32>
    %c0_18 = arith.constant 0 : index
    %c0_19 = arith.constant 0 : index
    %29 = vector.load %arg7[%c0_18, %c0_19] : memref<84x768xf32, #tpu.memory_space<vmem>>, vector<84x768xf32>
    %cst_20 = arith.constant dense<0.000000e+00> : vector<2x768xf32>
    %30 = tpu.matmul %28, %29, %cst_20 {dimension_numbers = #tpu.dot_dimension_numbers<[1], [0], [0], [1], [0, 0, 1, 1], [], []>} : vector<2x84xf32>, vector<84x768xf32>, vector<2x768xf32> -> vector<2x768xf32>
    %c0_21 = arith.constant 0 : index
    %c0_22 = arith.constant 0 : index
    %31 = vector.load %arg8[%c0_21, %c0_22] : memref<1x768xf32, #tpu.memory_space<vmem>>, vector<1x768xf32>
    %32 = vector.broadcast %31 : vector<1x768xf32> to vector<2x768xf32>
    %33 = arith.addf %30, %32 : vector<2x768xf32>
    %c0_23 = arith.constant 0 : index
    %c0_24 = arith.constant 0 : index
    %34 = vector.load %arg9[%c0_23, %c0_24] : memref<2x768xf32, #tpu.memory_space<vmem>>, vector<2x768xf32>
    tpu.vector_store %arg9[%c0_23, %c0_24], %33 {strides = array<i32>} : memref<2x768xf32, #tpu.memory_space<vmem>>, vector<2x768xf32>,
    return
  }
}

module attributes {stable_mosaic.version = 11 : i64} {
  func.func @_head_kernel(%arg0: memref<2x32xf32, #tpu.memory_space<vmem>>, %arg1: memref<2x768xf32, #tpu.memory_space<vmem>>, %arg2: memref<800x512xbf16, #tpu.memory_space<vmem>>, %arg3: memref<1x512xf32, #tpu.memory_space<vmem>>, %arg4: memref<1x512xf32, #tpu.memory_space<vmem>>, %arg5: memref<800x2xf32, #tpu.memory_space<vmem>>, %arg6: memref<1x2xf32, #tpu.memory_space<vmem>>, %arg7: memref<2x2xf32, #tpu.memory_space<vmem>>) attributes {dimension_semantics = [], scalar_prefetch = 0 : i64, scratch_operands = 0 : i64, tpu.core_type = #tpu.core_type<tc>} {
    %c0 = arith.constant 0 : index
    %c0_0 = arith.constant 0 : index
    %0 = vector.load %arg0[%c0, %c0_0] : memref<2x32xf32, #tpu.memory_space<vmem>>, vector<2x32xf32>
    %c0_1 = arith.constant 0 : index
    %c0_2 = arith.constant 0 : index
    %1 = vector.load %arg1[%c0_1, %c0_2] : memref<2x768xf32, #tpu.memory_space<vmem>>, vector<2x768xf32>
    %2 = tpu.concatenate %0, %1 in 1 : vector<2x32xf32>, vector<2x768xf32> -> vector<2x800xf32>
    %3 = arith.truncf %2 : vector<2x800xf32> to vector<2x800xbf16>
    %c0_3 = arith.constant 0 : index
    %c0_4 = arith.constant 0 : index
    %4 = vector.load %arg2[%c0_3, %c0_4] : memref<800x512xbf16, #tpu.memory_space<vmem>>, vector<800x512xbf16>
    %cst = arith.constant dense<0.000000e+00> : vector<2x512xf32>
    %5 = tpu.matmul %3, %4, %cst {dimension_numbers = #tpu.dot_dimension_numbers<[1], [0], [0], [1], [0, 0, 1, 1], [], []>} : vector<2x800xbf16>, vector<800x512xbf16>, vector<2x512xf32> -> vector<2x512xf32>
    %c0_5 = arith.constant 0 : index
    %c0_6 = arith.constant 0 : index
    %6 = vector.load %arg3[%c0_5, %c0_6] : memref<1x512xf32, #tpu.memory_space<vmem>>, vector<1x512xf32>
    %7 = vector.broadcast %6 : vector<1x512xf32> to vector<2x512xf32>
    %8 = arith.addf %5, %7 : vector<2x512xf32>
    %9 = math.tanh %8 : vector<2x512xf32>
    %c0_7 = arith.constant 0 : index
    %c0_8 = arith.constant 0 : index
    %10 = vector.load %arg4[%c0_7, %c0_8] : memref<1x512xf32, #tpu.memory_space<vmem>>, vector<1x512xf32>
    %11 = vector.broadcast %10 : vector<1x512xf32> to vector<2x512xf32>
    %12 = arith.mulf %9, %11 : vector<2x512xf32>
    %cst_9 = arith.constant dense<0.000000e+00> : vector<2xf32>
    %13 = vector.multi_reduction <add>, %12, %cst_9 [1] : vector<2x512xf32> to vector<2xf32>
    %14 = vector.shape_cast %13 : vector<2xf32> to vector<2x1xf32>
    %15 = arith.subf %14, %14 : vector<2x1xf32>
    %16 = math.exp %15 : vector<2x1xf32>
    %cst_10 = arith.constant dense<0.000000e+00> : vector<2xf32>
    %17 = vector.multi_reduction <add>, %16, %cst_10 [1] : vector<2x1xf32> to vector<2xf32>
    %18 = vector.shape_cast %17 : vector<2xf32> to vector<2x1xf32>
    %19 = arith.divf %16, %18 : vector<2x1xf32>
    %20 = vector.broadcast %19 : vector<2x1xf32> to vector<2x800xf32>
    %21 = arith.mulf %20, %2 : vector<2x800xf32>
    %c0_11 = arith.constant 0 : index
    %c0_12 = arith.constant 0 : index
    %22 = vector.load %arg5[%c0_11, %c0_12] : memref<800x2xf32, #tpu.memory_space<vmem>>, vector<800x2xf32>
    %cst_13 = arith.constant dense<0.000000e+00> : vector<2x2xf32>
    %23 = tpu.matmul %21, %22, %cst_13 {dimension_numbers = #tpu.dot_dimension_numbers<[1], [0], [0], [1], [0, 0, 1, 1], [], []>} : vector<2x800xf32>, vector<800x2xf32>, vector<2x2xf32> -> vector<2x2xf32>
    %c0_14 = arith.constant 0 : index
    %c0_15 = arith.constant 0 : index
    %24 = vector.load %arg6[%c0_14, %c0_15] : memref<1x2xf32, #tpu.memory_space<vmem>>, vector<1x2xf32>
    %25 = vector.broadcast %24 : vector<1x2xf32> to vector<2x2xf32>
    %26 = arith.addf %23, %25 : vector<2x2xf32>
    %c0_16 = arith.constant 0 : index
    %c0_17 = arith.constant 0 : index
    %27 = vector.load %arg7[%c0_16, %c0_17] : memref<2x2xf32, #tpu.memory_space<vmem>>, vector<2x2xf32>
    tpu.vector_store %arg7[%c0_16, %c0_17], %26 {strides = array<i32>} : memref<2x2xf32, #tpu.memory_space<vmem>>, vector<2x2xf32>,
    return
  }
}

</mosaic_0001>

<bundles_post_ra>
// kernel: bd_transformer_lenet.5
= control target key start
LH: loop header
LB: loop body
LE: loop exit
PB: predicated region body
PF: predicated region fallthrough
CT: control target
= control target key end

     0   :  { %vm70_vm0 = vcmask 818176   ;;  %vm179_vm1 = vcmask 1043456   ;;  %vm491_vm2 = vcmask 48128   ;;  %s1033_s1 = inlined_call_operand.vmem [shape: f32[100,6], index: 1, kind: input, shape index: {}]   ;;  %s1034_s0 = inlined_call_operand.vmem [shape: f32[288,100], index: 0, kind: input, shape index: {}]   ;;  %s1035_s2 = inlined_call_operand.vmem [shape: f32[1,6], index: 2, kind: input, shape index: {}]   ;;  %s1036_s3 = inlined_call_operand.vmem [shape: f32[72,6], index: 3, kind: output, shape index: {}]  }
   0x1   :  { %v50_v0 = vld [vmem:[%s1033_s1] sm:$0xff]  ;;  %v51_v1 = vld [vmem:[%s1033_s1 + $0x8] sm:$0xff]  ;;  %v52_v2 = vld [vmem:[%s1033_s1 + $0x10] sm:$0xff] }
   0x2   :  { %v672_v3 = vpack.c.bf16 %v51_v1, %v50_v0  ;;  %v53_v4 = vld [vmem:[%s1033_s1 + $0x18] sm:$0xff]  ;;  %v54_v6 = vld [vmem:[%s1033_s1 + $0x20] sm:$0xff]  ;;  %v55_v7 = vld [vmem:[%s1033_s1 + $0x28] sm:$0xff] }
   0x3   :  { %v676_v5 = vpack.c.bf16 %v53_v4, %v52_v2  ;;  %v14_v8 = vld [vmem:[%s1034_s0] sm:$0xff]  ;;  %v32_v9 = vld [vmem:[%s1034_s0 + $0x90] sm:$0xff]  ;;  %v680_v10 = vpack.c.bf16 %v55_v7, %v54_v6  ;;  %v57_v12 = vld [vmem:[%s1033_s1 + $0x38] sm:$0xff] }
   0x4   :  { %673 = vmatprep.subr.bf16.mxu0 %v672_v3  ;;  %696 = vmatprep.subr.bf16.mxu1 %v672_v3  ;;  %v56_v11 = vld [vmem:[%s1033_s1 + $0x30] sm:$0xff]  ;;  %v58_v14 = vld [vmem:[%s1033_s1 + $0x40] sm:$0xff]  ;;  %v59_v15 = vld [vmem:[%s1033_s1 + $0x48] sm:$0xff] }
   0x5   :  { %675 = vmatpush3.bf16.msra.mxu0 %v672_v3  ;;  %703 = vmatpush3.bf16.msra.mxu1 %v672_v3  ;;  %v684_v13 = vpack.c.bf16 %v57_v12, %v56_v11  ;;  %v688_v16 = vpack.c.bf16 %v59_v15, %v58_v14  ;;  %v60_v17 = vld [vmem:[%s1033_s1 + $0x50] sm:$0xff]  ;;  %v61_v18 = vld [vmem:[%s1033_s1 + $0x58] sm:$0xff]  ;;  %v62_v20 = vld [vmem:[%s1033_s1 + $0x60] sm:$0xf] }
   0x6   :  { %677 = vmatprep.subr.bf16.mxu0 %v676_v5  ;;  %697 = vmatprep.subr.bf16.mxu1 %v676_v5  ;;  %v692_v19 = vpack.c.bf16 %v61_v18, %v60_v17  ;;  %v15_v21 = vld [vmem:[%s1034_s0 + $0x8] sm:$0xff]  ;;  %v33_v22 = vld [vmem:[%s1034_s0 + $0x98] sm:$0xff]  ;;  %v16_v23 = vld [vmem:[%s1034_s0 + $0x10] sm:$0xff] }
   0x7   :  { %618 = vmatprep.mubr.msk.f32.mxu0 %vm70_vm0, %v14_v8  ;;  %645 = vmatprep.mubr.msk.f32.mxu1 %vm70_vm0, %v32_v9  ;;  %v34_v24 = vld [vmem:[%s1034_s0 + $0xa0] sm:$0xff]  ;;  %v17_v25 = vld [vmem:[%s1034_s0 + $0x18] sm:$0xff]  ;;  %v35_v26 = vld [vmem:[%s1034_s0 + $0xa8] sm:$0xff] }
   0x8   :  { %v18_v27 = vld [vmem:[%s1034_s0 + $0x20] sm:$0xff]  ;;  %v36_v28 = vld [vmem:[%s1034_s0 + $0xb0] sm:$0xff]  ;;  %v19_v29 = vld [vmem:[%s1034_s0 + $0x28] sm:$0xff] }
   0x9   :  { %679 = vmatpush3.bf16.msra.mxu0 %v676_v5  ;;  %704 = vmatpush3.bf16.msra.mxu1 %v676_v5  ;;  %v37_v30 = vld [vmem:[%s1034_s0 + $0xb8] sm:$0xff]  ;;  %v20_v31 = vld [vmem:[%s1034_s0 + $0x30] sm:$0xff]  ;;  %v38_v32 = vld [vmem:[%s1034_s0 + $0xc0] sm:$0xff] }
   0xa   :  { %681 = vmatprep.subr.bf16.mxu0 %v680_v10  ;;  %698 = vmatprep.subr.bf16.mxu1 %v680_v10  ;;  %v21_v33 = vld [vmem:[%s1034_s0 + $0x38] sm:$0xff]  ;;  %v39_v34 = vld [vmem:[%s1034_s0 + $0xc8] sm:$0xff]  ;;  %v22_v35 = vld [vmem:[%s1034_s0 + $0x40] sm:$0xff] }
   0xb   :  { %v40_v36 = vld [vmem:[%s1034_s0 + $0xd0] sm:$0xff]  ;;  %v23_v37 = vld [vmem:[%s1034_s0 + $0x48] sm:$0xff]  ;;  %v41_v38 = vld [vmem:[%s1034_s0 + $0xd8] sm:$0xff] }
   0xc   :  { %v24_v39 = vld [vmem:[%s1034_s0 + $0x50] sm:$0xff]  ;;  %v42_v40 = vld [vmem:[%s1034_s0 + $0xe0] sm:$0xff]  ;;  %v25_v41 = vld [vmem:[%s1034_s0 + $0x58] sm:$0xff] }
   0xd   :  { %683 = vmatpush3.bf16.msra.mxu0 %v680_v10  ;;  %705 = vmatpush3.bf16.msra.mxu1 %v680_v10  ;;  %v43_v42 = vld [vmem:[%s1034_s0 + $0xe8] sm:$0xff]  ;;  %v26_v43 = vld [vmem:[%s1034_s0 + $0x60] sm:$0xff]  ;;  %v44_v44 = vld [vmem:[%s1034_s0 + $0xf0] sm:$0xff] }
   0xe   :  { %685 = vmatprep.subr.bf16.mxu0 %v684_v13  ;;  %699 = vmatprep.subr.bf16.mxu1 %v684_v13  ;;  %v27_v45 = vld [vmem:[%s1034_s0 + $0x68] sm:$0xff]  ;;  %v45_v46 = vld [vmem:[%s1034_s0 + $0xf8] sm:$0xff]  ;;  %v28_v47 = vld [vmem:[%s1034_s0 + $0x70] sm:$0xff] }
   0xf   :  { %v46_v48 = vld [vmem:[%s1034_s0 + $0x100] sm:$0xff]  ;;  %v29_v49 = vld [vmem:[%s1034_s0 + $0x78] sm:$0xff]  ;;  %v47_v50 = vld [vmem:[%s1034_s0 + $0x108] sm:$0xff] }
  0x10   :  { %v30_v51 = vld [vmem:[%s1034_s0 + $0x80] sm:$0xff]  ;;  %v48_v52 = vld [vmem:[%s1034_s0 + $0x110] sm:$0xff]  ;;  %v31_v53 = vld [vmem:[%s1034_s0 + $0x88] sm:$0xff] }
  0x11   :  { %687 = vmatpush3.bf16.msra.mxu0 %v684_v13  ;;  %706 = vmatpush3.bf16.msra.mxu1 %v684_v13  ;;  %v49_v54 = vld [vmem:[%s1034_s0 + $0x118] sm:$0xff]  ;;  %v916_v1 = vld [vmem:[%s1035_s2] ss:$0 sm:$0xff] }
  0x12   :  { %689 = vmatprep.subr.bf16.mxu0 %v688_v16  ;;  %700 = vmatprep.subr.bf16.mxu1 %v688_v16 }
  0x15   :  { %691 = vmatpush3.bf16.msra.mxu0 %v688_v16  ;;  %707 = vmatpush3.bf16.msra.mxu1 %v688_v16 }
  0x16   :  { %693 = vmatprep.subr.bf16.mxu0 %v692_v19  ;;  %701 = vmatprep.subr.bf16.mxu1 %v692_v19 }
  0x19   :  { %695 = vmatpush3.bf16.msra.mxu0 %v692_v19  ;;  %708 = vmatpush3.bf16.msra.mxu1 %v692_v19 }
  0x1a   :  { %616 = vmatprep.subr.msk.mxu0 %vm179_vm1, %v62_v20  ;;  %702 = vmatprep.subr.msk.mxu1 %vm179_vm1, %v62_v20 }
  0x1d   :  { %617 = vmatpush3.msk.msra.mxu0 %vm179_vm1, %v62_v20  ;;  %709 = vmatpush3.msk.msra.mxu1 %vm179_vm1, %v62_v20 }
  0x1e   :  { %619 = vmatmul.mubr.msk.f32.vlgmr.msra.gmra.mrb[0].mxu0 %vm70_vm0, %v15_v21  ;;  %646 = vmatmul.mubr.msk.f32.vlgmr.msra.gmra.mrb[0].mxu1 %vm70_vm0, %v33_v22 }
  0x1f   :  { %621 = vmatprep.mubr.msk.f32.mxu0 %vm70_vm0, %v16_v23  ;;  %648 = vmatprep.mubr.msk.f32.mxu1 %vm70_vm0, %v34_v24 }
  0x22   :  { %622 = vmatmul.mubr.msk.f32.gmra.mrb[2].mxu0 %vm70_vm0, %v17_v25  ;;  %649 = vmatmul.mubr.msk.f32.gmra.mrb[2].mxu1 %vm70_vm0, %v35_v26 }
  0x23   :  { %624 = vmatprep.mubr.msk.f32.mxu0 %vm70_vm0, %v18_v27  ;;  %651 = vmatprep.mubr.msk.f32.mxu1 %vm70_vm0, %v36_v28 }
  0x26   :  { %625 = vmatmul.mubr.msk.f32.gmra.mrb[4].mxu0 %vm70_vm0, %v19_v29  ;;  %652 = vmatmul.mubr.msk.f32.gmra.mrb[4].mxu1 %vm70_vm0, %v37_v30 }
  0x27   :  { %627 = vmatprep.mubr.msk.f32.mxu0 %vm70_vm0, %v20_v31  ;;  %654 = vmatprep.mubr.msk.f32.mxu1 %vm70_vm0, %v38_v32 }
  0x2a   :  { %628 = vmatmul.mubr.msk.f32.gmra.mrb[6].mxu0 %vm70_vm0, %v21_v33  ;;  %655 = vmatmul.mubr.msk.f32.gmra.mrb[6].mxu1 %vm70_vm0, %v39_v34 }
  0x2b   :  { %630 = vmatprep.mubr.msk.f32.mxu0 %vm70_vm0, %v22_v35  ;;  %657 = vmatprep.mubr.msk.f32.mxu1 %vm70_vm0, %v40_v36 }
  0x2e   :  { %631 = vmatmul.mubr.msk.f32.gmra.mrb[8].mxu0 %vm70_vm0, %v23_v37  ;;  %658 = vmatmul.mubr.msk.f32.gmra.mrb[8].mxu1 %vm70_vm0, %v41_v38 }
  0x2f   :  { %633 = vmatprep.mubr.msk.f32.mxu0 %vm70_vm0, %v24_v39  ;;  %660 = vmatprep.mubr.msk.f32.mxu1 %vm70_vm0, %v42_v40 }
  0x32   :  { %634 = vmatmul.mubr.msk.f32.gmra.mrb[10].mxu0 %vm70_vm0, %v25_v41  ;;  %661 = vmatmul.mubr.msk.f32.gmra.mrb[10].mxu1 %vm70_vm0, %v43_v42 }
  0x33   :  { %636 = vmatprep.mubr.msk.f32.mxu0 %vm70_vm0, %v26_v43  ;;  %663 = vmatprep.mubr.msk.f32.mxu1 %vm70_vm0, %v44_v44 }
  0x36   :  { %637 = vmatmul.mubr.msk.f32.gmra.mrb[12].mxu0 %vm70_vm0, %v27_v45  ;;  %664 = vmatmul.mubr.msk.f32.gmra.mrb[12].mxu1 %vm70_vm0, %v45_v46 }
  0x37   :  { %639 = vmatprep.mubr.msk.f32.mxu0 %vm70_vm0, %v28_v47  ;;  %666 = vmatprep.mubr.msk.f32.mxu1 %vm70_vm0, %v46_v48 }
  0x3a   :  { %640 = vmatmul.mubr.msk.f32.gmra.mrb[14].mxu0 %vm70_vm0, %v29_v49  ;;  %667 = vmatmul.mubr.msk.f32.gmra.mrb[14].mxu1 %vm70_vm0, %v47_v50 }
  0x3b   :  { %642 = vmatprep.mubr.msk.f32.mxu0 %vm70_vm0, %v30_v51  ;;  %669 = vmatprep.mubr.msk.f32.mxu1 %vm70_vm0, %v48_v52 }
  0x3e   :  { %643 = vmatmul.mubr.msk.f32.gmra.mrb[16].mxu0 %vm70_vm0, %v31_v53  ;;  %670 = vmatmul.mubr.msk.f32.gmra.mrb[16].mxu1 %vm70_vm0, %v49_v54 }
  0xf1   :  { %v620_v55 = vpop.f32.mrb[0].mxu0  ;;  %v647_v56 = vpop.f32.mrb[0].mxu1 }
  0xf2   :  { %v249_v57 = vpop.f32.mrb[1].mxu0  ;;  %v339_v58 = vpop.f32.mrb[1].mxu1  ;;  %v919_v4 = vadd.f32 %v620_v55, %v916_v1  ;;  %v922_v5 = vadd.f32 %v647_v56, %v916_v1 }
  0xf3   :  { %v250_v8 = vadd.f32 %v916_v1, %v249_v57  ;;  %v340_v9 = vadd.f32 %v916_v1, %v339_v58 }
  0xf4   :  { %v429_v17 = vmax.f32 %v919_v4, 0.0  ;;  %v447_v18 = vmax.f32 %v922_v5, 0.0 }
  0xf5   :  { %v623_v59 = vpop.f32.mrb[2].mxu0  ;;  %v650_v60 = vpop.f32.mrb[2].mxu1  ;;  %v428_v23 = vmax.f32 %v250_v8, 0.0  ;;  %v446_v24 = vmax.f32 %v340_v9, 0.0 }
  0xf6   :  { %v259_v61 = vpop.f32.mrb[3].mxu0  ;;  %v349_v62 = vpop.f32.mrb[3].mxu1  ;;  %v927_v12 = vadd.f32 %v623_v59, %v916_v1  ;;  %v930_v13 = vadd.f32 %v650_v60, %v916_v1 }
  0xf7   :  { %v260_v14 = vadd.f32 %v916_v1, %v259_v61  ;;  %v350_v15 = vadd.f32 %v916_v1, %v349_v62 }
  0xf8   :  { %v431_v29 = vmax.f32 %v927_v12, 0.0  ;;  %v449_v30 = vmax.f32 %v930_v13, 0.0 }
  0xf9   :  { %v626_v63 = vpop.f32.mrb[4].mxu0  ;;  %v653_v0 = vpop.f32.mrb[4].mxu1  ;;  %v430_v31 = vmax.f32 %v260_v14, 0.0  ;;  %v448_v33 = vmax.f32 %v350_v15, 0.0 }
  0xfa   :  { %v269_v2 = vpop.f32.mrb[5].mxu0  ;;  %v359_v3 = vpop.f32.mrb[5].mxu1  ;;  %v935_v16 = vadd.f32 %v626_v63, %v916_v1  ;;  %v940_v19 = vadd.f32 %v653_v0, %v916_v1 }
  0xfb   :  { %v943_v20 = vadd.f32 %v916_v1, %v269_v2  ;;  %v360_v32 = vadd.f32 %v916_v1, %v359_v3 }
  0xfc   :  { %v433_v34 = vmax.f32 %v935_v16, 0.0  ;;  %v451_v37 = vmax.f32 %v940_v19, 0.0 }
  0xfd   :  { %v629_v6 = vpop.f32.mrb[6].mxu0  ;;  %v656_v7 = vpop.f32.mrb[6].mxu1  ;;  %v432_v38 = vmax.f32 %v943_v20, 0.0  ;;  %v450_v49 = vmax.f32 %v360_v32, 0.0 }
  0xfe   :  { %v279_v10 = vpop.f32.mrb[7].mxu0  ;;  %v369_v11 = vpop.f32.mrb[7].mxu1  ;;  %v956_v39 = vadd.f32 %v629_v6, %v916_v1  ;;  %v964_v50 = vadd.f32 %v656_v7, %v916_v1 }
  0xff   :  { %v959_v40 = vadd.f32 %v916_v1, %v279_v10  ;;  %v370_v53 = vadd.f32 %v916_v1, %v369_v11 }
 0x100   :  { %v435_v57 = vmax.f32 %v956_v39, 0.0 }
 0x101   :  { %v632_v21 = vpop.f32.mrb[8].mxu0  ;;  %v659_v22 = vpop.f32.mrb[8].mxu1  ;;  %v434_v58 = vmax.f32 %v959_v40, 0.0  ;;  %v452_v10 = vmax.f32 %v370_v53, 0.0 }
 0x102   :  { %v295_v25 = vadd.f32 %v632_v21, %v916_v1  ;;  %v385_v26 = vadd.f32 %v659_v22, %v916_v1  ;;  %v289_v27 = vpop.f32.mrb[9].mxu0  ;;  %v947_v28 = vpop.f32.mrb[9].mxu1 }
 0x103   :  { %v290_v20 = vadd.f32 %v916_v1, %v289_v27  ;;  %v380_v40 = vadd.f32 %v916_v1, %v947_v28 }
 0x104   :  { %v437_v35 = vmax.f32 %v295_v25, 0.0  ;;  %v455_v36 = vmax.f32 %v385_v26, 0.0 }
 0x105   :  { %v635_v41 = vpop.f32.mrb[10].mxu0  ;;  %v662_v42 = vpop.f32.mrb[10].mxu1 }
 0x106   :  { %v464_v43 = vmax.f32 %v428_v23, %v437_v35  ;;  %v473_v44 = vmax.f32 %v446_v24, %v455_v36  ;;  %v305_v45 = vadd.f32 %v635_v41, %v916_v1  ;;  %v395_v46 = vadd.f32 %v662_v42, %v916_v1  ;;  %v299_v47 = vpop.f32.mrb[11].mxu0  ;;  %v389_v48 = vpop.f32.mrb[11].mxu1 }
 0x107   :  { %v300_v51 = vadd.f32 %v916_v1, %v299_v47  ;;  %v390_v52 = vadd.f32 %v916_v1, %v389_v48 }
 0x108   :  { %v482_v54 = vmax.f32 %v464_v43, %v473_v44  ;;  %v439_v55 = vmax.f32 %v305_v45, 0.0  ;;  %v457_v56 = vmax.f32 %v395_v46, 0.0  ;;  %v436_v44 = vmax.f32 %v290_v20, 0.0 }
 0x109   :  { %v438_v59 = vmax.f32 %v300_v51, 0.0  ;;  %v456_v60 = vmax.f32 %v390_v52, 0.0  ;;  %v638_v61 = vpop.f32.mrb[12].mxu0  ;;  %v665_v62 = vpop.f32.mrb[12].mxu1 }
 0x10a   :  { %492 = vst.msk [vmem:[%s1036_s3] sm:$0xff] %vm491_vm2, %v482_v54  ;;  %v466_v63 = vmax.f32 %v430_v31, %v439_v55  ;;  %v475_v0 = vmax.f32 %v448_v33, %v457_v56  ;;  %v315_v2 = vadd.f32 %v638_v61, %v916_v1  ;;  %v405_v3 = vadd.f32 %v665_v62, %v916_v1  ;;  %v309_v4 = vpop.f32.mrb[13].mxu0  ;;  %v399_v5 = vpop.f32.mrb[13].mxu1 }
 0x10b   :  { %v465_v6 = vmax.f32 %v429_v17, %v438_v59  ;;  %v474_v7 = vmax.f32 %v447_v18, %v456_v60  ;;  %v310_v8 = vadd.f32 %v916_v1, %v309_v4  ;;  %v400_v9 = vadd.f32 %v916_v1, %v399_v5 }
 0x10c   :  { %v484_v11 = vmax.f32 %v466_v63, %v475_v0  ;;  %v441_v14 = vmax.f32 %v315_v2, 0.0  ;;  %v459_v15 = vmax.f32 %v405_v3, 0.0  ;;  %v454_v56 = vmax.f32 %v380_v40, 0.0 }
 0x10d   :  { %v483_v21 = vmax.f32 %v465_v6, %v474_v7  ;;  %v440_v22 = vmax.f32 %v310_v8, 0.0  ;;  %v458_v23 = vmax.f32 %v400_v9, 0.0  ;;  %v641_v24 = vpop.f32.mrb[14].mxu0  ;;  %v668_v25 = vpop.f32.mrb[14].mxu1  ;;  %v453_v61 = vmax.f32 %v964_v50, 0.0 }
 0x10e   :  { %494 = vst.msk [vmem:[%s1036_s3 + $0x10] sm:$0xff] %vm491_vm2, %v484_v11  ;;  %v468_v17 = vmax.f32 %v432_v38, %v441_v14  ;;  %v477_v18 = vmax.f32 %v450_v49, %v459_v15  ;;  %v325_v26 = vadd.f32 %v641_v24, %v916_v1  ;;  %v415_v31 = vadd.f32 %v668_v25, %v916_v1  ;;  %v319_v32 = vpop.f32.mrb[15].mxu0  ;;  %v409_v33 = vpop.f32.mrb[15].mxu1 }
 0x10f   :  { %493 = vst.msk [vmem:[%s1036_s3 + $0x8] sm:$0xff] %vm491_vm2, %v483_v21  ;;  %v467_v27 = vmax.f32 %v431_v29, %v440_v22  ;;  %v476_v35 = vmax.f32 %v449_v30, %v458_v23  ;;  %v320_v36 = vadd.f32 %v916_v1, %v319_v32  ;;  %v410_v38 = vadd.f32 %v916_v1, %v409_v33 }
 0x110   :  { %v486_v41 = vmax.f32 %v468_v17, %v477_v18  ;;  %v443_v42 = vmax.f32 %v325_v26, 0.0  ;;  %v461_v43 = vmax.f32 %v415_v31, 0.0 }
 0x111   :  { %v485_v45 = vmax.f32 %v467_v27, %v476_v35  ;;  %v442_v46 = vmax.f32 %v320_v36, 0.0  ;;  %v460_v47 = vmax.f32 %v410_v38, 0.0  ;;  %v644_v48 = vpop.f32.mrb[16].mxu0  ;;  %v671_v12 = vpop.f32.mrb[16].mxu1 }
 0x112   :  { %496 = vst.msk [vmem:[%s1036_s3 + $0x20] sm:$0xff] %vm491_vm2, %v486_v41  ;;  %v470_v13 = vmax.f32 %v434_v58, %v443_v42  ;;  %v479_v29 = vmax.f32 %v452_v10, %v461_v43  ;;  %v335_v30 = vadd.f32 %v644_v48, %v916_v1  ;;  %v425_v28 = vadd.f32 %v671_v12, %v916_v1  ;;  %v329_v49 = vpop.f32.mrb[17].mxu0  ;;  %v419_v51 = vpop.f32.mrb[17].mxu1 }
 0x113   :  { %495 = vst.msk [vmem:[%s1036_s3 + $0x18] sm:$0xff] %vm491_vm2, %v485_v45  ;;  %v469_v52 = vmax.f32 %v433_v34, %v442_v46  ;;  %v478_v53 = vmax.f32 %v451_v37, %v460_v47  ;;  %v330_v54 = vadd.f32 %v916_v1, %v329_v49  ;;  %v420_v55 = vadd.f32 %v916_v1, %v419_v51 }
 0x114   :  { %v488_v58 = vmax.f32 %v470_v13, %v479_v29  ;;  %v445_v59 = vmax.f32 %v335_v30, 0.0  ;;  %v463_v60 = vmax.f32 %v425_v28, 0.0 }
 0x115   :  { %v487_v62 = vmax.f32 %v469_v52, %v478_v53  ;;  %v444_v63 = vmax.f32 %v330_v54, 0.0  ;;  %v462_v0 = vmax.f32 %v420_v55, 0.0 }
 0x116   :  { %498 = vst.msk [vmem:[%s1036_s3 + $0x30] sm:$0xff] %vm491_vm2, %v488_v58  ;;  %v472_v16 = vmax.f32 %v436_v44, %v445_v59  ;;  %v481_v19 = vmax.f32 %v454_v56, %v463_v60 }
 0x117   :  { %497 = vst.msk [vmem:[%s1036_s3 + $0x28] sm:$0xff] %vm491_vm2, %v487_v62  ;;  %v471_v1 = vmax.f32 %v435_v57, %v444_v63  ;;  %v480_v34 = vmax.f32 %v453_v61, %v462_v0 }
 0x118   :  { %v490_v37 = vmax.f32 %v472_v16, %v481_v19 }
 0x119   :  { %v489_v50 = vmax.f32 %v471_v1, %v480_v34 }
 0x11a   :  { %500 = vst.msk [vmem:[%s1036_s3 + $0x40] sm:$0xff] %vm491_vm2, %v490_v37 }
 0x11b   :  { %499 = vst.msk [vmem:[%s1036_s3 + $0x38] sm:$0xff] %vm491_vm2, %v489_v50 }

// kernel: bd_transformer_lenet.4
= control target key start
LH: loop header
LB: loop body
LE: loop exit
PB: predicated region body
PF: predicated region fallthrough
CT: control target
= control target key end

     0   :  { %18 = vsyncpa [#allocation3], 0  ;;  %s2105_s0 = inlined_call_operand.vmem [shape: f32[16,32], index: 0, kind: input, shape index: {}]   ;;  %s2106_s1 = inlined_call_operand.vmem [shape: f32[32,96], index: 1, kind: input, shape index: {}]   ;;  %s2107_s2 = inlined_call_operand.vmem [shape: f32[1,96], index: 2, kind: input, shape index: {}]   ;;  %s2108_s3 = inlined_call_operand.hbm [shape: f32[32,32], index: 3, kind: input, shape index: {}]   ;;  %s2109_s4 = inlined_call_operand.hbm [shape: f32[1,32], index: 4, kind: input, shape index: {}]   ;;  %s2110_s5 = inlined_call_operand.hbm [shape: f32[1,32], index: 5, kind: input, shape index: {}]   ;;  %s2111_s6 = inlined_call_operand.hbm [shape: f32[1,32], index: 6, kind: input, shape index: {}]   ;;  %s2112_s7 = inlined_call_operand.hbm [shape: f32[32,64], index: 7, kind: input, shape index: {}]   ;;  %s2113_s8 = inlined_call_operand.hbm [shape: f32[1,64], index: 8, kind: input, shape index: {}]   ;;  %s2114_s9 = inlined_call_operand.vmem [shape: f32[64,32], index: 9, kind: input, shape index: {}]   ;;  %s2115_s10 = inlined_call_operand.hbm [shape: f32[1,32], index: 10, kind: input, shape index: {}]   ;;  %s2116_s11 = inlined_call_operand.hbm [shape: f32[1,32], index: 11, kind: input, shape index: {}]   ;;  %s2117_s12 = inlined_call_operand.hbm [shape: f32[1,32], index: 12, kind: input, shape index: {}]   ;;  %s2118_s13 = inlined_call_operand.vmem [shape: f32[2,32], index: 13, kind: output, shape index: {}]  }
   0x1   :  { %19 = vsyncpa [#allocation5], 0 }
   0x2   :  { %20 = vsyncpa [#allocation8], 0 }
   0x3   :  { %21 = vsyncpa [#allocation11], 0 }
   0x4   :  { %22 = vsyncpa [#allocation14], 0  ;;  %s1768_s25 = smov [#allocation4]   ;;  %s1769_s27 = smov [#allocation7]  }
   0x5   :  { %s47_s26 = sshll.u32 %s1768_s25, 4  ;;  %s67_s28 = sshll.u32 %s1769_s27, 4  ;;  %s48_s26 = int_to_ptr.vmem [resolvable:$true] %s47_s26  ;;  %s68_s28 = int_to_ptr.vmem [resolvable:$true] %s67_s28 }
   0x6   :  { %s1560_s14 = scalar_lea.hbm %s2109_s4, 16 }
   0x7   :  { %p1561_p0 = scmp.ne.s32.totalorder %s2109_s4, %s1560_s14  ;;  %p1564_p1 = scmp.lt.u32.totalorder %s1560_s14, %s2109_s4 }
   0x9   :  { %p1566_p2 = pnand %p1564_p1, %p1561_p0 }
   0xb   :  { %1569 = shalt.err (!%p1566_p2)
}
   0xc   :  { %s1570_s19 = scalar_lea.vmem %s48_s26, 16  ;;  %s1574_s20 = scalar_lea.vmem %s48_s26, 32 }
   0xd   :  { %p1571_p3 = scmp.ne.s32.totalorder %s48_s26, %s1570_s19  ;;  %p1575_p4 = scmp.lt.s32.totalorder %s48_s26, %s48_s26 }
   0xe   :  { %p1576_p5 = scmp.lt.s32.totalorder %s1574_s20, %s1570_s19 }
  0x10   :  { %p1577_p6 = por %p1576_p5, %p1575_p4 }
  0x12   :  { %p1578_p7 = pnand %p1577_p6, %p1571_p3 }
  0x14   :  { %1581 = shalt.err (!%p1578_p7)
}
  0x15   :  { %50 = dma.hbm_to_vmem [thread:$0]  %s2109_s4, 16, %s48_s26, [#allocation5]  }
  0x16   :  { %s1582_s25 = scalar_lea.hbm %s2111_s6, 16 }
  0x17   :  { %p1583_p8 = scmp.ne.s32.totalorder %s2111_s6, %s1582_s25  ;;  %p1586_p9 = scmp.lt.u32.totalorder %s1582_s25, %s2111_s6 }
  0x19   :  { %p1588_p10 = pnand %p1586_p9, %p1583_p8 }
  0x1b   :  { %1591 = shalt.err (!%p1588_p10)
}
  0x1c   :  { %s1592_s15 = scalar_lea.vmem %s68_s28, 16  ;;  %s1596_s16 = scalar_lea.vmem %s68_s28, 32 }
  0x1d   :  { %p1593_p11 = scmp.ne.s32.totalorder %s68_s28, %s1592_s15  ;;  %p1597_p12 = scmp.lt.s32.totalorder %s68_s28, %s68_s28 }
  0x1e   :  { %p1598_p13 = scmp.lt.s32.totalorder %s1596_s16, %s1592_s15 }
  0x20   :  { %p1599_p0 = por %p1598_p13, %p1597_p12 }
  0x22   :  { %p1600_p1 = pnand %p1599_p0, %p1593_p11 }
  0x24   :  { %1603 = shalt.err (!%p1600_p1)
}
  0x25   :  { %70 = dma.hbm_to_vmem [thread:$0]  %s2111_s6, 16, %s68_s28, [#allocation8]  }
  0x26   :  { %s1770_s17 = smov [#allocation10]   ;;  %s1771_s19 = smov [#allocation13]  }
  0x27   :  { %s89_s18 = sshll.u32 %s1770_s17, 4  ;;  %s111_s20 = sshll.u32 %s1771_s19, 4  ;;  %s90_s18 = int_to_ptr.vmem [resolvable:$true] %s89_s18  ;;  %s112_s20 = int_to_ptr.vmem [resolvable:$true] %s111_s20 }
  0x28   :  { %s1604_s23 = scalar_lea.hbm %s2113_s8, 16 }
  0x29   :  { %p1605_p2 = scmp.ne.s32.totalorder %s2113_s8, %s1604_s23  ;;  %p1608_p3 = scmp.lt.u32.totalorder %s1604_s23, %s2113_s8 }
  0x2b   :  { %p1610_p4 = pnand %p1608_p3, %p1605_p2 }
  0x2d   :  { %1613 = shalt.err (!%p1610_p4)
}
  0x2e   :  { %s1614_s6 = scalar_lea.vmem %s90_s18, 16  ;;  %s1618_s28 = scalar_lea.vmem %s90_s18, 32 }
  0x2f   :  { %p1615_p5 = scmp.ne.s32.totalorder %s90_s18, %s1614_s6  ;;  %p1619_p6 = scmp.lt.s32.totalorder %s90_s18, %s90_s18 }
  0x30   :  { %p1620_p7 = scmp.lt.s32.totalorder %s1618_s28, %s1614_s6 }
  0x32   :  { %p1621_p8 = por %p1620_p7, %p1619_p6 }
  0x34   :  { %p1622_p9 = pnand %p1621_p8, %p1615_p5 }
  0x36   :  { %1625 = shalt.err (!%p1622_p9)
}
  0x37   :  { %92 = dma.hbm_to_vmem [thread:$0]  %s2113_s8, 16, %s90_s18, [#allocation11]  }
  0x38   :  { %s1626_s4 = scalar_lea.hbm %s2116_s11, 16 }
  0x39   :  { %p1627_p10 = scmp.ne.s32.totalorder %s2116_s11, %s1626_s4  ;;  %p1630_p11 = scmp.lt.u32.totalorder %s1626_s4, %s2116_s11 }
  0x3b   :  { %p1632_p12 = pnand %p1630_p11, %p1627_p10 }
  0x3d   :  { %1635 = shalt.err (!%p1632_p12)
}
  0x3e   :  { %s1636_s22 = scalar_lea.vmem %s112_s20, 16  ;;  %s1640_s23 = scalar_lea.vmem %s112_s20, 32 }
  0x3f   :  { %p1637_p13 = scmp.ne.s32.totalorder %s112_s20, %s1636_s22  ;;  %p1641_p0 = scmp.lt.s32.totalorder %s112_s20, %s112_s20 }
  0x40   :  { %p1642_p1 = scmp.lt.s32.totalorder %s1640_s23, %s1636_s22 }
  0x42   :  { %p1643_p2 = por %p1642_p1, %p1641_p0 }
  0x44   :  { %p1644_p3 = pnand %p1643_p2, %p1637_p13 }
  0x46   :  { %1647 = shalt.err (!%p1644_p3)
}
  0x47   :  { %114 = dma.hbm_to_vmem [thread:$0]  %s2116_s11, 16, %s112_s20, [#allocation14]  }
  0x48   :  { %s1772_s24 = smov [#allocation2]   ;;  %s1648_s6 = scalar_lea.hbm %s2108_s3, 512 }
  0x49   :  { %s34_s25 = sshll.u32 %s1772_s24, 4  ;;  %p1649_p4 = scmp.ne.s32.totalorder %s2108_s3, %s1648_s6  ;;  %s35_s25 = int_to_ptr.vmem [resolvable:$true] %s34_s25 }
  0x4a   :  { %p1652_p5 = scmp.lt.u32.totalorder %s1648_s6, %s2108_s3 }
  0x4c   :  { %p1654_p6 = pnand %p1652_p5, %p1649_p4 }
  0x4e   :  { %1657 = shalt.err (!%p1654_p6)
}
  0x4f   :  { %s1658_s16 = scalar_lea.vmem %s35_s25, 512  ;;  %p1663_p8 = scmp.lt.s32.totalorder %s35_s25, %s35_s25 }
  0x50   :  { %p1659_p7 = scmp.ne.s32.totalorder %s35_s25, %s1658_s16  ;;  %p1664_p9 = scmp.lt.s32.totalorder %s1658_s16, %s1658_s16 }
  0x52   :  { %p1665_p10 = por %p1664_p9, %p1663_p8 }
  0x54   :  { %p1666_p11 = pnand %p1665_p10, %p1659_p7 }
  0x56   :  { %1669 = shalt.err (!%p1666_p11)
}
  0x57   :  { %s1773_s11 = smov 128   ;;  %s1774_s20 = smov 8  }
  0x58   :  { %40 = dma.hbm_to_vmem [thread:$0]  %s2108_s3, 512, %s35_s25, [#allocation3], %s1773_s11, %s1773_s11, %s1774_s20  }
  0x59   :  { %s1775_s17 = smov [#allocation6]   ;;  %s1776_s21 = smov [#allocation9]  }
  0x5a   :  { %s57_s19 = sshll.u32 %s1775_s17, 4  ;;  %s76_s22 = sshll.u32 %s1776_s21, 4  ;;  %s58_s19 = int_to_ptr.vmem [resolvable:$true] %s57_s19  ;;  %s77_s22 = int_to_ptr.vmem [resolvable:$true] %s76_s22 }
  0x5b   :  { %s1670_s18 = scalar_lea.hbm %s2110_s5, 16 }
  0x5c   :  { %p1671_p12 = scmp.ne.s32.totalorder %s2110_s5, %s1670_s18  ;;  %p1674_p13 = scmp.lt.u32.totalorder %s1670_s18, %s2110_s5 }
  0x5e   :  { %p1676_p0 = pnand %p1674_p13, %p1671_p12 }
  0x60   :  { %1679 = shalt.err (!%p1676_p0)
}
  0x61   :  { %s1680_s3 = scalar_lea.vmem %s58_s19, 16  ;;  %s1684_s25 = scalar_lea.vmem %s58_s19, 32 }
  0x62   :  { %p1681_p1 = scmp.ne.s32.totalorder %s58_s19, %s1680_s3  ;;  %p1685_p2 = scmp.lt.s32.totalorder %s58_s19, %s58_s19 }
  0x63   :  { %p1686_p3 = scmp.lt.s32.totalorder %s1684_s25, %s1680_s3 }
  0x65   :  { %p1687_p4 = por %p1686_p3, %p1685_p2 }
  0x67   :  { %p1688_p5 = pnand %p1687_p4, %p1681_p1 }
  0x69   :  { %1691 = shalt.err (!%p1688_p5)
}
  0x6a   :  { %60 = dma.hbm_to_vmem [thread:$0]  %s2110_s5, 16, %s58_s19, [#allocation5]  }
  0x6b   :  { %s1692_s16 = scalar_lea.hbm %s2112_s7, 512 }
  0x6c   :  { %p1693_p6 = scmp.ne.s32.totalorder %s2112_s7, %s1692_s16  ;;  %p1696_p7 = scmp.lt.u32.totalorder %s1692_s16, %s2112_s7 }
  0x6e   :  { %p1698_p8 = pnand %p1696_p7, %p1693_p6 }
  0x70   :  { %1701 = shalt.err (!%p1698_p8)
}
  0x71   :  { %s1702_s23 = scalar_lea.vmem %s77_s22, 512  ;;  %p1707_p10 = scmp.lt.s32.totalorder %s77_s22, %s77_s22 }
  0x72   :  { %p1703_p9 = scmp.ne.s32.totalorder %s77_s22, %s1702_s23  ;;  %p1708_p11 = scmp.lt.s32.totalorder %s1702_s23, %s1702_s23 }
  0x74   :  { %p1709_p12 = por %p1708_p11, %p1707_p10 }
  0x76   :  { %p1710_p13 = pnand %p1709_p12, %p1703_p9 }
  0x78   :  { %1713 = shalt.err (!%p1710_p13)
}
  0x79   :  { %82 = dma.hbm_to_vmem [thread:$0]  %s2112_s7, 512, %s77_s22, [#allocation8], %s1773_s11, %s1773_s11, %s1774_s20  }
  0x7a   :  { %s1777_s8 = smov [#allocation12]   ;;  %s1778_s24 = smov [#allocation15]  }
  0x7b   :  { %s101_s18 = sshll.u32 %s1777_s8, 4  ;;  %s121_s27 = sshll.u32 %s1778_s24, 4  ;;  %s102_s18 = int_to_ptr.vmem [resolvable:$true] %s101_s18  ;;  %s122_s27 = int_to_ptr.vmem [resolvable:$true] %s121_s27 }
  0x7c   :  { %s1714_s3 = scalar_lea.hbm %s2115_s10, 16 }
  0x7d   :  { %p1715_p0 = scmp.ne.s32.totalorder %s2115_s10, %s1714_s3  ;;  %p1718_p1 = scmp.lt.u32.totalorder %s1714_s3, %s2115_s10 }
  0x7f   :  { %p1720_p2 = pnand %p1718_p1, %p1715_p0 }
  0x81   :  { %1723 = shalt.err (!%p1720_p2)
}
  0x82   :  { %s1724_s7 = scalar_lea.vmem %s102_s18, 16  ;;  %s1728_s11 = scalar_lea.vmem %s102_s18, 32 }
  0x83   :  { %p1725_p3 = scmp.ne.s32.totalorder %s102_s18, %s1724_s7  ;;  %p1729_p4 = scmp.lt.s32.totalorder %s102_s18, %s102_s18 }
  0x84   :  { %p1730_p5 = scmp.lt.s32.totalorder %s1728_s11, %s1724_s7 }
  0x86   :  { %p1731_p6 = por %p1730_p5, %p1729_p4 }
  0x88   :  { %p1732_p7 = pnand %p1731_p6, %p1725_p3 }
  0x8a   :  { %1735 = shalt.err (!%p1732_p7)
}
  0x8b   :  { %104 = dma.hbm_to_vmem [thread:$0]  %s2115_s10, 16, %s102_s18, [#allocation11]  }
  0x8c   :  { %s1736_s4 = scalar_lea.hbm %s2117_s12, 16 }
  0x8d   :  { %p1737_p8 = scmp.ne.s32.totalorder %s2117_s12, %s1736_s4  ;;  %p1740_p9 = scmp.lt.u32.totalorder %s1736_s4, %s2117_s12 }
  0x8f   :  { %p1742_p10 = pnand %p1740_p9, %p1737_p8 }
  0x91   :  { %1745 = shalt.err (!%p1742_p10)
}
  0x92   :  { %s1746_s5 = scalar_lea.vmem %s122_s27, 16  ;;  %s1750_s19 = scalar_lea.vmem %s122_s27, 32 }
  0x93   :  { %p1747_p11 = scmp.ne.s32.totalorder %s122_s27, %s1746_s5  ;;  %p1751_p12 = scmp.lt.s32.totalorder %s122_s27, %s122_s27 }
  0x94   :  { %p1752_p13 = scmp.lt.s32.totalorder %s1750_s19, %s1746_s5 }
  0x96   :  { %p1753_p0 = por %p1752_p13, %p1751_p12 }
  0x98   :  { %p1754_p1 = pnand %p1753_p0, %p1747_p11 }
  0x9a   :  { %1757 = shalt.err (!%p1754_p1)
}
  0x9b   :  { %124 = dma.hbm_to_vmem [thread:$0]  %s2117_s12, 16, %s122_s27, [#allocation14]  }
  0x9c   :  { %1758 = dma.done.wait [#allocation3], 512  }
  0x9d   :  { %1759 = vsyncadd [#allocation3], 4294966784 }
  0x9e   :  { %1760 = dma.done.wait [#allocation5], 32  }
  0x9f   :  { %1761 = vsyncadd [#allocation5], 4294967264 }
  0xa0   :  { %1762 = dma.done.wait [#allocation8], 528  }
  0xa1   :  { %1763 = vsyncadd [#allocation8], 4294966768 }
  0xa2   :  { %1764 = dma.done.wait [#allocation11], 32  }
  0xa3   :  { %1765 = vsyncadd [#allocation11], 4294967264 }
  0xa4   :  { %1766 = dma.done.wait [#allocation14], 32  }
  0xa5   :  { %1767 = vsyncadd [#allocation14], 4294967264  ;;  %vm165_vm0 = vcmask 261120   ;;  %v154_v0 = vld [vmem:[%s2106_s1] sm:$0xff]  ;;  %v155_v1 = vld [vmem:[%s2106_s1 + $0x8] sm:$0xff]  ;;  %v1779_v8 = vmov 0.0  }
  0xa6   :  { %v156_v2 = vld [vmem:[%s2106_s1 + $0x10] sm:$0xff]  ;;  %v1477_v3 = vpack.c.bf16 %v155_v1, %v154_v0  ;;  %v157_v4 = vld [vmem:[%s2106_s1 + $0x18] sm:$0xff]  ;;  %v1986_v5 = vld [vmem:[%s2105_s0] sm:$0xff]  ;;  %1406 = vmatprep.subr.mxu0 %v1779_v8  ;;  %vm1780_vm1 = vmmov 0   ;;  %s1782_s20 = smov 96   ;;  %s1783_s22 = smov 80  }
  0xa7   :  { %v1481_v6 = vpack.c.bf16 %v157_v4, %v156_v2  ;;  %1393 = vmatprep.mubr.msk.f32.mxu1 %vm165_vm0, %v1986_v5  ;;  %v1993_v7 = vld [vmem:[%s2105_s0 + $0x8] sm:$0xff]  ;;  %1408 = vmatprep.mubr.msk.f32.mxu0 %vm1780_vm1, %v1779_v8  ;;  %v1313_v9 = vld [vmem:[%s2107_s2] ss:$0 sm:$0xff]  ;;  %s1781_s0 = smov 112   ;;  %vm250_vm2 = vcmask 130048   ;;  %vm326_vm3 = vcmask 64512  }
  0xa8   :  { %1478 = vmatprep.subr.bf16.mxu1 %v1477_v3  ;;  %s1784_s2 = smov 64   ;;  %s1785_s15 = smov 48   ;;  %vm1169_vm4 = vcmask 523264   ;;  %vm1300_vm5 = vcmask 1040384   ;;  %vm1302_vm6 = vcmask 254976  }
  0xa9   :  { %1480 = vmatpush3.bf16.msra.mxu1 %v1477_v3  ;;  %s1786_s16 = smov 16  }
  0xaa   :  { %1482 = vmatprep.subr.bf16.mxu1 %v1481_v6 }
  0xad   :  { %1484 = vmatpush3.bf16.msra.mxu1 %v1481_v6 }
  0xae   :  { %1396 = vmatprep.subr.mxu1 %v1779_v8 }
  0xb0   :  { %1394 = vmatmul.mubr.msk.f32.vlgmr.msra.gmra.mrb[0].mxu1 %vm165_vm0, %v1993_v7 }
  0xb1   :  { %1398 = vmatprep.mubr.msk.f32.mxu1 %vm1780_vm1, %v1779_v8 }
 0x183   :  { %v1395_v10 = vpop.f32.mrb[0].mxu1 }
 0x184   :  { %v238_v11 = vpop.f32.mrb[1].mxu1  ;;  %v2010_v13 = vadd.f32 %v1395_v10, %v1313_v9 }
 0x185   :  { %v2006_v12 = vadd.f32 %v1313_v9, %v238_v11  ;;  %v921_v11 = vld [vmem:[#allocation2] sm:$0xff] }
 0x187   :  { %414 = vrot.lane.b32.xlu1 %v2006_v12, %s1781_s0  ;;  %248 = vrot.lane.b32.xlu0 %v2006_v12, %s1782_s20 }
 0x18b   :  { %586 = vrot.lane.b32.xlu1 %v2010_v13, %s1782_s20  ;;  %416 = vrot.lane.b32.xlu0 %v2006_v12, %s1783_s22 }
 0x18f   :  { %750 = vrot.lane.b32.xlu1 %v2010_v13, %s1781_s0  ;;  %752 = vrot.lane.b32.xlu0 %v2010_v13, %s1783_s22 }
 0x1f9   :  { %v249_v14 = vpop.permute.xlu0 %248  ;;  %v415_v15 = vpop.permute.xlu1 %414 }
 0x1fa   :  { %1397 = vmatpush3.xpose.msk.msra.mxu1 %vm250_vm2, %v249_v14  ;;  %v923_v14 = vld [vmem:[#allocation2 + $0x10] sm:$0xff] }
 0x1fb   :  { %1401 = vmatprep.subr.mxu1 %v1779_v8 }
 0x1fd   :  { %1399 = vmatmul.mubr.msk.f32.vlgmr.msra.gmra.mrb[2].mxu1 %vm250_vm2, %v2006_v12  ;;  %v417_v16 = vpop.permute.xlu0 %416  ;;  %v587_v17 = vpop.permute.xlu1 %586 }
 0x1fe   :  { %1407 = vmatpush3.xpose.msk.msra.mxu0 %vm250_vm2, %v417_v16  ;;  %1403 = vmatprep.mubr.msk.f32.mxu1 %vm1780_vm1, %v1779_v8 }
 0x1ff   :  { %1416 = vmatprep.subr.mxu0 %v1779_v8 }
 0x201   :  { %1409 = vmatmul.mubr.msk.f32.vlgmr.msra.gmra.mrb[0].mxu0 %vm250_vm2, %v415_v15  ;;  %v753_v18 = vpop.permute.xlu0 %752  ;;  %v751_v19 = vpop.permute.xlu1 %750  ;;  %v924_v15 = vld [vmem:[#allocation2 + $0x18] sm:$0xff] }
 0x202   :  { %1417 = vmatpush3.xpose.msk.msra.mxu0 %vm250_vm2, %v587_v17  ;;  %1418 = vmatprep.mubr.msk.f32.mxu0 %vm1780_vm1, %v1779_v8  ;;  %v1489_v16 = vpack.c.bf16 %v924_v15, %v923_v14  ;;  %v1160_v15 = vld [vmem:[%s2114_s9 + $0x30] sm:$0xff] }
 0x203   :  { %1426 = vmatprep.subr.mxu0 %v1779_v8 }
 0x205   :  { %1419 = vmatmul.mubr.msk.f32.vlgmr.msra.gmra.mrb[2].mxu0 %vm250_vm2, %v2010_v13 }
 0x206   :  { %1427 = vmatpush3.xpose.msk.msra.mxu0 %vm250_vm2, %v753_v18  ;;  %1428 = vmatprep.mubr.msk.f32.mxu0 %vm1780_vm1, %v1779_v8 }
 0x209   :  { %1429 = vmatmul.mubr.msk.f32.vlgmr.msra.gmra.mrb[4].mxu0 %vm250_vm2, %v751_v19 }
 0x2d0   :  { %v321_v20 = vpop.f32.mrb[2].mxu1 }
 0x2d1   :  { %v325_v21 = vmul.f32 0.25, %v321_v20  ;;  %v1400_v22 = vpop.f32.mrb[3].mxu1 }
 0x2d3   :  { %v327_v23 = vsel %vm326_vm3, %v325_v21, -inf }
 0x2d4   :  { %328 = vmax.xlane.f32.xlu0 %v327_v23  ;;  %v488_v24 = vpop.f32.mrb[0].mxu0 }
 0x2d5   :  { %v492_v25 = vmul.f32 0.25, %v488_v24  ;;  %v1410_v26 = vpop.f32.mrb[1].mxu0 }
 0x2d7   :  { %v493_v27 = vsel %vm326_vm3, %v492_v25, -inf }
 0x2d8   :  { %494 = vmax.xlane.f32.xlu1 %v493_v27  ;;  %v658_v28 = vpop.f32.mrb[2].mxu0 }
 0x2d9   :  { %v662_v29 = vmul.f32 0.25, %v658_v28  ;;  %v1420_v30 = vpop.f32.mrb[3].mxu0  ;;  %v1328_v28 = vld [vmem:[#allocation4] ss:$0 sm:$0xff] }
 0x2db   :  { %v663_v31 = vsel %vm326_vm3, %v662_v29, -inf }
 0x2dc   :  { %664 = vmax.xlane.f32.xlu0 %v663_v31  ;;  %v824_v32 = vpop.f32.mrb[4].mxu0 }
 0x2dd   :  { %v828_v33 = vmul.f32 0.25, %v824_v32  ;;  %v1430_v34 = vpop.f32.mrb[5].mxu0 }
 0x2df   :  { %v829_v35 = vsel %vm326_vm3, %v828_v33, -inf }
 0x2e0   :  { %830 = vmax.xlane.f32.xlu0 %v829_v35 }
 0x2e9   :  { %338 = vrot.lane.b32.xlu1 %v2006_v12, %s1784_s2 }
 0x361   :  { %v329_v36 = vpop.xlane.xlu0 %328 }
 0x362   :  { %v330_v37 = vsub.f32 %v325_v21, %v329_v36 }
 0x364   :  { %v331_v38 = vmul.f32 1.442695, %v330_v37 }
 0x365   :  { %v495_v39 = vpop.xlane.xlu1 %494 }
 0x366   :  { %1536 = vpow2.f32 %v331_v38  ;;  %v496_v40 = vsub.f32 %v492_v25, %v495_v39 }
 0x368   :  { %v497_v41 = vmul.f32 1.442695, %v496_v40 }
 0x369   :  { %v339_v42 = vpop.permute.xlu1 %338  ;;  %v665_v43 = vpop.xlane.xlu0 %664 }
 0x36a   :  { %1538 = vpow2.f32 %v497_v41  ;;  %v666_v44 = vsub.f32 %v662_v29, %v665_v43  ;;  %1402 = vmatpush3.msra.mxu1 %v339_v42 }
 0x36b   :  { %1411 = vmatprep.subr.mxu1 %v1779_v8 }
 0x36c   :  { %v667_v45 = vmul.f32 1.442695, %v666_v44 }
 0x36d   :  { %v831_v46 = vpop.xlane.xlu0 %830 }
 0x36e   :  { %1540 = vpow2.f32 %v667_v45  ;;  %v832_v47 = vsub.f32 %v828_v33, %v831_v46  ;;  %v1061_v46 = vld [vmem:[#allocation9 + $0x8] sm:$0xff] }
 0x370   :  { %v1537_v48 = vpop.eup %1536  ;;  %v833_v49 = vmul.f32 1.442695, %v832_v47 }
 0x371   :  { %v333_v50 = vsel %vm326_vm3, %v1537_v48, 0.0 }
 0x372   :  { %1542 = vpow2.f32 %v833_v49  ;;  %334 = vadd.xlane.f32.xlu1 %v333_v50  ;;  %v1063_v49 = vld [vmem:[#allocation9 + $0x18] sm:$0xff] }
 0x374   :  { %v1539_v51 = vpop.eup %1538 }
 0x375   :  { %v499_v52 = vsel %vm326_vm3, %v1539_v51, 0.0 }
 0x376   :  { %500 = vadd.xlane.f32.xlu0 %v499_v52  ;;  %v1155_v52 = vld [vmem:[%s2114_s9 + $0x8] sm:$0xff] }
 0x378   :  { %v1541_v53 = vpop.eup %1540 }
 0x379   :  { %v669_v54 = vsel %vm326_vm3, %v1541_v53, 0.0 }
 0x37a   :  { %670 = vadd.xlane.f32.xlu1 %v669_v54 }
 0x37c   :  { %v1543_v55 = vpop.eup %1542 }
 0x37d   :  { %v835_v56 = vsel %vm326_vm3, %v1543_v55, 0.0 }
 0x37e   :  { %836 = vadd.xlane.f32.xlu0 %v835_v56 }
 0x38b   :  { %674 = vrot.lane.b32.xlu1 %v2010_v13, %s1784_s2 }
 0x38f   :  { %840 = vrot.lane.b32.xlu1 %v2010_v13, %s1785_s15 }
 0x394   :  { %504 = vrot.lane.b32.xlu0 %v2006_v12, %s1785_s15  ;;  %v922_v12 = vld [vmem:[#allocation2 + $0x8] sm:$0xff] }
 0x395   :  { %v1485_v13 = vpack.c.bf16 %v922_v12, %v921_v11 }
 0x397   :  { %1486 = vmatprep.subr.bf16.mxu0 %v1485_v13 }
 0x398   :  { %1488 = vmatpush3.bf16.msra.mxu0 %v1485_v13 }
 0x399   :  { %1490 = vmatprep.subr.bf16.mxu0 %v1489_v16 }
 0x39c   :  { %1492 = vmatpush3.bf16.msra.mxu0 %v1489_v16  ;;  %v1161_v16 = vld [vmem:[%s2114_s9 + $0x38] sm:$0xff] }
 0x3ff   :  { %v335_v57 = vpop.xlane.xlu1 %334 }
 0x400   :  { %1544 = vrcp.f32 %v335_v57  ;;  %v1158_v57 = vld [vmem:[%s2114_s9 + $0x20] sm:$0xff] }
 0x403   :  { %v501_v58 = vpop.xlane.xlu0 %500 }
 0x404   :  { %1546 = vrcp.f32 %v501_v58  ;;  %v1159_v58 = vld [vmem:[%s2114_s9 + $0x28] sm:$0xff] }
 0x407   :  { %v671_v59 = vpop.xlane.xlu1 %670 }
 0x408   :  { %1548 = vrcp.f32 %v671_v59  ;;  %v1509_v59 = vpack.c.bf16 %v1159_v58, %v1158_v57 }
 0x40a   :  { %v1545_v60 = vpop.eup %1544 }
 0x40b   :  { %v337_v61 = vmul.f32 %v1545_v60, %v1537_v48  ;;  %v837_v62 = vpop.xlane.xlu0 %836  ;;  %v675_v1 = vpop.permute.xlu1 %674  ;;  %v1062_v48 = vld [vmem:[#allocation9 + $0x10] sm:$0xff] }
 0x40c   :  { %1550 = vrcp.f32 %v837_v62  ;;  %v1497_v50 = vpack.c.bf16 %v1063_v49, %v1062_v48  ;;  %v1339_v48 = vld [vmem:[#allocation13] ss:$0 sm:$0xff] }
 0x40d   :  { %1404 = vmatmul.mubr.msk.f32.vlgmr.msra.gmra.mrb[4].mxu1 %vm326_vm3, %v337_v61 }
 0x40e   :  { %v1547_v63 = vpop.eup %1546  ;;  %1413 = vmatprep.mubr.msk.f32.mxu1 %vm1780_vm1, %v1779_v8 }
 0x40f   :  { %v503_v0 = vmul.f32 %v1547_v63, %v1539_v51  ;;  %v505_v2 = vpop.permute.xlu0 %504  ;;  %v841_v6 = vpop.permute.xlu1 %840  ;;  %v1154_v51 = vld [vmem:[%s2114_s9] sm:$0xff] }
 0x410   :  { %1412 = vmatpush3.msra.mxu1 %v505_v2  ;;  %v1501_v54 = vpack.c.bf16 %v1155_v52, %v1154_v51  ;;  %v1340_v51 = vld [vmem:[#allocation15] ss:$0 sm:$0xff] }
 0x411   :  { %1414 = vmatmul.mubr.msk.f32.vlgmr.msra.gmra.mrb[6].mxu1 %vm326_vm3, %v503_v0  ;;  %1421 = vmatprep.subr.mxu1 %v1779_v8 }
 0x412   :  { %v1549_v3 = vpop.eup %1548  ;;  %1422 = vmatpush3.msra.mxu1 %v675_v1  ;;  %1423 = vmatprep.mubr.msk.f32.mxu1 %vm1780_vm1, %v1779_v8 }
 0x413   :  { %v673_v4 = vmul.f32 %v1549_v3, %v1541_v53  ;;  %1431 = vmatprep.subr.mxu1 %v1779_v8  ;;  %v1156_v53 = vld [vmem:[%s2114_s9 + $0x10] sm:$0xff]  ;;  %1502 = vmatprep.subr.bf16.mxu0 %v1501_v54  ;;  %v1331_v3 = vld [vmem:[#allocation6] ss:$0 sm:$0xff] }
 0x415   :  { %1424 = vmatmul.mubr.msk.f32.vlgmr.msra.gmra.mrb[8].mxu1 %vm326_vm3, %v673_v4 }
 0x416   :  { %v1551_v9 = vpop.eup %1550  ;;  %1432 = vmatpush3.msra.mxu1 %v841_v6  ;;  %1433 = vmatprep.mubr.msk.f32.mxu1 %vm1780_vm1, %v1779_v8  ;;  %v1332_v6 = vld [vmem:[#allocation7] ss:$0 sm:$0xff] }
 0x417   :  { %v839_v10 = vmul.f32 %v1551_v9, %v1543_v55  ;;  %v1157_v55 = vld [vmem:[%s2114_s9 + $0x18] sm:$0xff] }
 0x418   :  { %v1505_v56 = vpack.c.bf16 %v1157_v55, %v1156_v53 }
 0x419   :  { %1434 = vmatmul.mubr.msk.f32.vlgmr.msra.gmra.mrb[10].mxu1 %vm326_vm3, %v839_v10 }
 0x4e0   :  { %v410_v17 = vpop.f32.mrb[4].mxu1 }
 0x4e1   :  { %v1405_v18 = vpop.f32.mrb[5].mxu1 }
 0x4e2   :  { %v1333_v18 = vld [vmem:[#allocation10] ss:$0 sm:$0xff] }
 0x4e4   :  { %v576_v19 = vpop.f32.mrb[6].mxu1 }
 0x4e5   :  { %581 = vrot.lane.b32.xlu0 %v576_v19, %s1786_s16  ;;  %v1415_v20 = vpop.f32.mrb[7].mxu1 }
 0x4e8   :  { %v746_v8 = vpop.f32.mrb[8].mxu1 }
 0x4e9   :  { %v1425_v21 = vpop.f32.mrb[9].mxu1 }
 0x4ec   :  { %v912_v22 = vpop.f32.mrb[10].mxu1 }
 0x4ed   :  { %917 = vrot.lane.b32.xlu1 %v912_v22, %s1786_s16  ;;  %v1435_v23 = vpop.f32.mrb[11].mxu1 }
 0x557   :  { %v582_v24 = vpop.permute.xlu0 %581 }
 0x558   :  { %v584_v25 = vsel %vm250_vm2, %v410_v17, %v582_v24  ;;  %v1513_v17 = vpack.c.bf16 %v1161_v16, %v1160_v15  ;;  %v1336_v24 = vld [vmem:[#allocation12] ss:$0 sm:$0xff] }
 0x559   :  { %1444 = vmatprep.mubr.msk.f32.mxu0 %vm165_vm0, %v584_v25 }
 0x55f   :  { %v918_v26 = vpop.permute.xlu1 %917 }
 0x560   :  { %v920_v27 = vsel %vm250_vm2, %v746_v8, %v918_v26 }
 0x561   :  { %1445 = vmatmul.mubr.msk.f32.vlgmr.msra.gmra.mrb[6].mxu0 %vm165_vm0, %v920_v27 }
 0x562   :  { %1504 = vmatpush3.bf16.msra.mxu0 %v1501_v54 }
 0x563   :  { %1506 = vmatprep.subr.bf16.mxu0 %v1505_v56 }
 0x566   :  { %1508 = vmatpush3.bf16.msra.mxu0 %v1505_v56 }
 0x567   :  { %1510 = vmatprep.subr.bf16.mxu0 %v1509_v59 }
 0x56a   :  { %1512 = vmatpush3.bf16.msra.mxu0 %v1509_v59 }
 0x56b   :  { %1514 = vmatprep.subr.bf16.mxu0 %v1513_v17 }
 0x56e   :  { %1516 = vmatpush3.bf16.msra.mxu0 %v1513_v17 }
 0x634   :  { %v1446_v29 = vpop.f32.mrb[6].mxu0 }
 0x635   :  { %v1010_v30 = vadd.f32 %v1446_v29, %v1328_v28  ;;  %v1004_v31 = vpop.f32.mrb[7].mxu0 }
 0x636   :  { %v1005_v32 = vadd.f32 %v1328_v28, %v1004_v31 }
 0x637   :  { %v1014_v33 = vadd.f32 %v1010_v30, %v1993_v7 }
 0x638   :  { %v1013_v34 = vadd.f32 %v1005_v32, %v1986_v5  ;;  %v1060_v5 = vld [vmem:[#allocation9] sm:$0xff] }
 0x639   :  { %v1020_v35 = vsel %vm165_vm0, %v1014_v33, 0.0  ;;  %v1493_v47 = vpack.c.bf16 %v1061_v46, %v1060_v5 }
 0x63a   :  { %1021 = vadd.xlane.f32.xlu1 %v1020_v35  ;;  %v1017_v36 = vsel %vm165_vm0, %v1013_v34, 0.0 }
 0x63b   :  { %1018 = vadd.xlane.f32.xlu0 %v1017_v36  ;;  %1494 = vmatprep.subr.bf16.mxu1 %v1493_v47 }
 0x63c   :  { %1496 = vmatpush3.bf16.msra.mxu1 %v1493_v47 }
 0x63d   :  { %1498 = vmatprep.subr.bf16.mxu1 %v1497_v50 }
 0x640   :  { %1500 = vmatpush3.bf16.msra.mxu1 %v1497_v50 }
 0x6c7   :  { %v1022_v37 = vpop.xlane.xlu1 %1021 }
 0x6c8   :  { %v1025_v38 = vmul.f32 0.03125, %v1022_v37  ;;  %v1019_v39 = vpop.xlane.xlu0 %1018 }
 0x6c9   :  { %v1024_v40 = vmul.f32 0.03125, %v1019_v39 }
 0x6ca   :  { %v1027_v41 = vsub.f32 %v1014_v33, %v1025_v38 }
 0x6cb   :  { %v1026_v42 = vsub.f32 %v1013_v34, %v1024_v40 }
 0x6cc   :  { %v1029_v45 = vmul.f32 %v1027_v41, %v1027_v41 }
 0x6cd   :  { %v1028_v43 = vmul.f32 %v1026_v42, %v1026_v42 }
 0x6ce   :  { %v1033_v7 = vsel %vm165_vm0, %v1029_v45, 0.0 }
 0x6cf   :  { %v1030_v44 = vsel %vm165_vm0, %v1028_v43, 0.0 }
 0x6d0   :  { %1031 = vadd.xlane.f32.xlu0 %v1030_v44 }
 0x6d4   :  { %1034 = vadd.xlane.f32.xlu0 %v1033_v7 }
 0x75d   :  { %v1032_v60 = vpop.xlane.xlu0 %1031 }
 0x75e   :  { %v1036_v61 = vmul.f32 0.03125, %v1032_v60 }
 0x760   :  { %v1038_v62 = vadd.f32 1e-05, %v1036_v61 }
 0x761   :  { %v1035_v63 = vpop.xlane.xlu0 %1034 }
 0x762   :  { %1552 = vrsqrt.f32 %v1038_v62  ;;  %v1037_v0 = vmul.f32 0.03125, %v1035_v63 }
 0x764   :  { %v1039_v1 = vadd.f32 1e-05, %v1037_v0 }
 0x766   :  { %1554 = vrsqrt.f32 %v1039_v1 }
 0x76c   :  { %v1553_v2 = vpop.eup %1552 }
 0x76d   :  { %v1042_v4 = vmul.f32 %v1553_v2, %v1026_v42 }
 0x76f   :  { %v1050_v9 = vmul.f32 %v1331_v3, %v1042_v4 }
 0x770   :  { %v1555_v10 = vpop.eup %1554 }
 0x771   :  { %v1043_v11 = vmul.f32 %v1555_v10, %v1027_v41  ;;  %v1058_v12 = vadd.f32 %v1332_v6, %v1050_v9 }
 0x773   :  { %v1051_v13 = vmul.f32 %v1331_v3, %v1043_v11  ;;  %1455 = vmatprep.mubr.msk.f32.mxu1 %vm165_vm0, %v1058_v12 }
 0x775   :  { %v1059_v14 = vadd.f32 %v1332_v6, %v1051_v13 }
 0x777   :  { %1456 = vmatmul.mubr.msk.f32.vlgmr.msra.gmra.mrb[12].mxu1 %vm165_vm0, %v1059_v14 }
 0x84a   :  { %v1457_v19 = vpop.f32.mrb[12].mxu1 }
 0x84b   :  { %v1149_v20 = vadd.f32 %v1457_v19, %v1333_v18  ;;  %v1143_v8 = vpop.f32.mrb[13].mxu1 }
 0x84c   :  { %v1144_v21 = vadd.f32 %v1333_v18, %v1143_v8 }
 0x84d   :  { %v1153_v23 = vmax.f32 %v1149_v20, 0.0 }
 0x84e   :  { %v1152_v22 = vmax.f32 %v1144_v21, 0.0 }
 0x850   :  { %1474 = vmatprep.mubr.msk.f32.mxu0 %vm1169_vm4, %v1152_v22 }
 0x851   :  { %1475 = vmatmul.mubr.msk.f32.vlgmr.msra.gmra.mrb[8].mxu0 %vm1169_vm4, %v1153_v23 }
 0x924   :  { %v1476_v25 = vpop.f32.mrb[8].mxu0 }
 0x925   :  { %v1248_v26 = vadd.f32 %v1476_v25, %v1336_v24  ;;  %v1242_v27 = vpop.f32.mrb[9].mxu0 }
 0x926   :  { %v1243_v28 = vadd.f32 %v1336_v24, %v1242_v27 }
 0x927   :  { %v1252_v29 = vadd.f32 %v1248_v26, %v1059_v14 }
 0x928   :  { %v1251_v30 = vadd.f32 %v1243_v28, %v1058_v12 }
 0x929   :  { %v1258_v31 = vsel %vm165_vm0, %v1252_v29, 0.0 }
 0x92a   :  { %1259 = vadd.xlane.f32.xlu1 %v1258_v31  ;;  %v1255_v32 = vsel %vm165_vm0, %v1251_v30, 0.0 }
 0x92b   :  { %1256 = vadd.xlane.f32.xlu0 %v1255_v32 }
 0x9b7   :  { %v1260_v33 = vpop.xlane.xlu1 %1259 }
 0x9b8   :  { %v1262_v34 = vmul.f32 0.03125, %v1260_v33  ;;  %v1257_v35 = vpop.xlane.xlu0 %1256 }
 0x9b9   :  { %v1261_v36 = vmul.f32 0.03125, %v1257_v35 }
 0x9ba   :  { %v1264_v37 = vsub.f32 %v1252_v29, %v1262_v34 }
 0x9bb   :  { %v1263_v38 = vsub.f32 %v1251_v30, %v1261_v36 }
 0x9bc   :  { %v1266_v39 = vmul.f32 %v1264_v37, %v1264_v37 }
 0x9bd   :  { %v1265_v40 = vmul.f32 %v1263_v38, %v1263_v38 }
 0x9be   :  { %v1270_v41 = vsel %vm165_vm0, %v1266_v39, 0.0 }
 0x9bf   :  { %1271 = vadd.xlane.f32.xlu1 %v1270_v41  ;;  %v1267_v42 = vsel %vm165_vm0, %v1265_v40, 0.0 }
 0x9c0   :  { %1268 = vadd.xlane.f32.xlu0 %v1267_v42 }
 0xa4c   :  { %v1272_v43 = vpop.xlane.xlu1 %1271 }
 0xa4d   :  { %v1274_v44 = vmul.f32 0.03125, %v1272_v43  ;;  %v1269_v45 = vpop.xlane.xlu0 %1268 }
 0xa4e   :  { %v1273_v7 = vmul.f32 0.03125, %v1269_v45 }
 0xa4f   :  { %v1276_v5 = vadd.f32 1e-05, %v1274_v44 }
 0xa50   :  { %v1275_v46 = vadd.f32 1e-05, %v1273_v7 }
 0xa51   :  { %1556 = vrsqrt.f32 %v1276_v5 }
 0xa52   :  { %1558 = vrsqrt.f32 %v1275_v46 }
 0xa5b   :  { %v1557_v47 = vpop.eup %1556 }
 0xa5c   :  { %v1559_v49 = vpop.eup %1558  ;;  %v1280_v50 = vmul.f32 %v1557_v47, %v1264_v37 }
 0xa5d   :  { %v1279_v52 = vmul.f32 %v1559_v49, %v1263_v38 }
 0xa5e   :  { %v1288_v53 = vmul.f32 %v1339_v48, %v1280_v50 }
 0xa5f   :  { %v1287_v54 = vmul.f32 %v1339_v48, %v1279_v52 }
 0xa60   :  { %v1296_v55 = vadd.f32 %v1340_v51, %v1288_v53 }
 0xa61   :  { %v1295_v56 = vadd.f32 %v1340_v51, %v1287_v54 }
 0xa62   :  { %v1298_v57 = vrot.slane %v1296_v55, 7 }
 0xa64   :  { %v1301_v58 = vsel %vm1300_vm5, %v1295_v56, %v1298_v57 }
 0xa65   :  { %1303 = vst.msk [vmem:[%s2118_s13] sm:$0x3] %vm1302_vm6, %v1301_v58 }
 0xa66   :  { %1308 = vsyncpa [#allocation3], 1 }
 0xa67   :  { %1309 = vsyncpa [#allocation5], 1 }
 0xa68   :  { %1310 = vsyncpa [#allocation8], 1 }
 0xa69   :  { %1311 = vsyncpa [#allocation11], 1 }
 0xa6a   :  { %1312 = vsyncpa [#allocation14], 1 }

// kernel: bd_transformer_lenet.6
= control target key start
LH: loop header
LB: loop body
LE: loop exit
PB: predicated region body
PF: predicated region fallthrough
CT: control target
= control target key end

     0   :  { %v892_v0 = vmov 0.0|0.0   ;;  %vm60_vm0 = vcmask 179200   ;;  %v893_v29 = vmov 0.0   ;;  %vm64_vm1 = vcmask 1045504   ;;  %s1309_s1 = inlined_call_operand.vmem [shape: f32[150,16], index: 1, kind: input, shape index: {}]   ;;  %s1310_s0 = inlined_call_operand.vmem [shape: f32[8,150], index: 0, kind: input, shape index: {}]   ;;  %s1311_s3 = inlined_call_operand.vmem [shape: f32[16,120], index: 3, kind: input, shape index: {}]   ;;  %s1312_s5 = inlined_call_operand.vmem [shape: f32[120,84], index: 5, kind: input, shape index: {}]   ;;  %s1313_s2 = inlined_call_operand.vmem [shape: f32[1,16], index: 2, kind: input, shape index: {}]   ;;  %s1314_s7 = inlined_call_operand.vmem [shape: f32[84,768], index: 7, kind: input, shape index: {}]   ;;  %s1315_s4 = inlined_call_operand.vmem [shape: f32[1,120], index: 4, kind: input, shape index: {}]   ;;  %s1316_s6 = inlined_call_operand.vmem [shape: f32[1,84], index: 6, kind: input, shape index: {}]   ;;  %s1317_s8 = inlined_call_operand.vmem [shape: f32[1,768], index: 8, kind: input, shape index: {}]   ;;  %s1318_s9 = inlined_call_operand.vmem [shape: f32[2,768], index: 9, kind: output, shape index: {}]  }
   0x1   :  { %777 = vmatprep.subr.bf16.mxu0 %v892_v0  ;;  %v34_v1 = vld [vmem:[%s1309_s1] sm:$0xff]  ;;  %v35_v2 = vld [vmem:[%s1309_s1 + $0x8] sm:$0xff]  ;;  %v36_v3 = vld [vmem:[%s1309_s1 + $0x10] sm:$0xff]  ;;  %807 = vmatprep.subr.bf16.mxu1 %v892_v0  ;;  %vm894_vm2 = vmmov 0   ;;  %vm156_vm3 = vcmask 130048   ;;  %vm253_vm4 = vcmask 982016  }
   0x2   :  { %v778_v4 = vpack.c.bf16 %v35_v2, %v34_v1  ;;  %v37_v5 = vld [vmem:[%s1309_s1 + $0x18] sm:$0xff]  ;;  %v38_v7 = vld [vmem:[%s1309_s1 + $0x20] sm:$0xff]  ;;  %v39_v8 = vld [vmem:[%s1309_s1 + $0x28] sm:$0xff]  ;;  %774 = vmatprep.mubr.msk.f32.mxu1 %vm894_vm2, %v893_v29  ;;  %vm430_vm5 = vcmask 1043456   ;;  %vm426_vm6 = vcmask 687104  }
   0x3   :  { %v781_v6 = vpack.c.bf16 %v37_v5, %v36_v3  ;;  %v33_v9 = vld [vmem:[%s1310_s0 + $0x8] sm:$0xff]  ;;  %v784_v10 = vpack.c.bf16 %v39_v8, %v38_v7  ;;  %v40_v11 = vld [vmem:[%s1309_s1 + $0x30] sm:$0xff]  ;;  %v41_v12 = vld [vmem:[%s1309_s1 + $0x38] sm:$0xff] }
   0x4   :  { %779 = vmatpush1.bf16.msra.mxu0 %v778_v4  ;;  %703 = vmatprep.mubr.msk.f32.mxu0 %vm60_vm0, %v33_v9  ;;  %v787_v13 = vpack.c.bf16 %v41_v12, %v40_v11  ;;  %v42_v14 = vld [vmem:[%s1309_s1 + $0x40] sm:$0xff]  ;;  %v43_v15 = vld [vmem:[%s1309_s1 + $0x48] sm:$0xff]  ;;  %v44_v17 = vld [vmem:[%s1309_s1 + $0x50] sm:$0xff] }
   0x5   :  { %780 = vmatprep.subr.bf16.mxu0 %v892_v0  ;;  %v790_v16 = vpack.c.bf16 %v43_v15, %v42_v14  ;;  %v45_v18 = vld [vmem:[%s1309_s1 + $0x58] sm:$0xff]  ;;  %v46_v20 = vld [vmem:[%s1309_s1 + $0x60] sm:$0xff]  ;;  %v47_v21 = vld [vmem:[%s1309_s1 + $0x68] sm:$0xff] }
   0x6   :  { %v793_v19 = vpack.c.bf16 %v45_v18, %v44_v17  ;;  %v796_v22 = vpack.c.bf16 %v47_v21, %v46_v20  ;;  %v48_v23 = vld [vmem:[%s1309_s1 + $0x70] sm:$0xff]  ;;  %v49_v24 = vld [vmem:[%s1309_s1 + $0x78] sm:$0xff]  ;;  %v50_v26 = vld [vmem:[%s1309_s1 + $0x80] sm:$0xff] }
   0x7   :  { %v799_v25 = vpack.c.bf16 %v49_v24, %v48_v23  ;;  %v51_v27 = vld [vmem:[%s1309_s1 + $0x88] sm:$0xff]  ;;  %v52_v30 = vld [vmem:[%s1309_s1 + $0x90] sm:$0x3f]  ;;  %v32_v31 = vld [vmem:[%s1310_s0] sm:$0xff] }
   0x8   :  { %782 = vmatpush1.bf16.msra.mxu0 %v781_v6  ;;  %v802_v28 = vpack.c.bf16 %v51_v27, %v50_v26  ;;  %v147_v32 = vld [vmem:[%s1311_s3] sm:$0xff]  ;;  %v148_v33 = vld [vmem:[%s1311_s3 + $0x8] sm:$0xff]  ;;  %v233_v37 = vld [vmem:[%s1312_s5 + $0x10] sm:$0xff] }
   0x9   :  { %783 = vmatprep.subr.bf16.mxu0 %v892_v0  ;;  %v805_v34 = vpack.c.bf16 %v148_v33, %v147_v32  ;;  %v231_v35 = vld [vmem:[%s1312_s5] sm:$0xff]  ;;  %v232_v36 = vld [vmem:[%s1312_s5 + $0x8] sm:$0xff]  ;;  %v234_v39 = vld [vmem:[%s1312_s5 + $0x18] sm:$0xff] }
   0xa   :  { %v808_v38 = vpack.c.bf16 %v232_v36, %v231_v35  ;;  %v811_v40 = vpack.c.bf16 %v234_v39, %v233_v37  ;;  %v235_v41 = vld [vmem:[%s1312_s5 + $0x20] sm:$0xff]  ;;  %v236_v42 = vld [vmem:[%s1312_s5 + $0x28] sm:$0xff]  ;;  %v237_v44 = vld [vmem:[%s1312_s5 + $0x30] sm:$0xff] }
   0xb   :  { %v814_v43 = vpack.c.bf16 %v236_v42, %v235_v41  ;;  %v238_v45 = vld [vmem:[%s1312_s5 + $0x38] sm:$0xff]  ;;  %v239_v47 = vld [vmem:[%s1312_s5 + $0x40] sm:$0xff]  ;;  %v240_v48 = vld [vmem:[%s1312_s5 + $0x48] sm:$0xff] }
   0xc   :  { %785 = vmatpush1.bf16.msra.mxu0 %v784_v10  ;;  %809 = vmatpush3.bf16.msra.mxu1 %v808_v38  ;;  %v817_v46 = vpack.c.bf16 %v238_v45, %v237_v44  ;;  %v820_v49 = vpack.c.bf16 %v240_v48, %v239_v47  ;;  %v241_v50 = vld [vmem:[%s1312_s5 + $0x50] sm:$0xff]  ;;  %v242_v51 = vld [vmem:[%s1312_s5 + $0x58] sm:$0xff]  ;;  %v701_v53 = vld [vmem:[%s1313_s2] ss:$0 sm:$0xff] }
   0xd   :  { %786 = vmatprep.subr.bf16.mxu0 %v892_v0  ;;  %810 = vmatprep.subr.bf16.mxu1 %v892_v0  ;;  %v823_v52 = vpack.c.bf16 %v242_v51, %v241_v50  ;;  %v243_v62 = vld [vmem:[%s1312_s5 + $0x60] sm:$0xff]  ;;  %v244_v63 = vld [vmem:[%s1312_s5 + $0x68] sm:$0xff]  ;;  %v245_v1 = vld [vmem:[%s1312_s5 + $0x70] sm:$0xff] }
   0xe   :  { %v329_v2 = vld [vmem:[%s1314_s7 + $0x8] sm:$0xff]  ;;  %v335_v3 = vld [vmem:[%s1314_s7 + $0x38] sm:$0xff]  ;;  %v330_v8 = vld [vmem:[%s1314_s7 + $0x10] sm:$0xff] }
   0xf   :  { %v828_v4 = vpack.c.bf16 %v335_v3, %v329_v2  ;;  %v331_v5 = vld [vmem:[%s1314_s7 + $0x18] sm:$0xff]  ;;  %v337_v6 = vld [vmem:[%s1314_s7 + $0x48] sm:$0xff]  ;;  %v336_v9 = vld [vmem:[%s1314_s7 + $0x40] sm:$0xff] }
  0x10   :  { %788 = vmatpush1.bf16.msra.mxu0 %v787_v13  ;;  %812 = vmatpush3.bf16.msra.mxu1 %v811_v40  ;;  %v848_v7 = vpack.c.bf16 %v337_v6, %v331_v5  ;;  %v850_v10 = vpack.c.bf16 %v336_v9, %v330_v8  ;;  %v343_v11 = vld [vmem:[%s1314_s7 + $0x78] sm:$0xff]  ;;  %v349_v12 = vld [vmem:[%s1314_s7 + $0xa8] sm:$0xff]  ;;  %v342_v13 = vld [vmem:[%s1314_s7 + $0x70] sm:$0xff] }
  0x11   :  { %789 = vmatprep.subr.bf16.mxu0 %v892_v0  ;;  %813 = vmatprep.subr.bf16.mxu1 %v892_v0  ;;  %v852_v14 = vpack.c.bf16 %v349_v12, %v343_v11  ;;  %v348_v15 = vld [vmem:[%s1314_s7 + $0xa0] sm:$0xff]  ;;  %v355_v17 = vld [vmem:[%s1314_s7 + $0xd8] sm:$0xff]  ;;  %v361_v18 = vld [vmem:[%s1314_s7 + $0x108] sm:$0xff] }
  0x12   :  { %v856_v20 = vpack.c.bf16 %v361_v18, %v355_v17  ;;  %v360_v21 = vld [vmem:[%s1314_s7 + $0x100] sm:$0xff]  ;;  %v367_v23 = vld [vmem:[%s1314_s7 + $0x138] sm:$0xff]  ;;  %v373_v24 = vld [vmem:[%s1314_s7 + $0x168] sm:$0xff] }
  0x13   :  { %v860_v26 = vpack.c.bf16 %v373_v24, %v367_v23  ;;  %v372_v27 = vld [vmem:[%s1314_s7 + $0x160] sm:$0xff]  ;;  %v334_v35 = vld [vmem:[%s1314_s7 + $0x30] sm:$0xff]  ;;  %v341_v37 = vld [vmem:[%s1314_s7 + $0x68] sm:$0xff] }
  0x14   :  { %791 = vmatpush1.bf16.msra.mxu0 %v790_v16  ;;  %815 = vmatpush3.bf16.msra.mxu1 %v814_v43  ;;  %v854_v16 = vpack.c.bf16 %v348_v15, %v342_v13  ;;  %v704_v33 = vld [vmem:[%s1315_s4] ss:$0 sm:$0xff]  ;;  %v347_v38 = vld [vmem:[%s1314_s7 + $0x98] sm:$0xff]  ;;  %v346_v45 = vld [vmem:[%s1314_s7 + $0x90] sm:$0xff] }
  0x15   :  { %792 = vmatprep.subr.bf16.mxu0 %v892_v0  ;;  %816 = vmatprep.subr.bf16.mxu1 %v892_v0  ;;  %v832_v43 = vpack.c.bf16 %v347_v38, %v341_v37  ;;  %v340_v44 = vld [vmem:[%s1314_s7 + $0x60] sm:$0xff]  ;;  %v359_v47 = vld [vmem:[%s1314_s7 + $0xf8] sm:$0xff]  ;;  %v358_v51 = vld [vmem:[%s1314_s7 + $0xf0] sm:$0xff] }
  0x16   :  { %v834_v48 = vpack.c.bf16 %v346_v45, %v340_v44  ;;  %v352_v50 = vld [vmem:[%s1314_s7 + $0xc0] sm:$0xff]  ;;  %v333_v5 = vld [vmem:[%s1314_s7 + $0x28] sm:$0xff]  ;;  %v339_v6 = vld [vmem:[%s1314_s7 + $0x58] sm:$0xff]  ;;  %v396_v45 = vlaneseq }
  0x17   :  { %v384_v2 = vld [vmem:[%s1314_s7 + $0x1c0] sm:$0xff]  ;;  %v391_v8 = vld [vmem:[%s1314_s7 + $0x1f8] sm:$0xf]  ;;  %v868_v9 = vpack.c.bf16 %v339_v6, %v333_v5  ;;  %v338_v13 = vld [vmem:[%s1314_s7 + $0x50] sm:$0xff] }
  0x18   :  { %794 = vmatpush1.bf16.msra.mxu0 %v793_v19  ;;  %818 = vmatpush3.bf16.msra.mxu1 %v817_v46  ;;  %v354_v19 = vld [vmem:[%s1314_s7 + $0xd0] sm:$0xff]  ;;  %v353_v46 = vld [vmem:[%s1314_s7 + $0xc8] sm:$0xff]  ;;  %v706_v11 = vld [vmem:[%s1316_s6] ss:$0 sm:$0xff] }
  0x19   :  { %795 = vmatprep.subr.bf16.mxu0 %v892_v0  ;;  %819 = vmatprep.subr.bf16.mxu1 %v892_v0  ;;  %v332_v12 = vld [vmem:[%s1314_s7 + $0x20] sm:$0xff]  ;;  %v345_v15 = vld [vmem:[%s1314_s7 + $0x88] sm:$0xff]  ;;  %v350_v23 = vld [vmem:[%s1314_s7 + $0xb0] sm:$0xff] }
  0x1a   :  { %v357_v24 = vld [vmem:[%s1314_s7 + $0xe8] sm:$0xff]  ;;  %v387_v37 = vld [vmem:[%s1314_s7 + $0x1d8] sm:$0xff]  ;;  %v392_v44 = vld [vmem:[%s1314_s7 + $0x200] sm:$0xf] }
  0x1c   :  { %797 = vmatpush1.bf16.msra.mxu0 %v796_v22  ;;  %821 = vmatpush3.bf16.msra.mxu1 %v820_v49  ;;  %v858_v22 = vpack.c.bf16 %v360_v21, %v354_v19  ;;  %v836_v49 = vpack.c.bf16 %v359_v47, %v353_v46  ;;  %v870_v19 = vpack.c.bf16 %v338_v13, %v332_v12  ;;  %v397_v46 = vshrl.u32 %v396_v45, 7 }
  0x1d   :  { %798 = vmatprep.subr.bf16.mxu0 %v892_v0  ;;  %822 = vmatprep.subr.bf16.mxu1 %v892_v0 }
  0x1e   :  { %v398_v47 = vsub.s32 0, %v397_v46 }
  0x20   :  { %800 = vmatpush1.bf16.msra.mxu0 %v799_v25  ;;  %824 = vmatpush3.bf16.msra.mxu1 %v823_v52  ;;  %v366_v25 = vld [vmem:[%s1314_s7 + $0x130] sm:$0xff]  ;;  %v365_v52 = vld [vmem:[%s1314_s7 + $0x128] sm:$0xff] }
  0x21   :  { %801 = vmatprep.subr.bf16.mxu0 %v892_v0  ;;  %825 = vmatprep.subr.bf16.mxu1 %v892_v0 }
  0x24   :  { %803 = vmatpush1.bf16.msra.mxu0 %v802_v28  ;;  %v862_v28 = vpack.c.bf16 %v372_v27, %v366_v25  ;;  %v363_v25 = vld [vmem:[%s1314_s7 + $0x118] sm:$0xff] }
  0x25   :  { %104 = vmatprep.subr.mxu0 %v893_v29  ;;  %v876_v27 = vpack.c.bf16 %v363_v25, %v357_v24 }
  0x28   :  { %702 = vmatpush1.msk.msra.mxu0 %vm64_vm1, %v52_v30  ;;  %v379_v30 = vld [vmem:[%s1314_s7 + $0x198] sm:$0xff] }
  0x29   :  { %133 = vmatmul.mubr.f32.vlgmr.msra.gmra.mrb[0].mxu0 %v32_v31  ;;  %804 = vmatprep.subr.bf16.mxu0 %v892_v0  ;;  %v826_v0 = vpack.c.bf16 %v244_v63, %v243_v62  ;;  %v385_v31 = vld [vmem:[%s1314_s7 + $0x1c8] sm:$0xff]  ;;  %v376_v62 = vld [vmem:[%s1314_s7 + $0x180] sm:$0xff]  ;;  %v382_v63 = vld [vmem:[%s1314_s7 + $0x1b0] sm:$0xff] }
  0x2a   :  { %806 = vmatpush3.bf16.msra.mxu0 %v805_v34  ;;  %741 = vmatprep.mubr.msk.f32.mxu0 %vm894_vm2, %v893_v29  ;;  %v864_v32 = vpack.c.bf16 %v385_v31, %v379_v30  ;;  %v328_v34 = vld [vmem:[%s1314_s7] sm:$0xff]  ;;  %v362_v30 = vld [vmem:[%s1314_s7 + $0x110] sm:$0xff]  ;;  %v369_v31 = vld [vmem:[%s1314_s7 + $0x148] sm:$0xff] }
  0x2b   :  { %827 = vmatpush3.bf16.msra.mxu1 %v826_v0  ;;  %849 = vmatprep.subr.bf16.mxu0 %v848_v7  ;;  %v830_v41 = vpack.c.bf16 %v334_v35, %v328_v34  ;;  %v846_v0 = vpack.c.bf16 %v382_v63, %v376_v62  ;;  %v388_v7 = vld [vmem:[%s1314_s7 + $0x1e0] sm:$0xf]  ;;  %v374_v35 = vld [vmem:[%s1314_s7 + $0x170] sm:$0xff] }
  0x2c   :  { %772 = vmatprep.subr.mxu1 %v893_v29  ;;  %v368_v34 = vld [vmem:[%s1314_s7 + $0x140] sm:$0xff] }
  0x2d   :  { %v882_v38 = vpack.c.bf16 %v374_v35, %v368_v34 }
  0x2f   :  { %773 = vmatpush3.msra.mxu1 %v245_v1  ;;  %v378_v1 = vld [vmem:[%s1314_s7 + $0x190] sm:$0xff] }
  0x30   :  { %829 = vmatprep.subr.bf16.mxu1 %v828_v4  ;;  %v866_v3 = vpack.c.bf16 %v384_v2, %v378_v1  ;;  %v389_v4 = vld [vmem:[%s1314_s7 + $0x1e8] sm:$0xf] }
  0xfc   :  { %v134_v54 = vpop.f32.mrb[0].mxu0 }
  0xfd   :  { %v135_v55 = vadd.f32 %v701_v53, %v134_v54  ;;  %v136_v56 = vpop.f32.mrb[1].mxu0  ;;  %v371_v53 = vld [vmem:[%s1314_s7 + $0x158] sm:$0xff]  ;;  %v838_v54 = vpack.c.bf16 %v358_v51, %v352_v50  ;;  %v402_v50 = vsub.s32 1, %v397_v46  ;;  %v895_v51 = vmov 1983009808  }
  0xfe   :  { %v364_v56 = vld [vmem:[%s1314_s7 + $0x120] sm:$0xff] }
  0xff   :  { %v138_v57 = vmax.f32 %v135_v55, 0.0  ;;  %v840_v55 = vpack.c.bf16 %v371_v53, %v365_v52  ;;  %v671_v52 = vunpack.c.l.s4 %v895_v51  ;;  %v410_v53 = vsub.s32 3, %v397_v46 }
 0x101   :  { %v140_v58 = vrot.slane %v138_v57, 2 }
 0x103   :  { %v142_v59 = vmax.f32 %v138_v57, %v140_v58  ;;  %v370_v57 = vld [vmem:[%s1314_s7 + $0x150] sm:$0xff]  ;;  %v377_v58 = vld [vmem:[%s1314_s7 + $0x188] sm:$0xff] }
 0x105   :  { %v144_v60 = vrot.slane %v142_v59, 4 }
 0x107   :  { %v146_v61 = vmax.f32 %v142_v59, %v144_v60  ;;  %v383_v59 = vld [vmem:[%s1314_s7 + $0x1b8] sm:$0xff]  ;;  %v842_v60 = vpack.c.bf16 %v370_v57, %v364_v56  ;;  %v672_v57 = vunpack.c.0.s8 %v671_v52 }
 0x109   :  { %742 = vmatmul.mubr.msk.f32.vlgmr.msra.gmra.mrb[2].mxu0 %vm156_vm3, %v146_v61  ;;  %v844_v61 = vpack.c.bf16 %v383_v59, %v377_v58  ;;  %v675_v2 = vsub.s32 %v672_v57, %v397_v46 }
 0x10a   :  { %584 = vmatprep.mubr.f32.mxu0 %v893_v29  ;;  %851 = vmatpush1.bf16.msra.mxu0 %v850_v10  ;;  %v390_v10 = vld [vmem:[%s1314_s7 + $0x1f0] sm:$0xf] }
 0x10b   :  { %853 = vmatprep.subr.bf16.mxu0 %v852_v14 }
 0x10e   :  { %855 = vmatpush1.bf16.msra.mxu0 %v854_v16  ;;  %v351_v16 = vld [vmem:[%s1314_s7 + $0xb8] sm:$0xff] }
 0x10f   :  { %857 = vmatprep.subr.bf16.mxu0 %v856_v20  ;;  %v872_v21 = vpack.c.bf16 %v351_v16, %v345_v15 }
 0x112   :  { %859 = vmatpush1.bf16.msra.mxu0 %v858_v22  ;;  %v344_v22 = vld [vmem:[%s1314_s7 + $0x80] sm:$0xff] }
 0x113   :  { %861 = vmatprep.subr.bf16.mxu0 %v860_v26  ;;  %v874_v26 = vpack.c.bf16 %v350_v23, %v344_v22 }
 0x116   :  { %863 = vmatpush1.bf16.msra.mxu0 %v862_v28  ;;  %v356_v28 = vld [vmem:[%s1314_s7 + $0xe0] sm:$0xff] }
 0x117   :  { %865 = vmatprep.subr.bf16.mxu0 %v864_v32  ;;  %v375_v32 = vld [vmem:[%s1314_s7 + $0x178] sm:$0xff] }
 0x11a   :  { %867 = vmatpush1.bf16.msra.mxu0 %v866_v3 }
 0x11b   :  { %711 = vmatprep.subr.msk.mxu0 %vm430_vm5, %v391_v8 }
 0x11e   :  { %712 = vmatpush1.msk.msra.mxu0 %vm430_vm5, %v390_v10  ;;  %v418_v10 = vsub.s32 5, %v397_v46 }
 0x1dc   :  { %v226_v36 = vpop.f32.mrb[2].mxu0 }
 0x1dd   :  { %v227_v39 = vadd.f32 %v704_v33, %v226_v36  ;;  %v743_v40 = vpop.f32.mrb[3].mxu0  ;;  %v880_v33 = vpack.c.bf16 %v375_v32, %v369_v31  ;;  %v381_v36 = vld [vmem:[%s1314_s7 + $0x1a8] sm:$0xff] }
 0x1de   :  { %v380_v40 = vld [vmem:[%s1314_s7 + $0x1a0] sm:$0xff] }
 0x1df   :  { %v230_v42 = vmax.f32 %v227_v39, 0.0  ;;  %v884_v39 = vpack.c.bf16 %v387_v37, %v381_v36 }
 0x1e1   :  { %775 = vmatmul.mubr.msk.f32.vlgmr.msra.gmra.mrb[0].mxu1 %vm253_vm4, %v230_v42 }
 0x1e2   :  { %831 = vmatpush1.bf16.msra.mxu1 %v830_v41  ;;  %513 = vmatprep.mubr.f32.mxu1 %v893_v29  ;;  %v386_v41 = vld [vmem:[%s1314_s7 + $0x1d0] sm:$0xff] }
 0x1e3   :  { %833 = vmatprep.subr.bf16.mxu1 %v832_v43  ;;  %v886_v42 = vpack.c.bf16 %v386_v41, %v380_v40  ;;  %v393_v43 = vld [vmem:[%s1314_s7 + $0x208] sm:$0xf] }
 0x1e6   :  { %835 = vmatpush1.bf16.msra.mxu1 %v834_v48  ;;  %v406_v48 = vsub.s32 2, %v397_v46 }
 0x1e7   :  { %837 = vmatprep.subr.bf16.mxu1 %v836_v49  ;;  %v394_v49 = vld [vmem:[%s1317_s8] sm:$0x3f] }
 0x1e8   :  { %v403_v56 = vrot.slane %v394_v49, %v402_v50  ;;  %v411_v58 = vrot.slane %v394_v49, %v410_v53  ;;  %v419_v12 = vrot.slane %v394_v49, %v418_v10 }
 0x1ea   :  { %839 = vmatpush1.bf16.msra.mxu1 %v838_v54  ;;  %v399_v54 = vrot.slane %v394_v49, %v398_v47 }
 0x1eb   :  { %841 = vmatprep.subr.bf16.mxu1 %v840_v55  ;;  %v407_v55 = vrot.slane %v394_v49, %v406_v48 }
 0x1ee   :  { %843 = vmatpush1.bf16.msra.mxu1 %v842_v60 }
 0x1ef   :  { %845 = vmatprep.subr.bf16.mxu1 %v844_v61 }
 0x1f2   :  { %847 = vmatpush1.bf16.msra.mxu1 %v846_v0 }
 0x1f3   :  { %708 = vmatprep.subr.msk.mxu1 %vm430_vm5, %v389_v4 }
 0x1f6   :  { %709 = vmatpush1.msk.msra.mxu1 %vm430_vm5, %v388_v7 }
 0x1f7   :  { %869 = vmatprep.subr.bf16.mxu1 %v868_v9  ;;  %v414_v9 = vsub.s32 4, %v397_v46 }
 0x2b4   :  { %v323_v14 = vpop.f32.mrb[0].mxu1 }
 0x2b5   :  { %v324_v17 = vadd.f32 %v706_v11, %v323_v14  ;;  %v776_v18 = vpop.f32.mrb[1].mxu1  ;;  %v415_v11 = vrot.slane %v394_v49, %v414_v9 }
 0x2b7   :  { %v327_v20 = vmax.f32 %v324_v17, 0.0 }
 0x2b9   :  { %710 = vmatmul.mubr.msk.f32.vlgmr.msra.gmra.mrb[2].mxu1 %vm426_vm6, %v327_v20  ;;  %713 = vmatmul.mubr.msk.f32.vlgmr.msra.gmra.mrb[4].mxu0 %vm426_vm6, %v327_v20 }
 0x2ba   :  { %871 = vmatpush1.bf16.msra.mxu1 %v870_v19  ;;  %655 = vmatprep.mubr.f32.mxu1 %v893_v29  ;;  %v878_v29 = vpack.c.bf16 %v362_v30, %v356_v28 }
 0x2bb   :  { %873 = vmatprep.subr.bf16.mxu1 %v872_v21 }
 0x2be   :  { %875 = vmatpush1.bf16.msra.mxu1 %v874_v26 }
 0x2bf   :  { %877 = vmatprep.subr.bf16.mxu1 %v876_v27 }
 0x2c2   :  { %879 = vmatpush1.bf16.msra.mxu1 %v878_v29 }
 0x2c3   :  { %881 = vmatprep.subr.bf16.mxu1 %v880_v33 }
 0x2c6   :  { %883 = vmatpush1.bf16.msra.mxu1 %v882_v38 }
 0x2c7   :  { %885 = vmatprep.subr.bf16.mxu1 %v884_v39 }
 0x2ca   :  { %887 = vmatpush1.bf16.msra.mxu1 %v886_v42 }
 0x2cb   :  { %714 = vmatprep.subr.msk.mxu1 %vm430_vm5, %v393_v43 }
 0x2ce   :  { %715 = vmatpush1.msk.msra.mxu1 %vm430_vm5, %v392_v44 }
 0x2cf   :  { %716 = vmatmul.mubr.msk.f32.vlgmr.msra.gmra.mrb[4].mxu1 %vm426_vm6, %v327_v20 }
 0x38c   :  { %v515_v59 = vpop.f32.mrb[2].mxu1  ;;  %v586_v60 = vpop.f32.mrb[4].mxu0 }
 0x38d   :  { %v516_v61 = vadd.f32 %v515_v59, %v399_v54  ;;  %v587_v62 = vadd.f32 %v586_v60, %v407_v55  ;;  %v517_v63 = vpop.f32.mrb[3].mxu1  ;;  %v588_v0 = vpop.f32.mrb[5].mxu0 }
 0x38e   :  { %v518_v1 = vadd.f32 %v517_v63, %v403_v56  ;;  %v589_v3 = vadd.f32 %v588_v0, %v411_v58 }
 0x390   :  { %v668_v4 = vcombine.low %v516_v61, %v518_v1  ;;  %v669_v5 = vcombine.low %v587_v62, %v589_v3 }
 0x392   :  { %v676_v6 = vrot.slane %v668_v4, %v675_v2  ;;  %v683_v7 = vrot.slane %v669_v5, %v675_v2 }
 0x394   :  { %v684_v8 = vcombine.low %v676_v6, %v683_v7 }
 0x396   :  { %695 = vst [vmem:[%s1318_s9] sm:$0xff] %v684_v8 }
 0x3a2   :  { %v657_v13 = vpop.f32.mrb[4].mxu1 }
 0x3a3   :  { %v658_v14 = vadd.f32 %v657_v13, %v415_v11  ;;  %v659_v15 = vpop.f32.mrb[5].mxu1 }
 0x3a4   :  { %v660_v16 = vadd.f32 %v659_v15, %v419_v12 }
 0x3a6   :  { %v685_v17 = vcombine.low %v658_v14, %v660_v16 }
 0x3a8   :  { %717 = vst.sshfl [vmem:[%s1318_s9 + $0x8] sm:$0x33 pattern:$0x76325410] %v685_v17 }

// kernel: bd_transformer_lenet.7
= control target key start
LH: loop header
LB: loop body
LE: loop exit
PB: predicated region body
PF: predicated region fallthrough
CT: control target
= control target key end

     0   :  { %v37_v1 = vlaneseq  ;;  %v2901_v4 = vmov 1983009808   ;;  %s2902_s30 = smov 32   ;;  %v2903_v13 = vmov 0   ;;  %vm70_vm0 = vcmask 261120   ;;  %s3987_s0 = inlined_call_operand.vmem [shape: f32[2,32], index: 0, kind: input, shape index: {}]   ;;  %s3988_s1 = inlined_call_operand.vmem [shape: f32[2,768], index: 1, kind: input, shape index: {}]   ;;  %s3989_s2 = inlined_call_operand.vmem [shape: bf16[800,512], index: 2, kind: input, shape index: {}]   ;;  %s3990_s3 = inlined_call_operand.vmem [shape: f32[1,512], index: 3, kind: input, shape index: {}]   ;;  %s3991_s4 = inlined_call_operand.vmem [shape: f32[1,512], index: 4, kind: input, shape index: {}]   ;;  %s3992_s5 = inlined_call_operand.vmem [shape: f32[800,2], index: 5, kind: input, shape index: {}]   ;;  %s3993_s6 = inlined_call_operand.vmem [shape: f32[1,2], index: 6, kind: input, shape index: {}]   ;;  %s3994_s7 = inlined_call_operand.hbm [shape: f32[2,2], index: 7, kind: output, shape index: {}]  }
   0x1   :  { %v2103_v0 = vld.sshfl [vmem:[%s3988_s1 + $0x8] sm:$0x33 pattern:$0x76325410]  ;;  %v2565_v3 = vld [vmem:[%s3989_s2 + $0x4] ss:$16 sps:$4 sm:$0xff]   ;;  %v35_v5 = vunpack.c.l.s4 %v2901_v4  ;;  %1471 = vmatprep.mubr.bf16.mxu1 %v2903_v13 }
   0x2   :  { %v57_v2 = vcombine.high %v2103_v0, %v2103_v0  ;;  %v2954_v6 = vshrl.u32 %v37_v1, 7  ;;  %v2567_v7 = vld [vmem:[%s3989_s2] ss:$16 sps:$4 sm:$0xff]   ;;  %1316 = vmatprep.subr.bf16.mxu0 %v2565_v3  ;;  %v2568_v9 = vld [vmem:[%s3989_s2 + $0x24] ss:$16 sps:$4 sm:$0xff]  }
   0x3   :  { %v29_v8 = vld [vmem:[%s3988_s1] sm:$0xff]  ;;  %v36_v10 = vunpack.c.0.s8 %v35_v5  ;;  %1317 = vmatpush1.bf16.msra.mxu0 %v2567_v7  ;;  %v2615_v32 = vld [vmem:[%s3989_s2 + $0xc] ss:$16 sps:$4 sm:$0xff]   ;;  %v2613_v54 = vld [vmem:[%s3989_s2 + $0x8] ss:$16 sps:$4 sm:$0xff]  }
   0x4   :  { %68 = vrot.lane.b32.xlu0 %v57_v2, %s2902_s30  ;;  %v33_v11 = vcombine.high %v29_v8, %v29_v8  ;;  %v2570_v12 = vld [vmem:[%s3989_s2 + $0x20] ss:$16 sps:$4 sm:$0xff]   ;;  %1318 = vmatprep.subr.bf16.mxu0 %v2568_v9  ;;  %v2571_v14 = vld [vmem:[%s3989_s2 + $0x44] ss:$16 sps:$4 sm:$0xff]   ;;  %v2621_v55 = vld [vmem:[%s3989_s2 + $0x2c] ss:$16 sps:$4 sm:$0xff]  }
   0x5   :  { %v39_v15 = vsub.s32 %v36_v10, %v2954_v6  ;;  %v2573_v18 = vld [vmem:[%s3989_s2 + $0x40] ss:$16 sps:$4 sm:$0xff]   ;;  %v2574_v19 = vld [vmem:[%s3989_s2 + $0x64] ss:$16 sps:$4 sm:$0xff]   ;;  %v2619_v57 = vld [vmem:[%s3989_s2 + $0x28] ss:$16 sps:$4 sm:$0xff]  }
   0x6   :  { %v2576_v22 = vld [vmem:[%s3989_s2 + $0x60] ss:$16 sps:$4 sm:$0xff]   ;;  %v2577_v23 = vld [vmem:[%s3989_s2 + $0x84] ss:$16 sps:$4 sm:$0xff]   ;;  %v2627_v59 = vld [vmem:[%s3989_s2 + $0x4c] ss:$16 sps:$4 sm:$0xff]  }
   0x7   :  { %v40_v16 = vrot.slane %v29_v8, %v39_v15  ;;  %v47_v17 = vrot.slane %v33_v11, %v39_v15  ;;  %1319 = vmatpush1.bf16.msra.mxu0 %v2570_v12  ;;  %v2579_v24 = vld [vmem:[%s3989_s2 + $0x80] ss:$16 sps:$4 sm:$0xff]   ;;  %v2580_v25 = vld [vmem:[%s3989_s2 + $0xa4] ss:$16 sps:$4 sm:$0xff]  }
   0x8   :  { %1320 = vmatprep.subr.bf16.mxu0 %v2571_v14  ;;  %v2601_v26 = vld [vmem:[%s3989_s2 + $0x604] ss:$16 sps:$4 sm:$0xff]   ;;  %v2603_v27 = vld [vmem:[%s3989_s2 + $0x600] ss:$16 sps:$4 sm:$0xff]  }
   0x9   :  { %58 = vrot.lane.b32.xlu0 %v40_v16, %s2902_s30  ;;  %v48_v20 = vcombine.high %v40_v16, %v40_v16  ;;  %v49_v21 = vcombine.high %v47_v17, %v47_v17  ;;  %v2582_v28 = vld [vmem:[%s3989_s2 + $0xa0] ss:$16 sps:$4 sm:$0xff]   ;;  %1439 = vmatprep.subr.bf16.mxu1 %v2601_v26  ;;  %v2583_v29 = vld [vmem:[%s3989_s2 + $0xc4] ss:$16 sps:$4 sm:$0xff]  }
   0xa   :  { %v2607_v30 = vld [vmem:[%s3989_s2 + $0x624] ss:$16 sps:$4 sm:$0xff]   ;;  %1440 = vmatpush1.bf16.msra.mxu1 %v2603_v27  ;;  %v2609_v31 = vld [vmem:[%s3989_s2 + $0x620] ss:$16 sps:$4 sm:$0xff]  }
   0xb   :  { %60 = vrot.lane.b32.xlu1 %v48_v20, %s2902_s30  ;;  %1321 = vmatpush1.bf16.msra.mxu0 %v2573_v18  ;;  %v2585_v33 = vld [vmem:[%s3989_s2 + $0xc0] ss:$16 sps:$4 sm:$0xff]   ;;  %v2586_v34 = vld [vmem:[%s3989_s2 + $0xe4] ss:$16 sps:$4 sm:$0xff]  }
   0xc   :  { %1322 = vmatprep.subr.bf16.mxu0 %v2574_v19  ;;  %1441 = vmatprep.subr.bf16.mxu1 %v2607_v30  ;;  %v2588_v35 = vld [vmem:[%s3989_s2 + $0xe0] ss:$16 sps:$4 sm:$0xff]   ;;  %v2589_v36 = vld [vmem:[%s3989_s2 + $0x104] ss:$16 sps:$4 sm:$0xff]  }
   0xd   :  { %64 = vrot.lane.b32.xlu0 %v49_v21, %s2902_s30  ;;  %v2591_v37 = vld [vmem:[%s3989_s2 + $0x100] ss:$16 sps:$4 sm:$0xff]   ;;  %v2592_v38 = vld [vmem:[%s3989_s2 + $0x124] ss:$16 sps:$4 sm:$0xff]  }
   0xe   :  { %1442 = vmatpush1.bf16.msra.mxu1 %v2609_v31  ;;  %v2594_v39 = vld [vmem:[%s3989_s2 + $0x120] ss:$16 sps:$4 sm:$0xff]   ;;  %v2595_v40 = vld [vmem:[%s3989_s2 + $0x144] ss:$16 sps:$4 sm:$0xff]  }
   0xf   :  { %62 = vrot.lane.b32.xlu1 %v47_v17, %s2902_s30  ;;  %1323 = vmatpush1.bf16.msra.mxu0 %v2576_v22  ;;  %v2597_v41 = vld [vmem:[%s3989_s2 + $0x140] ss:$16 sps:$4 sm:$0xff]   ;;  %v2598_v42 = vld [vmem:[%s3989_s2 + $0x164] ss:$16 sps:$4 sm:$0xff]  }
  0x10   :  { %1324 = vmatprep.subr.bf16.mxu0 %v2577_v23  ;;  %1480 = vmatprep.subr.bf16.mxu1 %v2615_v32  ;;  %v2600_v43 = vld [vmem:[%s3989_s2 + $0x160] ss:$16 sps:$4 sm:$0xff]   ;;  %v2604_v44 = vld [vmem:[%s3989_s2 + $0x184] ss:$16 sps:$4 sm:$0xff]  }
  0x11   :  { %v2606_v45 = vld [vmem:[%s3989_s2 + $0x180] ss:$16 sps:$4 sm:$0xff]   ;;  %v2610_v46 = vld [vmem:[%s3989_s2 + $0x1a4] ss:$16 sps:$4 sm:$0xff]  }
  0x12   :  { %v2612_v47 = vld [vmem:[%s3989_s2 + $0x1a0] ss:$16 sps:$4 sm:$0xff]   ;;  %v2616_v48 = vld [vmem:[%s3989_s2 + $0x1c4] ss:$16 sps:$4 sm:$0xff]  }
  0x13   :  { %66 = vrot.lane.b32.xlu1 %v2103_v0, %s2902_s30  ;;  %1325 = vmatpush1.bf16.msra.mxu0 %v2579_v24  ;;  %v2618_v49 = vld [vmem:[%s3989_s2 + $0x1c0] ss:$16 sps:$4 sm:$0xff]   ;;  %v2622_v50 = vld [vmem:[%s3989_s2 + $0x1e4] ss:$16 sps:$4 sm:$0xff]  }
  0x14   :  { %1326 = vmatprep.subr.bf16.mxu0 %v2580_v25  ;;  %v2624_v51 = vld [vmem:[%s3989_s2 + $0x1e0] ss:$16 sps:$4 sm:$0xff]   ;;  %v2630_v52 = vld [vmem:[%s3989_s2 + $0x204] ss:$16 sps:$4 sm:$0xff]  }
  0x15   :  { %v28_v58 = vld [vmem:[%s3987_s0] sm:$0x3] }
  0x17   :  { %1327 = vmatpush1.bf16.msra.mxu0 %v2582_v28 }
  0x18   :  { %1328 = vmatprep.subr.bf16.mxu0 %v2583_v29 }
  0x1b   :  { %1329 = vmatpush1.bf16.msra.mxu0 %v2585_v33 }
  0x1c   :  { %1330 = vmatprep.subr.bf16.mxu0 %v2586_v34 }
  0x1f   :  { %1331 = vmatpush1.bf16.msra.mxu0 %v2588_v35 }
  0x20   :  { %1332 = vmatprep.subr.bf16.mxu0 %v2589_v36 }
  0x23   :  { %1333 = vmatpush1.bf16.msra.mxu0 %v2591_v37 }
  0x24   :  { %1334 = vmatprep.subr.bf16.mxu0 %v2592_v38 }
  0x27   :  { %1335 = vmatpush1.bf16.msra.mxu0 %v2594_v39 }
  0x28   :  { %1336 = vmatprep.subr.bf16.mxu0 %v2595_v40 }
  0x2b   :  { %1337 = vmatpush1.bf16.msra.mxu0 %v2597_v41 }
  0x2c   :  { %1338 = vmatprep.subr.bf16.mxu0 %v2598_v42 }
  0x2f   :  { %1339 = vmatpush1.bf16.msra.mxu0 %v2600_v43 }
  0x30   :  { %1340 = vmatprep.subr.bf16.mxu0 %v2604_v44 }
  0x33   :  { %1341 = vmatpush1.bf16.msra.mxu0 %v2606_v45 }
  0x34   :  { %1342 = vmatprep.subr.bf16.mxu0 %v2610_v46 }
  0x37   :  { %1343 = vmatpush1.bf16.msra.mxu0 %v2612_v47 }
  0x38   :  { %1344 = vmatprep.subr.bf16.mxu0 %v2616_v48 }
  0x3b   :  { %1345 = vmatpush1.bf16.msra.mxu0 %v2618_v49 }
  0x3c   :  { %1346 = vmatprep.subr.bf16.mxu0 %v2622_v50 }
  0x3f   :  { %1347 = vmatpush1.bf16.msra.mxu0 %v2624_v51 }
  0x40   :  { %1357 = vmatprep.subr.bf16.mxu0 %v2630_v52 }
  0x76   :  { %v3078_v53 = vpop.permute.xlu0 %68 }
  0x77   :  { %v3088_v56 = vpack.c.bf16 %v3078_v53, %v3078_v53 }
  0x79   :  { %2304 = vmatmul.mubr.msk.bf16.vlgmr.msra.gmra.mrb[0].mxu1 %vm70_vm0, %v3088_v56 }
  0x7a   :  { %1481 = vmatpush1.bf16.msra.mxu1 %v2613_v54 }
  0x7b   :  { %1482 = vmatprep.subr.bf16.mxu1 %v2621_v55 }
  0x7c   :  { %12 = vsyncpa [#allocation3], 0  ;;  %v59_v60 = vpop.permute.xlu0 %58  ;;  %v2625_v62 = vld [vmem:[%s3989_s2 + $0x48] ss:$16 sps:$4 sm:$0xff]   ;;  %v2633_v0 = vld [vmem:[%s3989_s2 + $0x6c] ss:$16 sps:$4 sm:$0xff]  }
  0x7d   :  { %v3102_v61 = vsel %vm70_vm0, %v28_v58, %v59_v60  ;;  %v3107_v63 = vpop.permute.xlu1 %60  ;;  %v2628_v4 = vld [vmem:[%s3989_s2 + $0x200] ss:$16 sps:$4 sm:$0xff]   ;;  %v2631_v7 = vld [vmem:[%s3989_s2 + $0x68] ss:$16 sps:$4 sm:$0xff]   ;;  %v2636_v8 = vld [vmem:[%s3989_s2 + $0x224] ss:$16 sps:$4 sm:$0xff]  }
  0x7e   :  { %1483 = vmatpush1.bf16.msra.mxu1 %v2619_v57  ;;  %v3114_v1 = vpack.c.bf16 %v3102_v61, %v3102_v61  ;;  %v3118_v2 = vsel %vm70_vm0, %v59_v60, %v3107_v63  ;;  %v2639_v10 = vld [vmem:[%s3989_s2 + $0x8c] ss:$16 sps:$4 sm:$0xff]   ;;  %v2634_v12 = vld [vmem:[%s3989_s2 + $0x220] ss:$16 sps:$4 sm:$0xff]   ;;  %v2637_v15 = vld [vmem:[%s3989_s2 + $0x88] ss:$16 sps:$4 sm:$0xff]  }
  0x7f   :  { %1484 = vmatprep.subr.bf16.mxu1 %v2627_v59  ;;  %v85_v3 = vpack.c.bf16 %v3118_v2, %v3118_v2  ;;  %v2642_v16 = vld [vmem:[%s3989_s2 + $0x244] ss:$16 sps:$4 sm:$0xff]   ;;  %v2645_v17 = vld [vmem:[%s3989_s2 + $0xac] ss:$16 sps:$4 sm:$0xff]   ;;  %v2640_v18 = vld [vmem:[%s3989_s2 + $0x240] ss:$16 sps:$4 sm:$0xff]  }
  0x80   :  { %v3125_v5 = vpop.permute.xlu0 %64  ;;  %v2643_v19 = vld [vmem:[%s3989_s2 + $0xa8] ss:$16 sps:$4 sm:$0xff]   ;;  %v2648_v20 = vld [vmem:[%s3989_s2 + $0x264] ss:$16 sps:$4 sm:$0xff]   ;;  %v2651_v21 = vld [vmem:[%s3989_s2 + $0xcc] ss:$16 sps:$4 sm:$0xff]  }
  0x81   :  { %1348 = vmatprep.mubr.bf16.mxu0 %v85_v3  ;;  %v3133_v9 = vpop.permute.xlu1 %62  ;;  %1512 = vmatprep.mubr.bf16.mxu1 %v85_v3  ;;  %v2646_v22 = vld [vmem:[%s3989_s2 + $0x260] ss:$16 sps:$4 sm:$0xff]   ;;  %v2649_v23 = vld [vmem:[%s3989_s2 + $0xc8] ss:$16 sps:$4 sm:$0xff]   ;;  %v2654_v24 = vld [vmem:[%s3989_s2 + $0x284] ss:$16 sps:$4 sm:$0xff]  }
  0x82   :  { %1485 = vmatpush1.bf16.msra.mxu1 %v2625_v62  ;;  %1349 = vmatmul.mubr.bf16.vlgmr.msra.gmra.mrb[0].mxu0 %v3114_v1  ;;  %v3142_v11 = vsel %vm70_vm0, %v3133_v9, %v3125_v5  ;;  %v2657_v25 = vld [vmem:[%s3989_s2 + $0xec] ss:$16 sps:$4 sm:$0xff]   ;;  %v2652_v26 = vld [vmem:[%s3989_s2 + $0x280] ss:$16 sps:$4 sm:$0xff]   ;;  %v2655_v27 = vld [vmem:[%s3989_s2 + $0xe8] ss:$16 sps:$4 sm:$0xff]  }
  0x83   :  { %1486 = vmatprep.subr.bf16.mxu1 %v2633_v0  ;;  %1358 = vmatpush1.bf16.msra.mxu0 %v2628_v4  ;;  %v3149_v14 = vpack.c.bf16 %v3142_v11, %v3142_v11  ;;  %v2660_v28 = vld [vmem:[%s3989_s2 + $0x2a4] ss:$16 sps:$4 sm:$0xff]   ;;  %v2663_v29 = vld [vmem:[%s3989_s2 + $0x10c] ss:$16 sps:$4 sm:$0xff]   ;;  %v2658_v30 = vld [vmem:[%s3989_s2 + $0x2a0] ss:$16 sps:$4 sm:$0xff]  }
  0x84   :  { %1359 = vmatprep.subr.bf16.mxu0 %v2636_v8  ;;  %v2661_v31 = vld [vmem:[%s3989_s2 + $0x108] ss:$16 sps:$4 sm:$0xff]   ;;  %v2666_v32 = vld [vmem:[%s3989_s2 + $0x2c4] ss:$16 sps:$4 sm:$0xff]   ;;  %v2669_v33 = vld [vmem:[%s3989_s2 + $0x12c] ss:$16 sps:$4 sm:$0xff]  }
  0x85   :  { %1389 = vmatprep.mubr.bf16.mxu0 %v3149_v14  ;;  %v2664_v34 = vld [vmem:[%s3989_s2 + $0x2c0] ss:$16 sps:$4 sm:$0xff]   ;;  %v2667_v35 = vld [vmem:[%s3989_s2 + $0x128] ss:$16 sps:$4 sm:$0xff]   ;;  %v2672_v36 = vld [vmem:[%s3989_s2 + $0x2e4] ss:$16 sps:$4 sm:$0xff]  }
  0x86   :  { %1487 = vmatpush1.bf16.msra.mxu1 %v2631_v7  ;;  %v2675_v37 = vld [vmem:[%s3989_s2 + $0x14c] ss:$16 sps:$4 sm:$0xff]   ;;  %v2670_v38 = vld [vmem:[%s3989_s2 + $0x2e0] ss:$16 sps:$4 sm:$0xff]   ;;  %v2673_v39 = vld [vmem:[%s3989_s2 + $0x148] ss:$16 sps:$4 sm:$0xff]  }
  0x87   :  { %1488 = vmatprep.subr.bf16.mxu1 %v2639_v10  ;;  %1360 = vmatpush1.bf16.msra.mxu0 %v2634_v12  ;;  %v2678_v40 = vld [vmem:[%s3989_s2 + $0x304] ss:$16 sps:$4 sm:$0xff]   ;;  %v2681_v41 = vld [vmem:[%s3989_s2 + $0x16c] ss:$16 sps:$4 sm:$0xff]   ;;  %v2676_v42 = vld [vmem:[%s3989_s2 + $0x300] ss:$16 sps:$4 sm:$0xff]  }
  0x88   :  { %1361 = vmatprep.subr.bf16.mxu0 %v2642_v16  ;;  %v2679_v43 = vld [vmem:[%s3989_s2 + $0x168] ss:$16 sps:$4 sm:$0xff]   ;;  %v2684_v44 = vld [vmem:[%s3989_s2 + $0x324] ss:$16 sps:$4 sm:$0xff]   ;;  %v2687_v45 = vld [vmem:[%s3989_s2 + $0x18c] ss:$16 sps:$4 sm:$0xff]  }
  0x89   :  { %v2682_v46 = vld [vmem:[%s3989_s2 + $0x320] ss:$16 sps:$4 sm:$0xff]   ;;  %v2685_v47 = vld [vmem:[%s3989_s2 + $0x188] ss:$16 sps:$4 sm:$0xff]   ;;  %v2690_v48 = vld [vmem:[%s3989_s2 + $0x344] ss:$16 sps:$4 sm:$0xff]  }
  0x8a   :  { %1489 = vmatpush1.bf16.msra.mxu1 %v2637_v15  ;;  %v2693_v49 = vld [vmem:[%s3989_s2 + $0x1ac] ss:$16 sps:$4 sm:$0xff]   ;;  %v2688_v50 = vld [vmem:[%s3989_s2 + $0x340] ss:$16 sps:$4 sm:$0xff]   ;;  %v2691_v51 = vld [vmem:[%s3989_s2 + $0x1a8] ss:$16 sps:$4 sm:$0xff]  }
  0x8b   :  { %1490 = vmatprep.subr.bf16.mxu1 %v2645_v17  ;;  %1362 = vmatpush1.bf16.msra.mxu0 %v2640_v18  ;;  %v2696_v52 = vld [vmem:[%s3989_s2 + $0x364] ss:$16 sps:$4 sm:$0xff]   ;;  %v2699_v54 = vld [vmem:[%s3989_s2 + $0x1cc] ss:$16 sps:$4 sm:$0xff]   ;;  %v2694_v55 = vld [vmem:[%s3989_s2 + $0x360] ss:$16 sps:$4 sm:$0xff]  }
  0x8c   :  { %1363 = vmatprep.subr.bf16.mxu0 %v2648_v20  ;;  %v2697_v57 = vld [vmem:[%s3989_s2 + $0x1c8] ss:$16 sps:$4 sm:$0xff]   ;;  %v2702_v58 = vld [vmem:[%s3989_s2 + $0x384] ss:$16 sps:$4 sm:$0xff]   ;;  %v2705_v59 = vld [vmem:[%s3989_s2 + $0x1ec] ss:$16 sps:$4 sm:$0xff]  }
  0x8d   :  { %v2700_v60 = vld [vmem:[%s3989_s2 + $0x380] ss:$16 sps:$4 sm:$0xff]   ;;  %v2703_v62 = vld [vmem:[%s3989_s2 + $0x1e8] ss:$16 sps:$4 sm:$0xff]   ;;  %v2708_v0 = vld [vmem:[%s3989_s2 + $0x3a4] ss:$16 sps:$4 sm:$0xff]  }
  0x8e   :  { %1491 = vmatpush1.bf16.msra.mxu1 %v2643_v19  ;;  %v2711_v3 = vld [vmem:[%s3989_s2 + $0x20c] ss:$16 sps:$4 sm:$0xff]   ;;  %v2706_v4 = vld [vmem:[%s3989_s2 + $0x3a0] ss:$16 sps:$4 sm:$0xff]   ;;  %v2709_v7 = vld [vmem:[%s3989_s2 + $0x208] ss:$16 sps:$4 sm:$0xff]  }
  0x8f   :  { %1492 = vmatprep.subr.bf16.mxu1 %v2651_v21  ;;  %1364 = vmatpush1.bf16.msra.mxu0 %v2646_v22  ;;  %v2714_v8 = vld [vmem:[%s3989_s2 + $0x3c4] ss:$16 sps:$4 sm:$0xff]   ;;  %v2717_v10 = vld [vmem:[%s3989_s2 + $0x22c] ss:$16 sps:$4 sm:$0xff]   ;;  %v2712_v12 = vld [vmem:[%s3989_s2 + $0x3c0] ss:$16 sps:$4 sm:$0xff]  }
  0x90   :  { %1365 = vmatprep.subr.bf16.mxu0 %v2654_v24  ;;  %v2715_v15 = vld [vmem:[%s3989_s2 + $0x228] ss:$16 sps:$4 sm:$0xff]   ;;  %v2720_v16 = vld [vmem:[%s3989_s2 + $0x3e4] ss:$16 sps:$4 sm:$0xff]   ;;  %v2723_v17 = vld [vmem:[%s3989_s2 + $0x24c] ss:$16 sps:$4 sm:$0xff]  }
  0x91   :  { %v2718_v18 = vld [vmem:[%s3989_s2 + $0x3e0] ss:$16 sps:$4 sm:$0xff]   ;;  %v2721_v19 = vld [vmem:[%s3989_s2 + $0x248] ss:$16 sps:$4 sm:$0xff]   ;;  %v2726_v20 = vld [vmem:[%s3989_s2 + $0x404] ss:$16 sps:$4 sm:$0xff]  }
  0x92   :  { %1493 = vmatpush1.bf16.msra.mxu1 %v2649_v23  ;;  %v2729_v21 = vld [vmem:[%s3989_s2 + $0x26c] ss:$16 sps:$4 sm:$0xff]   ;;  %v2724_v23 = vld [vmem:[%s3989_s2 + $0x400] ss:$16 sps:$4 sm:$0xff]   ;;  %vm1674_vm1 = vcmask 1041408   ;;  %vm2905_vm2 = vmmov 0  }
  0x93   :  { %1494 = vmatprep.subr.bf16.mxu1 %v2657_v25  ;;  %1366 = vmatpush1.bf16.msra.mxu0 %v2652_v26  ;;  %v2735_v26 = vld [vmem:[%s3989_s2 + $0x28c] ss:$16 sps:$4 sm:$0xff]   ;;  %vm2087_vm3 = vcmask 9216  }
  0x94   :  { %1367 = vmatprep.subr.bf16.mxu0 %v2660_v28  ;;  %v2733_v28 = vld [vmem:[%s3989_s2 + $0x288] ss:$16 sps:$4 sm:$0xff]  }
  0x96   :  { %1495 = vmatpush1.bf16.msra.mxu1 %v2655_v27  ;;  %v2730_v27 = vld [vmem:[%s3989_s2 + $0x420] ss:$16 sps:$4 sm:$0xff]  }
  0x97   :  { %1496 = vmatprep.subr.bf16.mxu1 %v2663_v29  ;;  %1368 = vmatpush1.bf16.msra.mxu0 %v2658_v30  ;;  %v2738_v29 = vld [vmem:[%s3989_s2 + $0x444] ss:$16 sps:$4 sm:$0xff]   ;;  %v2741_v30 = vld [vmem:[%s3989_s2 + $0x2ac] ss:$16 sps:$4 sm:$0xff]  }
  0x98   :  { %1369 = vmatprep.subr.bf16.mxu0 %v2666_v32  ;;  %v2739_v32 = vld [vmem:[%s3989_s2 + $0x2a8] ss:$16 sps:$4 sm:$0xff]  }
  0x9a   :  { %1497 = vmatpush1.bf16.msra.mxu1 %v2661_v31  ;;  %v2736_v31 = vld [vmem:[%s3989_s2 + $0x440] ss:$16 sps:$4 sm:$0xff]  }
  0x9b   :  { %1498 = vmatprep.subr.bf16.mxu1 %v2669_v33  ;;  %1370 = vmatpush1.bf16.msra.mxu0 %v2664_v34  ;;  %v2744_v33 = vld [vmem:[%s3989_s2 + $0x464] ss:$16 sps:$4 sm:$0xff]   ;;  %v2747_v34 = vld [vmem:[%s3989_s2 + $0x2cc] ss:$16 sps:$4 sm:$0xff]  }
  0x9c   :  { %1371 = vmatprep.subr.bf16.mxu0 %v2672_v36  ;;  %v2745_v36 = vld [vmem:[%s3989_s2 + $0x2c8] ss:$16 sps:$4 sm:$0xff]  }
  0x9e   :  { %1499 = vmatpush1.bf16.msra.mxu1 %v2667_v35  ;;  %v2742_v35 = vld [vmem:[%s3989_s2 + $0x460] ss:$16 sps:$4 sm:$0xff]  }
  0x9f   :  { %1500 = vmatprep.subr.bf16.mxu1 %v2675_v37  ;;  %1372 = vmatpush1.bf16.msra.mxu0 %v2670_v38  ;;  %v2750_v37 = vld [vmem:[%s3989_s2 + $0x484] ss:$16 sps:$4 sm:$0xff]   ;;  %v2753_v38 = vld [vmem:[%s3989_s2 + $0x2ec] ss:$16 sps:$4 sm:$0xff]  }
  0xa0   :  { %1373 = vmatprep.subr.bf16.mxu0 %v2678_v40  ;;  %v2751_v40 = vld [vmem:[%s3989_s2 + $0x2e8] ss:$16 sps:$4 sm:$0xff]  }
  0xa2   :  { %1501 = vmatpush1.bf16.msra.mxu1 %v2673_v39  ;;  %v2748_v39 = vld [vmem:[%s3989_s2 + $0x480] ss:$16 sps:$4 sm:$0xff]  }
  0xa3   :  { %1502 = vmatprep.subr.bf16.mxu1 %v2681_v41  ;;  %1374 = vmatpush1.bf16.msra.mxu0 %v2676_v42  ;;  %v2756_v41 = vld [vmem:[%s3989_s2 + $0x4a4] ss:$16 sps:$4 sm:$0xff]   ;;  %v2759_v42 = vld [vmem:[%s3989_s2 + $0x30c] ss:$16 sps:$4 sm:$0xff]  }
  0xa4   :  { %1375 = vmatprep.subr.bf16.mxu0 %v2684_v44  ;;  %v2757_v44 = vld [vmem:[%s3989_s2 + $0x308] ss:$16 sps:$4 sm:$0xff]  }
  0xa6   :  { %1503 = vmatpush1.bf16.msra.mxu1 %v2679_v43  ;;  %v2754_v43 = vld [vmem:[%s3989_s2 + $0x4a0] ss:$16 sps:$4 sm:$0xff]  }
  0xa7   :  { %1504 = vmatprep.subr.bf16.mxu1 %v2687_v45  ;;  %1376 = vmatpush1.bf16.msra.mxu0 %v2682_v46  ;;  %v2762_v45 = vld [vmem:[%s3989_s2 + $0x4c4] ss:$16 sps:$4 sm:$0xff]   ;;  %v2765_v46 = vld [vmem:[%s3989_s2 + $0x32c] ss:$16 sps:$4 sm:$0xff]  }
  0xa8   :  { %1377 = vmatprep.subr.bf16.mxu0 %v2690_v48  ;;  %v2763_v48 = vld [vmem:[%s3989_s2 + $0x328] ss:$16 sps:$4 sm:$0xff]  }
  0xaa   :  { %1505 = vmatpush1.bf16.msra.mxu1 %v2685_v47  ;;  %v2760_v47 = vld [vmem:[%s3989_s2 + $0x4c0] ss:$16 sps:$4 sm:$0xff]  }
  0xab   :  { %1506 = vmatprep.subr.bf16.mxu1 %v2693_v49  ;;  %1378 = vmatpush1.bf16.msra.mxu0 %v2688_v50  ;;  %v2768_v49 = vld [vmem:[%s3989_s2 + $0x4e4] ss:$16 sps:$4 sm:$0xff]   ;;  %v2771_v50 = vld [vmem:[%s3989_s2 + $0x34c] ss:$16 sps:$4 sm:$0xff]  }
  0xac   :  { %1379 = vmatprep.subr.bf16.mxu0 %v2696_v52  ;;  %v2769_v52 = vld [vmem:[%s3989_s2 + $0x348] ss:$16 sps:$4 sm:$0xff]  }
  0xae   :  { %1507 = vmatpush1.bf16.msra.mxu1 %v2691_v51  ;;  %v2766_v51 = vld [vmem:[%s3989_s2 + $0x4e0] ss:$16 sps:$4 sm:$0xff]  }
  0xaf   :  { %1508 = vmatprep.subr.bf16.mxu1 %v2699_v54  ;;  %1380 = vmatpush1.bf16.msra.mxu0 %v2694_v55  ;;  %v2774_v54 = vld [vmem:[%s3989_s2 + $0x504] ss:$16 sps:$4 sm:$0xff]   ;;  %v2777_v55 = vld [vmem:[%s3989_s2 + $0x36c] ss:$16 sps:$4 sm:$0xff]  }
  0xb0   :  { %1381 = vmatprep.subr.bf16.mxu0 %v2702_v58  ;;  %v2775_v58 = vld [vmem:[%s3989_s2 + $0x368] ss:$16 sps:$4 sm:$0xff]  }
  0xb2   :  { %1509 = vmatpush1.bf16.msra.mxu1 %v2697_v57  ;;  %v2772_v57 = vld [vmem:[%s3989_s2 + $0x500] ss:$16 sps:$4 sm:$0xff]  }
  0xb3   :  { %1510 = vmatprep.subr.bf16.mxu1 %v2705_v59  ;;  %1382 = vmatpush1.bf16.msra.mxu0 %v2700_v60  ;;  %v2780_v59 = vld [vmem:[%s3989_s2 + $0x524] ss:$16 sps:$4 sm:$0xff]   ;;  %v2783_v60 = vld [vmem:[%s3989_s2 + $0x38c] ss:$16 sps:$4 sm:$0xff]  }
  0xb4   :  { %1383 = vmatprep.subr.bf16.mxu0 %v2708_v0  ;;  %v2781_v0 = vld [vmem:[%s3989_s2 + $0x388] ss:$16 sps:$4 sm:$0xff]  }
  0xb6   :  { %1511 = vmatpush1.bf16.msra.mxu1 %v2703_v62  ;;  %v2778_v62 = vld [vmem:[%s3989_s2 + $0x520] ss:$16 sps:$4 sm:$0xff]  }
  0xb7   :  { %1521 = vmatprep.subr.bf16.mxu1 %v2711_v3  ;;  %1384 = vmatpush1.bf16.msra.mxu0 %v2706_v4  ;;  %v2786_v3 = vld [vmem:[%s3989_s2 + $0x544] ss:$16 sps:$4 sm:$0xff]   ;;  %v2789_v4 = vld [vmem:[%s3989_s2 + $0x3ac] ss:$16 sps:$4 sm:$0xff]  }
  0xb8   :  { %1385 = vmatprep.subr.bf16.mxu0 %v2714_v8  ;;  %v2787_v8 = vld [vmem:[%s3989_s2 + $0x3a8] ss:$16 sps:$4 sm:$0xff]  }
  0xb9   :  { %1513 = vmatmul.mubr.bf16.vlgmr.msra.gmra.mrb[4].mxu1 %v3114_v1  ;;  %v3319_v1 = vpop.permute.xlu1 %66 }
  0xba   :  { %1522 = vmatpush1.bf16.msra.mxu1 %v2709_v7  ;;  %1553 = vmatprep.mubr.bf16.mxu1 %v3149_v14  ;;  %v3333_v14 = vsel %vm70_vm0, %v3107_v63, %v3133_v9  ;;  %v3341_v22 = vsel %vm70_vm0, %v3319_v1, %v3078_v53  ;;  %v2727_v63 = vld [vmem:[%s3989_s2 + $0x268] ss:$16 sps:$4 sm:$0xff]   ;;  %v2732_v9 = vld [vmem:[%s3989_s2 + $0x424] ss:$16 sps:$4 sm:$0xff]   ;;  %v2784_v7 = vld [vmem:[%s3989_s2 + $0x540] ss:$16 sps:$4 sm:$0xff]  }
  0xbb   :  { %1523 = vmatprep.subr.bf16.mxu1 %v2717_v10  ;;  %1386 = vmatpush1.bf16.msra.mxu0 %v2712_v12  ;;  %v3348_v24 = vpack.c.bf16 %v3333_v14, %v3333_v14  ;;  %v3358_v25 = vpack.c.bf16 %v3341_v22, %v3341_v22  ;;  %v2792_v10 = vld [vmem:[%s3989_s2 + $0x564] ss:$16 sps:$4 sm:$0xff]   ;;  %v2795_v12 = vld [vmem:[%s3989_s2 + $0x3cc] ss:$16 sps:$4 sm:$0xff]  }
  0xbc   :  { %1387 = vmatprep.subr.bf16.mxu0 %v2720_v16  ;;  %v2793_v16 = vld [vmem:[%s3989_s2 + $0x3c8] ss:$16 sps:$4 sm:$0xff]  }
  0xbe   :  { %1524 = vmatpush1.bf16.msra.mxu1 %v2715_v15  ;;  %v2790_v15 = vld [vmem:[%s3989_s2 + $0x560] ss:$16 sps:$4 sm:$0xff]  }
  0xbf   :  { %1525 = vmatprep.subr.bf16.mxu1 %v2723_v17  ;;  %1388 = vmatpush1.bf16.msra.mxu0 %v2718_v18  ;;  %v2798_v17 = vld [vmem:[%s3989_s2 + $0x584] ss:$16 sps:$4 sm:$0xff]   ;;  %v2801_v18 = vld [vmem:[%s3989_s2 + $0x3ec] ss:$16 sps:$4 sm:$0xff]  }
  0xc0   :  { %1398 = vmatprep.subr.bf16.mxu0 %v2726_v20  ;;  %v2799_v20 = vld [vmem:[%s3989_s2 + $0x3e8] ss:$16 sps:$4 sm:$0xff]  }
  0xc2   :  { %1526 = vmatpush1.bf16.msra.mxu1 %v2721_v19  ;;  %1390 = vmatmul.mubr.bf16.vlgmr.msra.gmra.mrb[0].mxu0 %v3348_v24  ;;  %v2796_v19 = vld [vmem:[%s3989_s2 + $0x580] ss:$16 sps:$4 sm:$0xff]  }
  0xc3   :  { %1527 = vmatprep.subr.bf16.mxu1 %v2729_v21  ;;  %1399 = vmatpush1.bf16.msra.mxu0 %v2724_v23  ;;  %v2804_v21 = vld [vmem:[%s3989_s2 + $0x5a4] ss:$16 sps:$4 sm:$0xff]   ;;  %v2807_v23 = vld [vmem:[%s3989_s2 + $0x40c] ss:$16 sps:$4 sm:$0xff]  }
  0xc4   :  { %1430 = vmatprep.mubr.bf16.mxu0 %v3358_v25  ;;  %1400 = vmatprep.subr.bf16.mxu0 %v2732_v9  ;;  %v2805_v9 = vld [vmem:[%s3989_s2 + $0x408] ss:$16 sps:$4 sm:$0xff]  }
  0xc6   :  { %1528 = vmatpush1.bf16.msra.mxu1 %v2727_v63  ;;  %v2802_v63 = vld [vmem:[%s3989_s2 + $0x5a0] ss:$16 sps:$4 sm:$0xff]  }
  0xc7   :  { %1529 = vmatprep.subr.bf16.mxu1 %v2735_v26  ;;  %1401 = vmatpush1.bf16.msra.mxu0 %v2730_v27  ;;  %v2810_v26 = vld [vmem:[%s3989_s2 + $0x5c4] ss:$16 sps:$4 sm:$0xff]   ;;  %v2813_v27 = vld [vmem:[%s3989_s2 + $0x42c] ss:$16 sps:$4 sm:$0xff]  }
  0xc8   :  { %1402 = vmatprep.subr.bf16.mxu0 %v2738_v29  ;;  %v2811_v29 = vld [vmem:[%s3989_s2 + $0x428] ss:$16 sps:$4 sm:$0xff]  }
  0xca   :  { %1530 = vmatpush1.bf16.msra.mxu1 %v2733_v28  ;;  %v2808_v28 = vld [vmem:[%s3989_s2 + $0x5c0] ss:$16 sps:$4 sm:$0xff]  }
  0xcb   :  { %1531 = vmatprep.subr.bf16.mxu1 %v2741_v30  ;;  %1403 = vmatpush1.bf16.msra.mxu0 %v2736_v31  ;;  %v2816_v30 = vld [vmem:[%s3989_s2 + $0x5e4] ss:$16 sps:$4 sm:$0xff]   ;;  %v2814_v31 = vld [vmem:[%s3989_s2 + $0x5e0] ss:$16 sps:$4 sm:$0xff]  }
  0xcc   :  { %1404 = vmatprep.subr.bf16.mxu0 %v2744_v33  ;;  %v2822_v33 = vld [vmem:[%s3989_s2 + $0x46c] ss:$16 sps:$4 sm:$0xff]  }
  0xce   :  { %1532 = vmatpush1.bf16.msra.mxu1 %v2739_v32  ;;  %v3544_v32 = vsel %vm70_vm0, %v3125_v5, %v3319_v1  ;;  %v2825_v5 = vld [vmem:[%s3989_s2 + $0x48c] ss:$16 sps:$4 sm:$0xff]   ;;  %v2823_v1 = vld [vmem:[%s3989_s2 + $0x488] ss:$16 sps:$4 sm:$0xff]  }
  0xcf   :  { %1533 = vmatprep.subr.bf16.mxu1 %v2747_v34  ;;  %1405 = vmatpush1.bf16.msra.mxu0 %v2742_v35  ;;  %v88_v34 = vpack.c.bf16 %v3544_v32, %v3544_v32  ;;  %v2820_v35 = vld [vmem:[%s3989_s2 + $0x468] ss:$16 sps:$4 sm:$0xff]  }
  0xd0   :  { %1406 = vmatprep.subr.bf16.mxu0 %v2750_v37  ;;  %v2826_v37 = vld [vmem:[%s3989_s2 + $0x4a8] ss:$16 sps:$4 sm:$0xff]  }
  0xd2   :  { %1534 = vmatpush1.bf16.msra.mxu1 %v2745_v36  ;;  %v2828_v36 = vld [vmem:[%s3989_s2 + $0x4ac] ss:$16 sps:$4 sm:$0xff]  }
  0xd3   :  { %1535 = vmatprep.subr.bf16.mxu1 %v2753_v38  ;;  %1407 = vmatpush1.bf16.msra.mxu0 %v2748_v39  ;;  %v2831_v38 = vld [vmem:[%s3989_s2 + $0x4cc] ss:$16 sps:$4 sm:$0xff]   ;;  %v2829_v39 = vld [vmem:[%s3989_s2 + $0x4c8] ss:$16 sps:$4 sm:$0xff]  }
  0xd4   :  { %1408 = vmatprep.subr.bf16.mxu0 %v2756_v41  ;;  %v2832_v41 = vld [vmem:[%s3989_s2 + $0x4e8] ss:$16 sps:$4 sm:$0xff]  }
  0xd6   :  { %1536 = vmatpush1.bf16.msra.mxu1 %v2751_v40  ;;  %v2834_v40 = vld [vmem:[%s3989_s2 + $0x4ec] ss:$16 sps:$4 sm:$0xff]  }
  0xd7   :  { %1537 = vmatprep.subr.bf16.mxu1 %v2759_v42  ;;  %1409 = vmatpush1.bf16.msra.mxu0 %v2754_v43  ;;  %v2837_v42 = vld [vmem:[%s3989_s2 + $0x50c] ss:$16 sps:$4 sm:$0xff]   ;;  %v2835_v43 = vld [vmem:[%s3989_s2 + $0x508] ss:$16 sps:$4 sm:$0xff]  }
  0xd8   :  { %1410 = vmatprep.subr.bf16.mxu0 %v2762_v45  ;;  %v2838_v45 = vld [vmem:[%s3989_s2 + $0x528] ss:$16 sps:$4 sm:$0xff]  }
  0xda   :  { %1538 = vmatpush1.bf16.msra.mxu1 %v2757_v44  ;;  %v2840_v44 = vld [vmem:[%s3989_s2 + $0x52c] ss:$16 sps:$4 sm:$0xff]  }
  0xdb   :  { %1539 = vmatprep.subr.bf16.mxu1 %v2765_v46  ;;  %1411 = vmatpush1.bf16.msra.mxu0 %v2760_v47  ;;  %v2843_v46 = vld [vmem:[%s3989_s2 + $0x54c] ss:$16 sps:$4 sm:$0xff]   ;;  %v2841_v47 = vld [vmem:[%s3989_s2 + $0x548] ss:$16 sps:$4 sm:$0xff]  }
  0xdc   :  { %1412 = vmatprep.subr.bf16.mxu0 %v2768_v49  ;;  %v2844_v49 = vld [vmem:[%s3989_s2 + $0x568] ss:$16 sps:$4 sm:$0xff]  }
  0xde   :  { %1540 = vmatpush1.bf16.msra.mxu1 %v2763_v48  ;;  %v2846_v48 = vld [vmem:[%s3989_s2 + $0x56c] ss:$16 sps:$4 sm:$0xff]  }
  0xdf   :  { %1541 = vmatprep.subr.bf16.mxu1 %v2771_v50  ;;  %1413 = vmatpush1.bf16.msra.mxu0 %v2766_v51  ;;  %v2849_v50 = vld [vmem:[%s3989_s2 + $0x58c] ss:$16 sps:$4 sm:$0xff]   ;;  %v2847_v51 = vld [vmem:[%s3989_s2 + $0x588] ss:$16 sps:$4 sm:$0xff]  }
  0xe0   :  { %1414 = vmatprep.subr.bf16.mxu0 %v2774_v54  ;;  %v2850_v54 = vld [vmem:[%s3989_s2 + $0x5a8] ss:$16 sps:$4 sm:$0xff]  }
  0xe2   :  { %1542 = vmatpush1.bf16.msra.mxu1 %v2769_v52  ;;  %v2852_v52 = vld [vmem:[%s3989_s2 + $0x5ac] ss:$16 sps:$4 sm:$0xff]  }
  0xe3   :  { %1543 = vmatprep.subr.bf16.mxu1 %v2777_v55  ;;  %1415 = vmatpush1.bf16.msra.mxu0 %v2772_v57  ;;  %v2855_v55 = vld [vmem:[%s3989_s2 + $0x5cc] ss:$16 sps:$4 sm:$0xff]   ;;  %v2853_v57 = vld [vmem:[%s3989_s2 + $0x5c8] ss:$16 sps:$4 sm:$0xff]  }
  0xe4   :  { %1416 = vmatprep.subr.bf16.mxu0 %v2780_v59  ;;  %v2856_v59 = vld [vmem:[%s3989_s2 + $0x5e8] ss:$16 sps:$4 sm:$0xff]  }
  0xe6   :  { %1544 = vmatpush1.bf16.msra.mxu1 %v2775_v58  ;;  %v2858_v58 = vld [vmem:[%s3989_s2 + $0x5ec] ss:$16 sps:$4 sm:$0xff]  }
  0xe7   :  { %1545 = vmatprep.subr.bf16.mxu1 %v2783_v60  ;;  %1417 = vmatpush1.bf16.msra.mxu0 %v2778_v62  ;;  %v2861_v60 = vld [vmem:[%s3989_s2 + $0x60c] ss:$16 sps:$4 sm:$0xff]   ;;  %v2859_v62 = vld [vmem:[%s3989_s2 + $0x608] ss:$16 sps:$4 sm:$0xff]  }
  0xe8   :  { %1418 = vmatprep.subr.bf16.mxu0 %v2786_v3  ;;  %v2862_v3 = vld [vmem:[%s3989_s2 + $0x628] ss:$16 sps:$4 sm:$0xff]  }
  0xea   :  { %1546 = vmatpush1.bf16.msra.mxu1 %v2781_v0  ;;  %v2864_v0 = vld [vmem:[%s3989_s2 + $0x62c] ss:$16 sps:$4 sm:$0xff]  }
  0xeb   :  { %1547 = vmatprep.subr.bf16.mxu1 %v2789_v4  ;;  %1419 = vmatpush1.bf16.msra.mxu0 %v2784_v7 }
  0xec   :  { %1420 = vmatprep.subr.bf16.mxu0 %v2792_v10 }
  0xee   :  { %1548 = vmatpush1.bf16.msra.mxu1 %v2787_v8 }
  0xef   :  { %1549 = vmatprep.subr.bf16.mxu1 %v2795_v12  ;;  %1421 = vmatpush1.bf16.msra.mxu0 %v2790_v15  ;;  %v1713_v12 = vld [vmem:[%s3992_s5 + $0x80] sm:$0xff]  ;;  %v1714_v15 = vld [vmem:[%s3992_s5 + $0x88] sm:$0xff] }
  0xf0   :  { %1422 = vmatprep.subr.bf16.mxu0 %v2798_v17  ;;  %v1697_v17 = vld [vmem:[%s3992_s5] sm:$0xff] }
  0xf2   :  { %1550 = vmatpush1.bf16.msra.mxu1 %v2793_v16  ;;  %v2429_v16 = vpack.c.bf16 %v1714_v15, %v1713_v12  ;;  %v1747_v12 = vld [vmem:[%s3992_s5 + $0x190] sm:$0xff] }
  0xf3   :  { %1551 = vmatprep.subr.bf16.mxu1 %v2801_v18  ;;  %1423 = vmatpush1.bf16.msra.mxu0 %v2796_v19  ;;  %v1698_v18 = vld [vmem:[%s3992_s5 + $0x8] sm:$0xff] }
  0xf4   :  { %1424 = vmatprep.subr.bf16.mxu0 %v2804_v21  ;;  %v1729_v21 = vld [vmem:[%s3992_s5 + $0x100] sm:$0xff] }
  0xf6   :  { %1552 = vmatpush1.bf16.msra.mxu1 %v2799_v20  ;;  %v2431_v20 = vpack.c.bf16 %v1698_v18, %v1697_v17 }
  0xf7   :  { %1562 = vmatprep.subr.bf16.mxu1 %v2807_v23  ;;  %1425 = vmatpush1.bf16.msra.mxu0 %v2802_v63  ;;  %v1730_v23 = vld [vmem:[%s3992_s5 + $0x108] sm:$0xff] }
  0xf8   :  { %1426 = vmatprep.subr.bf16.mxu0 %v2810_v26  ;;  %v2463_v63 = vpack.c.bf16 %v1730_v23, %v1729_v21  ;;  %v291_v26 = vld [vmem:[%s3990_s3] sm:$0xf] }
  0xf9   :  { %1554 = vmatmul.mubr.bf16.vlgmr.msra.gmra.mrb[4].mxu1 %v3348_v24  ;;  %v2819_v24 = vld [vmem:[%s3989_s2 + $0x44c] ss:$16 sps:$4 sm:$0xff]   ;;  %v1717_v23 = vld [vmem:[%s3992_s5 + $0xa0] sm:$0xff] }
  0xfa   :  { %1563 = vmatpush1.bf16.msra.mxu1 %v2805_v9  ;;  %1594 = vmatprep.mubr.bf16.mxu1 %v3358_v25  ;;  %v2817_v25 = vld [vmem:[%s3989_s2 + $0x448] ss:$16 sps:$4 sm:$0xff]   ;;  %v295_v9 = vsub.s32 0, %v2954_v6 }
  0xfb   :  { %1564 = vmatprep.subr.bf16.mxu1 %v2813_v27  ;;  %1427 = vmatpush1.bf16.msra.mxu0 %v2808_v28  ;;  %v299_v27 = vsub.s32 1, %v2954_v6 }
  0xfc   :  { %1428 = vmatprep.subr.bf16.mxu0 %v2816_v30  ;;  %v296_v28 = vrot.slane %v291_v26, %v295_v9 }
  0xfe   :  { %1565 = vmatpush1.bf16.msra.mxu1 %v2811_v29  ;;  %v300_v29 = vrot.slane %v291_v26, %v299_v27 }
  0xff   :  { %1566 = vmatprep.subr.bf16.mxu1 %v2819_v24  ;;  %1429 = vmatpush1.bf16.msra.mxu0 %v2814_v31 }
 0x100   :  { %2430 = vmatprep.subr.bf16.mxu0 %v2429_v16  ;;  %v1699_v16 = vld [vmem:[%s3992_s5 + $0x10] sm:$0xff] }
 0x102   :  { %1567 = vmatpush1.bf16.msra.mxu1 %v2817_v25  ;;  %1431 = vmatmul.mubr.bf16.vlgmr.msra.gmra.mrb[0].mxu0 %v88_v34 }
 0x103   :  { %1568 = vmatprep.subr.bf16.mxu1 %v2822_v33  ;;  %2432 = vmatpush3.bf16.msra.mxu0 %v2431_v20  ;;  %v1732_v20 = vld [vmem:[%s3992_s5 + $0x118] sm:$0xff] }
 0x106   :  { %1569 = vmatpush1.bf16.msra.mxu1 %v2820_v35 }
 0x107   :  { %1570 = vmatprep.subr.bf16.mxu1 %v2825_v5 }
 0x10a   :  { %1571 = vmatpush1.bf16.msra.mxu1 %v2823_v1  ;;  %v1648_v1 = vld [vmem:[%s3991_s4] sm:$0xf] }
 0x10b   :  { %1572 = vmatprep.subr.bf16.mxu1 %v2828_v36  ;;  %v1653_v36 = vrot.slane %v1648_v1, %v295_v9  ;;  %v1749_v9 = vld [vmem:[%s3992_s5 + $0x1a0] sm:$0xff] }
 0x10e   :  { %1573 = vmatpush1.bf16.msra.mxu1 %v2826_v37  ;;  %v1657_v37 = vrot.slane %v1648_v1, %v299_v27  ;;  %v1750_v27 = vld [vmem:[%s3992_s5 + $0x1a8] sm:$0xff] }
 0x10f   :  { %1574 = vmatprep.subr.bf16.mxu1 %v2831_v38 }
 0x112   :  { %1575 = vmatpush1.bf16.msra.mxu1 %v2829_v39 }
 0x113   :  { %1576 = vmatprep.subr.bf16.mxu1 %v2834_v40 }
 0x116   :  { %1577 = vmatpush1.bf16.msra.mxu1 %v2832_v41 }
 0x117   :  { %1578 = vmatprep.subr.bf16.mxu1 %v2837_v42 }
 0x11a   :  { %1579 = vmatpush1.bf16.msra.mxu1 %v2835_v43 }
 0x11b   :  { %1580 = vmatprep.subr.bf16.mxu1 %v2840_v44 }
 0x11e   :  { %1581 = vmatpush1.bf16.msra.mxu1 %v2838_v45  ;;  %v303_v45 = vsub.s32 2, %v2954_v6 }
 0x11f   :  { %1582 = vmatprep.subr.bf16.mxu1 %v2843_v46  ;;  %v307_v46 = vsub.s32 3, %v2954_v6 }
 0x122   :  { %1583 = vmatpush1.bf16.msra.mxu1 %v2841_v47  ;;  %v304_v47 = vrot.slane %v291_v26, %v303_v45 }
 0x123   :  { %1584 = vmatprep.subr.bf16.mxu1 %v2846_v48  ;;  %v308_v48 = vrot.slane %v291_v26, %v307_v46 }
 0x126   :  { %1585 = vmatpush1.bf16.msra.mxu1 %v2844_v49 }
 0x127   :  { %1586 = vmatprep.subr.bf16.mxu1 %v2849_v50 }
 0x12a   :  { %1587 = vmatpush1.bf16.msra.mxu1 %v2847_v51 }
 0x12b   :  { %1588 = vmatprep.subr.bf16.mxu1 %v2852_v52 }
 0x12e   :  { %1589 = vmatpush1.bf16.msra.mxu1 %v2850_v54 }
 0x12f   :  { %1590 = vmatprep.subr.bf16.mxu1 %v2855_v55 }
 0x132   :  { %1591 = vmatpush1.bf16.msra.mxu1 %v2853_v57  ;;  %v1661_v57 = vrot.slane %v1648_v1, %v303_v45  ;;  %v1722_v45 = vld [vmem:[%s3992_s5 + $0xc8] sm:$0xff] }
 0x133   :  { %1592 = vmatprep.subr.bf16.mxu1 %v2858_v58  ;;  %v1665_v58 = vrot.slane %v1648_v1, %v307_v46  ;;  %v1753_v46 = vld [vmem:[%s3992_s5 + $0x1c0] sm:$0xff] }
 0x136   :  { %1593 = vmatpush1.bf16.msra.mxu1 %v2856_v59 }
 0x137   :  { %1603 = vmatprep.subr.bf16.mxu1 %v2861_v60 }
 0x139   :  { %1595 = vmatmul.mubr.bf16.vlgmr.msra.gmra.mrb[4].mxu1 %v88_v34 }
 0x13a   :  { %1604 = vmatpush1.bf16.msra.mxu1 %v2859_v62  ;;  %1635 = vmatprep.mubr.bf16.mxu1 %v2903_v13  ;;  %v1745_v13 = vld [vmem:[%s3992_s5 + $0x180] sm:$0xff] }
 0x13b   :  { %1605 = vmatprep.subr.bf16.mxu1 %v2864_v0 }
 0x13e   :  { %1606 = vmatpush1.bf16.msra.mxu1 %v2862_v3 }
 0x145   :  { %2305 = vmatmul.mubr.msk.bf16.vlgmr.msra.gmra.mrb[4].mxu1 %vm70_vm0, %v3088_v56  ;;  %v1746_v56 = vld [vmem:[%s3992_s5 + $0x188] sm:$0xff] }
 0x146   :  { %v2461_v19 = vpack.c.bf16 %v1746_v56, %v1745_v13  ;;  %v1748_v13 = vld [vmem:[%s3992_s5 + $0x198] sm:$0xff] }
 0x147   :  { %v1700_v56 = vld [vmem:[%s3992_s5 + $0x18] sm:$0xff]  ;;  %v2465_v17 = vpack.c.bf16 %v1748_v13, %v1747_v12  ;;  %v1726_v13 = vld [vmem:[%s3992_s5 + $0xe8] sm:$0xff] }
 0x148   :  { %2462 = vmatprep.subr.bf16.mxu1 %v2461_v19  ;;  %v2435_v18 = vpack.c.bf16 %v1700_v56, %v1699_v16  ;;  %v1731_v19 = vld [vmem:[%s3992_s5 + $0x110] sm:$0xff]  ;;  %v1757_v16 = vld [vmem:[%s3992_s5 + $0x1e0] sm:$0xff] }
 0x149   :  { %2464 = vmatpush3.bf16.msra.mxu1 %v2463_v63  ;;  %v2467_v21 = vpack.c.bf16 %v1732_v20, %v1731_v19  ;;  %v1718_v63 = vld [vmem:[%s3992_s5 + $0xa8] sm:$0xff] }
 0x14a   :  { %2466 = vmatprep.subr.bf16.mxu1 %v2465_v17  ;;  %v2437_v26 = vpack.c.bf16 %v1718_v63, %v1717_v23  ;;  %v1758_v17 = vld [vmem:[%s3992_s5 + $0x1e8] sm:$0xff]  ;;  %v1741_v23 = vld [vmem:[%s3992_s5 + $0x160] sm:$0xff] }
 0x14b   :  { %v1710_v19 = vld [vmem:[%s3992_s5 + $0x68] sm:$0xff]  ;;  %v2485_v20 = vpack.c.bf16 %v1758_v17, %v1757_v16  ;;  %v1768_v17 = vld [vmem:[%s3992_s5 + $0x238] sm:$0xff] }
 0x14c   :  { %v1473_v4 = vpop.f32.mrb[0].mxu1  ;;  %v1742_v63 = vld [vmem:[%s3992_s5 + $0x168] sm:$0xff] }
 0x14d   :  { %v1475_v7 = vpop.f32.mrb[1].mxu1  ;;  %2468 = vmatpush3.bf16.msra.mxu1 %v2467_v21 }
 0x14e   :  { %v1477_v8 = vpop.f32.mrb[2].mxu1 }
 0x14f   :  { %v1478_v10 = vpop.f32.mrb[3].mxu1  ;;  %v1715_v8 = vld [vmem:[%s3992_s5 + $0x90] sm:$0xff] }
 0x150   :  { %v1716_v10 = vld [vmem:[%s3992_s5 + $0x98] sm:$0xff] }
 0x151   :  { %v2433_v15 = vpack.c.bf16 %v1716_v10, %v1715_v8  ;;  %v1739_v8 = vld [vmem:[%s3992_s5 + $0x150] sm:$0xff]  ;;  %v1740_v10 = vld [vmem:[%s3992_s5 + $0x158] sm:$0xff] }
 0x152   :  { %v2483_v12 = vpack.c.bf16 %v1740_v10, %v1739_v8  ;;  %v1766_v8 = vld [vmem:[%s3992_s5 + $0x228] sm:$0xff]  ;;  %v2906_v10 = vmov 0.0  }
 0x153   :  { %2434 = vmatprep.subr.bf16.mxu0 %v2433_v15  ;;  %v1725_v15 = vld [vmem:[%s3992_s5 + $0xe0] sm:$0xff] }
 0x154   :  { %2436 = vmatpush3.bf16.msra.mxu0 %v2435_v18  ;;  %v2453_v56 = vpack.c.bf16 %v1726_v13, %v1725_v15  ;;  %v1709_v18 = vld [vmem:[%s3992_s5 + $0x60] sm:$0xff] }
 0x155   :  { %2438 = vmatprep.subr.bf16.mxu0 %v2437_v26  ;;  %v2455_v21 = vpack.c.bf16 %v1710_v19, %v1709_v18  ;;  %v1727_v26 = vld [vmem:[%s3992_s5 + $0xf0] sm:$0xff]  ;;  %v1785_v18 = vld [vmem:[%s3992_s5 + $0x2c0] sm:$0xff]  ;;  %v1786_v19 = vld [vmem:[%s3992_s5 + $0x2c8] sm:$0xff] }
 0x1d5   :  { %v1432_v30 = vpop.f32.mrb[0].mxu0 }
 0x1d6   :  { %v2531_v24 = vadd.f32 %v1432_v30, %v296_v28  ;;  %v1434_v31 = vpop.f32.mrb[1].mxu0  ;;  %v1701_v28 = vld [vmem:[%s3992_s5 + $0x20] sm:$0xff]  ;;  %v2469_v30 = vpack.c.bf16 %v1750_v27, %v1749_v9  ;;  %v2487_v9 = vpack.c.bf16 %v1742_v63, %v1741_v23  ;;  %v1728_v27 = vld [vmem:[%s3992_s5 + $0xf8] sm:$0xff]  ;;  %v1770_v23 = vld [vmem:[%s3992_s5 + $0x248] sm:$0xff] }
 0x1d7   :  { %v2533_v25 = vadd.f32 %v1434_v31, %v300_v29  ;;  %v1436_v33 = vpop.f32.mrb[2].mxu0  ;;  %v1702_v29 = vld [vmem:[%s3992_s5 + $0x28] sm:$0xff]  ;;  %v1733_v31 = vld [vmem:[%s3992_s5 + $0x120] sm:$0xff]  ;;  %v1787_v63 = vld [vmem:[%s3992_s5 + $0x2d0] sm:$0xff] }
 0x1d8   :  { %v2532_v34 = vadd.f32 %v2531_v24, %v1473_v4  ;;  %v1437_v35 = vpop.f32.mrb[3].mxu0  ;;  %v2439_v24 = vpack.c.bf16 %v1702_v29, %v1701_v28  ;;  %2470 = vmatprep.subr.bf16.mxu1 %v2469_v30  ;;  %v1759_v28 = vld [vmem:[%s3992_s5 + $0x1f0] sm:$0xff]  ;;  %v2457_v29 = vpack.c.bf16 %v1728_v27, %v1727_v26  ;;  %v1760_v30 = vld [vmem:[%s3992_s5 + $0x1f8] sm:$0xff] }
 0x1d9   :  { %v2534_v5 = vadd.f32 %v2533_v25, %v1475_v7  ;;  %v1734_v25 = vld [vmem:[%s3992_s5 + $0x128] sm:$0xff]  ;;  %v1720_v35 = vld [vmem:[%s3992_s5 + $0xb8] sm:$0xff] }
 0x1da   :  { %2865 = vtanh.f32 %v2532_v34  ;;  %v2471_v33 = vpack.c.bf16 %v1734_v25, %v1733_v31  ;;  %2440 = vmatpush3.bf16.msra.mxu0 %v2439_v24  ;;  %v1719_v34 = vld [vmem:[%s3992_s5 + $0xb0] sm:$0xff]  ;;  %v1712_v31 = vld [vmem:[%s3992_s5 + $0x78] sm:$0xff]  ;;  %v2489_v25 = vpack.c.bf16 %v1760_v30, %v1759_v28  ;;  %v1789_v30 = vld [vmem:[%s3992_s5 + $0x2e0] sm:$0xff] }
 0x1db   :  { %2867 = vtanh.f32 %v2534_v5  ;;  %v1751_v5 = vld [vmem:[%s3992_s5 + $0x1b0] sm:$0xff]  ;;  %v2441_v1 = vpack.c.bf16 %v1720_v35, %v1719_v34  ;;  %v1744_v35 = vld [vmem:[%s3992_s5 + $0x178] sm:$0xff] }
 0x1dc   :  { %2472 = vmatpush3.bf16.msra.mxu1 %v2471_v33  ;;  %v1711_v24 = vld [vmem:[%s3992_s5 + $0x70] sm:$0xff] }
 0x1dd   :  { %2442 = vmatprep.subr.bf16.mxu0 %v2441_v1  ;;  %v2459_v33 = vpack.c.bf16 %v1712_v31, %v1711_v24  ;;  %v1743_v34 = vld [vmem:[%s3992_s5 + $0x170] sm:$0xff]  ;;  %v1777_v1 = vld [vmem:[%s3992_s5 + $0x280] sm:$0xff]  ;;  %v1790_v24 = vld [vmem:[%s3992_s5 + $0x2e8] sm:$0xff] }
 0x1de   :  { %v1771_v28 = vld [vmem:[%s3992_s5 + $0x250] sm:$0xff] }
 0x1e4   :  { %v2866_v38 = vpop.eup %2865 }
 0x1e5   :  { %v2868_v39 = vpop.eup %2867  ;;  %v1670_v40 = vmul.f32 %v2866_v38, %v1653_v36  ;;  %v1752_v36 = vld [vmem:[%s3992_s5 + $0x1b8] sm:$0xff] }
 0x1e6   :  { %v1671_v41 = vmul.f32 %v2868_v39, %v1657_v37  ;;  %v1703_v37 = vld [vmem:[%s3992_s5 + $0x30] sm:$0xff]  ;;  %v1704_v38 = vld [vmem:[%s3992_s5 + $0x38] sm:$0xff]  ;;  %v2473_v39 = vpack.c.bf16 %v1752_v36, %v1751_v5  ;;  %v2491_v5 = vpack.c.bf16 %v1744_v35, %v1743_v34  ;;  %v1778_v36 = vld [vmem:[%s3992_s5 + $0x288] sm:$0xff] }
 0x1e7   :  { %v1675_v42 = vsel %vm1674_vm1, %v1670_v40, 0.0  ;;  %v2443_v40 = vpack.c.bf16 %v1704_v38, %v1703_v37  ;;  %v2493_v37 = vpack.c.bf16 %v1778_v36, %v1777_v1  ;;  %v2904_v38 = vmov 0.0|0.0   ;;  %v1774_v34 = vld [vmem:[%s3992_s5 + $0x268] sm:$0xff]  ;;  %v1791_v35 = vld [vmem:[%s3992_s5 + $0x2f0] sm:$0xff] }
 0x1e8   :  { %v1676_v43 = vsel %vm1674_vm1, %v1671_v41, 0.0  ;;  %v1735_v41 = vld [vmem:[%s3992_s5 + $0x130] sm:$0xff]  ;;  %2474 = vmatprep.subr.bf16.mxu1 %v2473_v39 }
 0x1e9   :  { %v1677_v44 = vadd.f32 %v1676_v43, %v1675_v42  ;;  %v1736_v42 = vld [vmem:[%s3992_s5 + $0x138] sm:$0xff]  ;;  %2444 = vmatpush3.bf16.msra.mxu0 %v2443_v40 }
 0x1ea   :  { %v2475_v43 = vpack.c.bf16 %v1736_v42, %v1735_v41 }
 0x1ec   :  { %2476 = vmatpush3.bf16.msra.mxu1 %v2475_v43  ;;  %v1761_v43 = vld [vmem:[%s3992_s5 + $0x200] sm:$0xff] }
 0x218   :  { %v1637_v49 = vpop.f32.mrb[4].mxu1 }
 0x219   :  { %v2535_v50 = vadd.f32 %v1637_v49, %v304_v47  ;;  %v1639_v51 = vpop.f32.mrb[5].mxu1  ;;  %v1705_v49 = vld [vmem:[%s3992_s5 + $0x40] sm:$0xff] }
 0x21a   :  { %v2536_v52 = vadd.f32 %v1639_v51, %v308_v48  ;;  %v1641_v54 = vpop.f32.mrb[6].mxu1  ;;  %v1754_v48 = vld [vmem:[%s3992_s5 + $0x1c8] sm:$0xff] }
 0x21b   :  { %2869 = vtanh.f32 %v2535_v50  ;;  %v1642_v55 = vpop.f32.mrb[7].mxu1  ;;  %v1706_v50 = vld [vmem:[%s3992_s5 + $0x48] sm:$0xff]  ;;  %v2477_v51 = vpack.c.bf16 %v1754_v48, %v1753_v46  ;;  %v1737_v54 = vld [vmem:[%s3992_s5 + $0x140] sm:$0xff] }
 0x21c   :  { %2871 = vtanh.f32 %v2536_v52  ;;  %v2447_v52 = vpack.c.bf16 %v1706_v50, %v1705_v49  ;;  %v1738_v55 = vld [vmem:[%s3992_s5 + $0x148] sm:$0xff]  ;;  %v1779_v49 = vld [vmem:[%s3992_s5 + $0x290] sm:$0xff]  ;;  %v1780_v50 = vld [vmem:[%s3992_s5 + $0x298] sm:$0xff] }
 0x21d   :  { %2478 = vmatprep.subr.bf16.mxu1 %v2477_v51  ;;  %v1794_v46 = vld [vmem:[%s3992_s5 + $0x308] sm:$0xff] }
 0x225   :  { %v2870_v59 = vpop.eup %2869 }
 0x226   :  { %v2872_v60 = vpop.eup %2871  ;;  %v1672_v62 = vmul.f32 %v2870_v59, %v1661_v57  ;;  %v2479_v57 = vpack.c.bf16 %v1738_v55, %v1737_v54  ;;  %v1724_v59 = vld [vmem:[%s3992_s5 + $0xd8] sm:$0xff] }
 0x227   :  { %v1673_v0 = vmul.f32 %v2872_v60, %v1665_v58  ;;  %v1723_v58 = vld [vmem:[%s3992_s5 + $0xd0] sm:$0xff] }
 0x228   :  { %v1678_v3 = vsel %vm1674_vm1, %v1672_v62, 0.0  ;;  %v1755_v60 = vld [vmem:[%s3992_s5 + $0x1d0] sm:$0xff]  ;;  %2480 = vmatpush3.bf16.msra.mxu1 %v2479_v57  ;;  %v2449_v62 = vpack.c.bf16 %v1724_v59, %v1723_v58 }
 0x229   :  { %v1679_v4 = vadd.f32 %v1678_v3, %v1677_v44  ;;  %v1680_v6 = vsel %vm1674_vm1, %v1673_v0, 0.0  ;;  %v1721_v44 = vld [vmem:[%s3992_s5 + $0xc0] sm:$0xff]  ;;  %v1756_v0 = vld [vmem:[%s3992_s5 + $0x1d8] sm:$0xff]  ;;  %v1707_v3 = vld [vmem:[%s3992_s5 + $0x50] sm:$0xff] }
 0x22a   :  { %v2445_v47 = vpack.c.bf16 %v1722_v45, %v1721_v44  ;;  %v1762_v44 = vld [vmem:[%s3992_s5 + $0x208] sm:$0xff]  ;;  %v1793_v45 = vld [vmem:[%s3992_s5 + $0x300] sm:$0xff]  ;;  %v1763_v59 = vld [vmem:[%s3992_s5 + $0x210] sm:$0xff] }
 0x22b   :  { %v1681_v7 = vadd.f32 %v1680_v6, %v1679_v4  ;;  %v1708_v4 = vld [vmem:[%s3992_s5 + $0x58] sm:$0xff]  ;;  %v2481_v6 = vpack.c.bf16 %v1756_v0, %v1755_v60  ;;  %v2495_v51 = vpack.c.bf16 %v1762_v44, %v1761_v43  ;;  %v2497_v60 = vpack.c.bf16 %v1780_v50, %v1779_v49  ;;  %v2306_v43 = vld [vmem:[%s3993_s6] ss:$0 sm:$0xff] }
 0x22c   :  { %2446 = vmatprep.subr.bf16.mxu0 %v2445_v47 }
 0x22d   :  { %1682 = vadd.xlane.f32.xlu0 %v1681_v7  ;;  %2448 = vmatpush3.bf16.msra.mxu0 %v2447_v52  ;;  %v2451_v7 = vpack.c.bf16 %v1708_v4, %v1707_v3  ;;  %v2526_v52 = vpack.c.bf16 %v1794_v46, %v1793_v45 }
 0x22e   :  { %2450 = vmatprep.subr.bf16.mxu0 %v2449_v62  ;;  %2482 = vmatprep.subr.bf16.mxu1 %v2481_v6  ;;  %v1764_v62 = vld [vmem:[%s3992_s5 + $0x218] sm:$0xff] }
 0x22f   :  { %2484 = vmatpush3.bf16.msra.mxu1 %v2483_v12  ;;  %v2499_v3 = vpack.c.bf16 %v1764_v62, %v1763_v59  ;;  %v1784_v12 = vld [vmem:[%s3992_s5 + $0x2b8] sm:$0xff] }
 0x230   :  { %2486 = vmatprep.subr.bf16.mxu1 %v2485_v20  ;;  %v2509_v20 = vpack.c.bf16 %v1786_v19, %v1785_v18 }
 0x231   :  { %2452 = vmatpush3.bf16.msra.mxu0 %v2451_v7  ;;  %v1765_v7 = vld [vmem:[%s3992_s5 + $0x220] sm:$0xff] }
 0x232   :  { %2454 = vmatprep.subr.bf16.mxu0 %v2453_v56  ;;  %v2503_v15 = vpack.c.bf16 %v1766_v8, %v1765_v7  ;;  %v1767_v56 = vld [vmem:[%s3992_s5 + $0x230] sm:$0xff] }
 0x233   :  { %2488 = vmatpush3.bf16.msra.mxu1 %v2487_v9  ;;  %v1788_v9 = vld [vmem:[%s3992_s5 + $0x2d8] sm:$0xff] }
 0x234   :  { %2490 = vmatprep.subr.bf16.mxu1 %v2489_v25  ;;  %v2513_v27 = vpack.c.bf16 %v1788_v9, %v1787_v63  ;;  %v2517_v25 = vpack.c.bf16 %v1790_v24, %v1789_v30 }
 0x235   :  { %2456 = vmatpush3.bf16.msra.mxu0 %v2455_v21  ;;  %v1769_v21 = vld [vmem:[%s3992_s5 + $0x240] sm:$0xff] }
 0x236   :  { %2458 = vmatprep.subr.bf16.mxu0 %v2457_v29  ;;  %v2511_v26 = vpack.c.bf16 %v1770_v23, %v1769_v21  ;;  %v1772_v29 = vld [vmem:[%s3992_s5 + $0x258] sm:$0xff] }
 0x237   :  { %2492 = vmatpush3.bf16.msra.mxu1 %v2491_v5  ;;  %v2515_v31 = vpack.c.bf16 %v1772_v29, %v1771_v28  ;;  %v1792_v5 = vld [vmem:[%s3992_s5 + $0x2f8] sm:$0xff] }
 0x238   :  { %2525 = vmatprep.subr.bf16.mxu1 %v2904_v38  ;;  %v2521_v36 = vpack.c.bf16 %v1792_v5, %v1791_v35 }
 0x239   :  { %2460 = vmatpush3.bf16.msra.mxu0 %v2459_v33  ;;  %v1773_v33 = vld [vmem:[%s3992_s5 + $0x260] sm:$0xff] }
 0x23a   :  { %2494 = vmatprep.subr.bf16.mxu0 %v2493_v37  ;;  %v2519_v1 = vpack.c.bf16 %v1774_v34, %v1773_v33  ;;  %v1775_v37 = vld [vmem:[%s3992_s5 + $0x270] sm:$0xff] }
 0x2ba   :  { %v1683_v39 = vpop.xlane.xlu0 %1682 }
 0x2bb   :  { %v1684_v40 = vsub.f32 %v1683_v39, %v1683_v39 }
 0x2bd   :  { %v1685_v41 = vmul.f32 1.442695, %v1684_v40 }
 0x2bf   :  { %2873 = vpow2.f32 %v1685_v41 }
 0x2c9   :  { %v2874_v42 = vpop.eup %2873 }
 0x2ca   :  { %2875 = vrcp.f32 %v2874_v42 }
 0x2d4   :  { %v2876_v47 = vpop.eup %2875 }
 0x2d5   :  { %v3865_v48 = vmul.f32 %v2876_v47, %v2874_v42 }
 0x2d7   :  { %v1691_v54 = vmul.f32 %v3865_v48, %v3118_v2  ;;  %v1693_v55 = vmul.f32 %v3865_v48, %v3142_v11  ;;  %v1690_v57 = vmul.f32 %v3865_v48, %v3102_v61  ;;  %v1692_v58 = vmul.f32 %v3865_v48, %v3333_v14  ;;  %v1795_v2 = vld [vmem:[%s3992_s5 + $0x310] sm:$0xff]  ;;  %v1796_v61 = vld [vmem:[%s3992_s5 + $0x318] sm:$0xff]  ;;  %v1781_v11 = vld [vmem:[%s3992_s5 + $0x2a0] sm:$0xff] }
 0x2d8   :  { %v1782_v14 = vld [vmem:[%s3992_s5 + $0x2a8] sm:$0xff]  ;;  %v1695_v0 = vmul.f32 %v3865_v48, %v3341_v22  ;;  %v2529_v4 = vpack.c.bf16 %v1796_v61, %v1795_v2  ;;  %v1783_v22 = vld [vmem:[%s3992_s5 + $0x2b0] sm:$0xff]  ;;  %v1696_v13 = vmul.f32 %v3865_v48, %v3078_v53  ;;  %v2507_v53 = vpack.c.bf16 %v1768_v17, %v1767_v56 }
 0x2d9   :  { %1871 = vmatprep.mubr.f32.mxu0 %v1691_v54  ;;  %1941 = vmatprep.mubr.f32.mxu1 %v1693_v55  ;;  %v2501_v6 = vpack.c.bf16 %v1782_v14, %v1781_v11  ;;  %v2505_v16 = vpack.c.bf16 %v1784_v12, %v1783_v22  ;;  %v1694_v40 = vmul.f32 %v3865_v48, %v3544_v32 }
 0x2da   :  { %1872 = vmatmul.mubr.f32.vlgmr.msra.gmra.mrb[4].mxu0 %v1690_v57  ;;  %1942 = vmatmul.mubr.f32.vlgmr.msra.gmra.mrb[8].mxu1 %v1692_v58 }
 0x2db   :  { %2496 = vmatpush3.bf16.msra.mxu0 %v2495_v51  ;;  %2527 = vmatpush3.bf16.msra.mxu1 %v2526_v52 }
 0x2dc   :  { %2011 = vmatprep.mubr.f32.mxu0 %v1695_v0  ;;  %2498 = vmatprep.subr.bf16.mxu0 %v2497_v60 }
 0x2dd   :  { %2528 = vmatprep.subr.bf16.mxu1 %v2904_v38  ;;  %2426 = vmatprep.mubr.msk.f32.mxu1 %vm2905_vm2, %v2906_v10  ;;  %v1776_v38 = vld [vmem:[%s3992_s5 + $0x278] sm:$0xff]  ;;  %s2907_s5 = smov [#allocation2]  }
 0x2de   :  { %v2523_v39 = vpack.c.bf16 %v1776_v38, %v1775_v37  ;;  %s2095_s19 = sshll.u32 %s2907_s5, 4  ;;  %s2096_s19 = int_to_ptr.vmem [resolvable:$true] %s2095_s19 }
 0x2df   :  { %2500 = vmatpush3.bf16.msra.mxu0 %v2499_v3  ;;  %2530 = vmatpush3.bf16.msra.mxu1 %v2529_v4  ;;  %s2877_s20 = scalar_lea.vmem %s2096_s19, 32  ;;  %p2882_p1 = scmp.lt.s32.totalorder %s2096_s19, %s2096_s19 }
 0x2e0   :  { %2502 = vmatprep.subr.bf16.mxu0 %v2501_v6  ;;  %p2878_p0 = scmp.ne.s32.totalorder %s2096_s19, %s2877_s20  ;;  %p2883_p2 = scmp.lt.s32.totalorder %s2877_s20, %s2877_s20 }
 0x2e2   :  { %2427 = vmatmul.mubr.msk.f32.vlgmr.msra.gmra.mrb[10].mxu1 %vm70_vm0, %v1696_v13  ;;  %p2884_p3 = por %p2883_p2, %p2882_p1 }
 0x2e3   :  { %2504 = vmatpush3.bf16.msra.mxu0 %v2503_v15 }
 0x2e4   :  { %2506 = vmatprep.subr.bf16.mxu0 %v2505_v16  ;;  %p2885_p4 = pnand %p2884_p3, %p2878_p0 }
 0x2e7   :  { %2508 = vmatpush3.bf16.msra.mxu0 %v2507_v53 }
 0x2e8   :  { %2510 = vmatprep.subr.bf16.mxu0 %v2509_v20 }
 0x2eb   :  { %2512 = vmatpush3.bf16.msra.mxu0 %v2511_v26 }
 0x2ec   :  { %2514 = vmatprep.subr.bf16.mxu0 %v2513_v27 }
 0x2ef   :  { %2516 = vmatpush3.bf16.msra.mxu0 %v2515_v31 }
 0x2f0   :  { %2518 = vmatprep.subr.bf16.mxu0 %v2517_v25 }
 0x2f3   :  { %2520 = vmatpush3.bf16.msra.mxu0 %v2519_v1 }
 0x2f4   :  { %2522 = vmatprep.subr.bf16.mxu0 %v2521_v36 }
 0x2f7   :  { %2524 = vmatpush3.bf16.msra.mxu0 %v2523_v39 }
 0x2fa   :  { %2012 = vmatmul.mubr.f32.vlgmr.msra.gmra.mrb[6].mxu0 %v1694_v40 }
 0x3ad   :  { %v2340_v41 = vpop.f32.mrb[4].mxu0  ;;  %v2375_v42 = vpop.f32.mrb[8].mxu1 }
 0x3ae   :  { %v2341_v44 = vpop.f32.mrb[5].mxu0  ;;  %v2376_v45 = vpop.f32.mrb[9].mxu1 }
 0x3af   :  { %v2342_v46 = vadd.f32 %v2341_v44, %v2340_v41  ;;  %v2377_v47 = vadd.f32 %v2376_v45, %v2375_v42 }
 0x3b1   :  { %v1874_v49 = vadd.f32 %v2342_v46, %v2306_v43 }
 0x3b3   :  { %v1944_v50 = vadd.f32 %v2377_v47, %v1874_v49 }
 0x3b5   :  { %v2083_v51 = vpop.f32.mrb[10].mxu1 }
 0x3b6   :  { %v2428_v52 = vpop.f32.mrb[11].mxu1 }
 0x3cd   :  { %v2410_v54 = vpop.f32.mrb[6].mxu0 }
 0x3ce   :  { %v2411_v55 = vpop.f32.mrb[7].mxu0 }
 0x3cf   :  { %v2412_v57 = vadd.f32 %v2411_v55, %v2410_v54 }
 0x3d1   :  { %v2014_v32 = vadd.f32 %v2412_v57, %v1944_v50 }
 0x3d3   :  { %v2084_v48 = vadd.f32 %v2083_v51, %v2014_v32 }
 0x3d5   :  { %2088 = vst.msk [vmem:[#allocation2] sm:$0x3] %vm2087_vm3, %v2084_v48 }
 0x3d6   :  { %2888 = shalt.err (!%p2885_p4)
}
 0x3d7   :  { %s2889_s0 = scalar_lea.hbm %s3994_s7, 32 }
 0x3d8   :  { %p2890_p5 = scmp.ne.s32.totalorder %s3994_s7, %s2889_s0  ;;  %p2893_p6 = scmp.lt.u32.totalorder %s2889_s0, %s3994_s7 }
 0x3da   :  { %p2895_p7 = pnand %p2893_p6, %p2890_p5 }
 0x3dc   :  { %2898 = shalt.err (!%p2895_p7)
}
 0x3dd   :  { %2098 = dma.vmem_to_hbm [thread:$0]  %s2096_s19, 32, %s3994_s7, [#allocation3]  }
 0x3de   :  { %2899 = dma.done.wait [#allocation3], 32  }
 0x3df   :  { %2900 = vsyncadd [#allocation3], 4294967264 }
 0x3e0   :  { %2102 = vsyncpa [#allocation3], 1 }

</bundles_post_ra>
